<compile_context>
chip_gen: v7x
topology: tpu7x:2x2x1
jax: 0.10.0
libtpu: 0.0.40
codegen_flags: <defaults>
</compile_context>

<pallas_src>
import functools

import jax
import jax.numpy as jnp
from jax.experimental import pallas as pl
from jax.experimental.pallas import tpu as pltpu

EPS = 1e-5


# ----------------------------------------------------------------------------
# in-kernel helpers
# ----------------------------------------------------------------------------
def _im2col_conv3x3(xpad_sc, col_sc, w_ref):
    """3x3 'same' conv as 3 accumulated K=3*Cin im2col matmuls (one per ky).

    xpad_sc : VMEM scratch ref (1, H+2, W+2, Cin); border rows/cols are zero,
              interior holds the current image (already in the matmul dtype).
    col_sc  : VMEM scratch ref (H*W, >= 3*Cin); first 3*Cin cols overwritten.
    w_ref   : weight ref (9*Cin, Cout), K ordered (ky, kx, cin).
    returns : (H*W, Cout) float32 accumulator.
    """
    _, hp, wp, cin = xpad_sc.shape
    h, w = hp - 2, wp - 2
    acc = None
    for ky in range(3):
        for kx in range(3):
            col_sc[:, kx * cin:(kx + 1) * cin] = (
                xpad_sc[:, ky:ky + h, kx:kx + w, :].reshape(h * w, cin))
        part = jnp.dot(col_sc[:, :3 * cin],
                       w_ref[3 * cin * ky:3 * cin * (ky + 1), :],
                       preferred_element_type=jnp.float32)
        acc = part if acc is None else acc + part
    return acc


def _stat_update(v):
    """Stacked (2, C) [sum; sum-of-squares] update from a (M, C) f32 value."""
    return jnp.concatenate(
        [jnp.sum(v, axis=0, keepdims=True),
         jnp.sum(v * v, axis=0, keepdims=True)], axis=0)


def _bn_scale_shift(stats, gamma, beta, count):
    """Per-channel affine (scale, shift) from accumulated (sum, sum-of-squares).

    Training-mode BatchNorm: biased variance over (N, H, W), eps = 1e-5.
    stats: (2, C) f32 [row0 = sum, row1 = sumsq]; gamma/beta: (1, C) f32.
    """
    # TODO(synk): switch to a shifted-sumsq / Welford accumulation for very
    # large N*H*W to avoid catastrophic cancellation.
    inv = 1.0 / count
    mean = stats[0:1, :] * inv
    var = jnp.maximum(stats[1:2, :] * inv - mean * mean, 0.0)
    scale = gamma * jax.lax.rsqrt(var + EPS)
    shift = beta - mean * scale
    return scale, shift


# ----------------------------------------------------------------------------
# stage 1: BN batch statistics of conv1(x) and skip(x)
# ----------------------------------------------------------------------------
def _stage1_stats_kernel(x_ref, w1_ref, ws_ref, s1_ref, ss_ref,
                         xpad_sc, col_sc, *, mm_dtype):
    n = pl.program_id(0)
    _, h, w, cin = x_ref.shape

    @pl.when(n == 0)
    def _init():
        xpad_sc[...] = jnp.zeros_like(xpad_sc)   # borders stay zero forever
        s1_ref[...] = jnp.zeros_like(s1_ref)
        ss_ref[...] = jnp.zeros_like(ss_ref)

    x = x_ref[...]
    xpad_sc[:, 1:h + 1, 1:w + 1, :] = x.astype(mm_dtype)

    conv1 = _im2col_conv3x3(xpad_sc, col_sc, w1_ref)             # (H*W, Cout)
    s1_ref[...] += _stat_update(conv1)

    skip = jnp.dot(x.reshape(h * w, cin).astype(mm_dtype), ws_ref[...],
                   preferred_element_type=jnp.float32)           # (H*W, Cout)
    ss_ref[...] += _stat_update(skip)


# ----------------------------------------------------------------------------
# stage 2: bn1 + ReLU + conv2 fused; accumulate bn2 statistics
# ----------------------------------------------------------------------------
def _stage2_conv2_kernel(x_ref, w1_ref, s1_ref, g1_ref, b1_ref, w2_ref,
                         c2_ref, s2_ref,
                         xpad_sc, rpad_sc, col_sc,
                         *, count, mm_dtype):
    n = pl.program_id(0)
    _, h, w, _cin = x_ref.shape
    cout = c2_ref.shape[-1]

    @pl.when(n == 0)
    def _init():
        xpad_sc[...] = jnp.zeros_like(xpad_sc)
        rpad_sc[...] = jnp.zeros_like(rpad_sc)
        s2_ref[...] = jnp.zeros_like(s2_ref)

    xpad_sc[:, 1:h + 1, 1:w + 1, :] = x_ref[...].astype(mm_dtype)
    conv1 = _im2col_conv3x3(xpad_sc, col_sc, w1_ref)             # (H*W, Cout)

    scale1, shift1 = _bn_scale_shift(s1_ref[...], g1_ref[...], b1_ref[...],
                                     count)
    relu1 = jnp.maximum(conv1 * scale1 + shift1, 0.0)            # f32

    rpad_sc[:, 1:h + 1, 1:w + 1, :] = (
        relu1.reshape(1, h, w, cout).astype(mm_dtype))
    conv2 = _im2col_conv3x3(rpad_sc, col_sc, w2_ref)             # (H*W, Cout)

    s2_ref[...] += _stat_update(conv2)
    c2_ref[...] = conv2.reshape(1, h, w, cout).astype(c2_ref.dtype)


# ----------------------------------------------------------------------------
# stage 3: bn2(conv2) + bn_skip(1x1 skip) + ReLU  (per-pixel, parallel over N)
# ----------------------------------------------------------------------------
def _stage3_output_kernel(c2_ref, x_ref, ws_ref, s2_ref, g2_ref, b2_ref,
                          ss_ref, gs_ref, bs_ref, o_ref, *, count, mm_dtype):
    _, h, w, cin = x_ref.shape
    cout = o_ref.shape[-1]

    scale2, shift2 = _bn_scale_shift(s2_ref[...], g2_ref[...], b2_ref[...],
                                     count)
    scale_s, shift_s = _bn_scale_shift(ss_ref[...], gs_ref[...], bs_ref[...],
                                       count)

    bn2 = (c2_ref[...].astype(jnp.float32).reshape(h * w, cout)
           * scale2 + shift2)

    skip = jnp.dot(x_ref[...].reshape(h * w, cin).astype(mm_dtype), ws_ref[...],
                   preferred_element_type=jnp.float32)
    bns = skip * scale_s + shift_s

    o_ref[...] = (jnp.maximum(bn2 + bns, 0.0)
                  .reshape(1, h, w, cout).astype(o_ref.dtype))


# ----------------------------------------------------------------------------
# wrapper
# ----------------------------------------------------------------------------
def residual_forward(x_nchw, params, stride=1, mm_dtype=jnp.bfloat16):
    """Pallas forward of the `residual` module.  x_nchw: (N, Cin, H, W) f32.

    mm_dtype: dtype fed to the MXU matmuls (default bfloat16: ~2-3x MXU
    throughput + half the scratch/HBM traffic); BN statistics, normalization
    and the final output stay float32.
    """
    if stride != 1:
        # TODO(synk): strided conv1 / strided 1x1 skip path not implemented.
        raise NotImplementedError("stride != 1 not implemented")
    w1, g1, b1, w2, g2, b2, ws, gs, bs = params
    n, cin, h, w = x_nchw.shape
    cout = w1.shape[0]
    if cin == cout:
        # TODO(synk): identity-skip variant (inp_dim == out_dim, stride == 1).
        raise NotImplementedError("identity skip not implemented")

    # NHWC activations: channels-last keeps the 128-lane axis dense for
    # realistic channel counts (>=128).
    x = jnp.transpose(x_nchw, (0, 2, 3, 1)).astype(jnp.float32)

    # Conv weights reshaped once for the im2col matmuls (K = 9*Cin, ordered
    # (ky, kx, cin)); 1x1 skip weight as a plain (Cin, Cout) matrix.
    w1f = jnp.transpose(w1, (2, 3, 1, 0)).reshape(9 * cin, cout).astype(mm_dtype)
    w2f = jnp.transpose(w2, (2, 3, 1, 0)).reshape(9 * cout, cout).astype(mm_dtype)
    wsf = jnp.transpose(ws[:, :, 0, 0], (1, 0)).astype(mm_dtype)
    rowp = lambda v: v.reshape(1, cout).astype(jnp.float32)
    count = float(n * h * w)            # BN population size per channel
    cmax = max(cin, cout)
    bmm = jnp.dtype(mm_dtype).itemsize
    bf32 = 4

    # Grid over N, one image per step; weights / stats resident in VMEM.
    x_spec = pl.BlockSpec((1, h, w, cin), lambda i: (i, 0, 0, 0))
    co_spec = pl.BlockSpec((1, h, w, cout), lambda i: (i, 0, 0, 0))
    stat_spec = pl.BlockSpec((2, cout), lambda i: (0, 0))
    g_spec = pl.BlockSpec((1, cout), lambda i: (0, 0))
    stat_shape = jax.ShapeDtypeStruct((2, cout), jnp.float32)

    def const_spec(arr):
        zeros = (0,) * arr.ndim
        return pl.BlockSpec(arr.shape, lambda i: zeros)

    def mk_params(semantics, block_bytes, scratch_bytes):
        # double-buffered blocks + persistent scratch + headroom; never below
        # the 32 MiB default so large-block pipelining is not constrained.
        need = 2 * int(block_bytes) + int(scratch_bytes) + (8 << 20)
        return pltpu.CompilerParams(
            dimension_semantics=semantics,
            vmem_limit_bytes=max(32 << 20, need))

    # -- stage 1: conv1 + skip batch statistics (no full-size HBM write) -----
    s1_blocks = (h * w * cin * bf32 + (9 * cin + cin) * cout * bmm
                 + 2 * 2 * cout * bf32)
    s1_scratch = ((h + 2) * (w + 2) * cin + h * w * 3 * cin) * bmm
    stats1, stats_s = pl.pallas_call(
        functools.partial(_stage1_stats_kernel, mm_dtype=mm_dtype),
        grid=(n,),
        in_specs=[x_spec, const_spec(w1f), const_spec(wsf)],
        out_specs=(stat_spec, stat_spec),
        out_shape=(stat_shape, stat_shape),
        scratch_shapes=[pltpu.VMEM((1, h + 2, w + 2, cin), mm_dtype),
                        pltpu.VMEM((h * w, 3 * cin), mm_dtype)],
        compiler_params=mk_params(("arbitrary",), s1_blocks, s1_scratch),
        cost_estimate=pl.CostEstimate(
            flops=2 * n * h * w * cout * (9 * cin + cin),
            transcendentals=0,
            bytes_accessed=bf32 * x.size + bmm * (w1f.size + wsf.size)),
    )(x, w1f, wsf)

    # -- stage 2: bn1 + ReLU + conv2 fused; conv2 (bf16) is the only
    #    full-size HBM intermediate --------------------------------------
    s2_blocks = (h * w * cin * bf32 + (9 * cin + 9 * cout) * cout * bmm
                 + h * w * cout * bmm + (2 + 2) * cout * bf32)
    s2_scratch = (((h + 2) * (w + 2) * (cin + cout)
                   + h * w * 3 * cmax) * bmm)
    conv2, stats2 = pl.pallas_call(
        functools.partial(_stage2_conv2_kernel, count=count, mm_dtype=mm_dtype),
        grid=(n,),
        in_specs=[x_spec, const_spec(w1f), stat_spec, g_spec, g_spec,
                  const_spec(w2f)],
        out_specs=(co_spec, stat_spec),
        out_shape=(jax.ShapeDtypeStruct((n, h, w, cout), mm_dtype),
                   stat_shape),
        scratch_shapes=[pltpu.VMEM((1, h + 2, w + 2, cin), mm_dtype),
                        pltpu.VMEM((1, h + 2, w + 2, cout), mm_dtype),
                        pltpu.VMEM((h * w, 3 * cmax), mm_dtype)],
        compiler_params=mk_params(("arbitrary",), s2_blocks, s2_scratch),
        cost_estimate=pl.CostEstimate(
            flops=2 * n * h * w * cout * (9 * cin + 9 * cout),
            transcendentals=0,
            bytes_accessed=bf32 * x.size + bmm * n * h * w * cout),
    )(x, w1f, stats1, rowp(g1), rowp(b1), w2f)

    # -- stage 3: bn2 + bn_skip + add + ReLU ---------------------------------
    s3_blocks = (h * w * cout * bmm + h * w * cin * bf32 + cin * cout * bmm
                 + h * w * cout * bf32 + (4 + 4) * cout * bf32)
    out_nhwc = pl.pallas_call(
        functools.partial(_stage3_output_kernel, count=count, mm_dtype=mm_dtype),
        grid=(n,),
        in_specs=[co_spec, x_spec, const_spec(wsf), stat_spec, g_spec, g_spec,
                  stat_spec, g_spec, g_spec],
        out_specs=co_spec,
        out_shape=jax.ShapeDtypeStruct((n, h, w, cout), jnp.float32),
        compiler_params=mk_params(("parallel",), s3_blocks, 0),
        cost_estimate=pl.CostEstimate(
            flops=2 * n * h * w * cin * cout + 8 * n * h * w * cout,
            transcendentals=0,
            bytes_accessed=(bmm * n * h * w * cout + bf32 * x.size
                            + bf32 * n * h * w * cout)),
    )(conv2, x, wsf, stats2, rowp(g2), rowp(b2), stats_s, rowp(gs), rowp(bs))

    return jnp.transpose(out_nhwc, (0, 3, 1, 2))                  # back to NCHW


# ----------------------------------------------------------------------------
# pure-JAX reference (NCHW, matches PyTorch training-mode forward)
# ----------------------------------------------------------------------------
def ref_forward(x, params):
    w1, g1, b1, w2, g2, b2, ws, gs, bs = params

    def conv(v, wgt, pad):
        return jax.lax.conv_general_dilated(
            v, wgt, (1, 1), ((pad, pad), (pad, pad)),
            dimension_numbers=("NCHW", "OIHW", "NCHW"))

    def bn(v, g, b):
        mean = jnp.mean(v, axis=(0, 2, 3), keepdims=True)
        var = jnp.mean((v - mean) ** 2, axis=(0, 2, 3), keepdims=True)
        return (v - mean) * jax.lax.rsqrt(var + EPS) * g.reshape(1, -1, 1, 1) \
            + b.reshape(1, -1, 1, 1)

    r1 = jax.nn.relu(bn(conv(x, w1, 1), g1, b1))
    bn2 = bn(conv(r1, w2, 1), g2, b2)
    sk = bn(conv(x, ws, 0), gs, bs)
    return jax.nn.relu(bn2 + sk)


if __name__ == "__main__":
    key = jax.random.PRNGKey(0)
    N, Cin, H, W = 2, 4, 16, 16
    Cout = 8
    ks = jax.random.split(key, 10)
    x = jax.random.normal(ks[0], (N, Cin, H, W), jnp.float32)
    w1 = jax.random.normal(ks[1], (Cout, Cin, 3, 3), jnp.float32) * 0.2
    g1 = jax.random.uniform(ks[2], (Cout,), jnp.float32, 0.5, 1.5)
    b1 = jax.random.normal(ks[3], (Cout,), jnp.float32) * 0.1
    w2 = jax.random.normal(ks[4], (Cout, Cout, 3, 3), jnp.float32) * 0.2
    g2 = jax.random.uniform(ks[5], (Cout,), jnp.float32, 0.5, 1.5)
    b2 = jax.random.normal(ks[6], (Cout,), jnp.float32) * 0.1
    ws = jax.random.normal(ks[7], (Cout, Cin, 1, 1), jnp.float32) * 0.2
    gs = jax.random.uniform(ks[8], (Cout,), jnp.float32, 0.5, 1.5)
    bs = jax.random.normal(ks[9], (Cout,), jnp.float32) * 0.1
    params = (w1, g1, b1, w2, g2, b2, ws, gs, bs)

    out = residual_forward(x, params)       # default mm_dtype = bfloat16
    out = jax.block_until_ready(out)

    ref = ref_forward(x, params)
    assert out.shape == ref.shape == (N, Cout, H, W), (out.shape, ref.shape)
    max_err = float(jnp.max(jnp.abs(out - ref)))
    # bf16 MXU inputs + bf16 conv2 intermediate -> slightly looser tolerance
    # than a pure-f32 run; still catches any structural / indexing bug.
    if not bool(jnp.allclose(out, ref, atol=5e-2, rtol=5e-2)):
        raise AssertionError(f"kernel vs reference mismatch, max abs err = {max_err}")
    print("KERNEL_OK")
</pallas_src>

<mosaic_0001>
module attributes {stable_mosaic.version = 11 : i64} {
  func.func @_stage1_stats_kernel(%arg0: i32, %arg1: memref<1x16x16x4xf32, #tpu.memory_space<vmem>>, %arg2: memref<36x8xbf16, #tpu.memory_space<vmem>>, %arg3: memref<4x8xbf16, #tpu.memory_space<vmem>>, %arg4: memref<2x8xf32, #tpu.memory_space<vmem>>, %arg5: memref<2x8xf32, #tpu.memory_space<vmem>>, %arg6: memref<1x18x18x4xbf16, #tpu.memory_space<vmem>>, %arg7: memref<256x12xbf16, #tpu.memory_space<vmem>>) attributes {dimension_semantics = [#tpu.dimension_semantics<arbitrary>], iteration_bounds = array<i64: 2>, scalar_prefetch = 0 : i64, scratch_operands = 2 : i64, tpu.core_type = #tpu.core_type<tc>, window_params = [{transform_indices = @transform_0, window_bounds = array<i64: 1, 16, 16, 4>}, {pipeline_mode = #tpu.pipeline_mode<synchronous>, transform_indices = @transform_1, window_bounds = array<i64: 36, 8>}, {pipeline_mode = #tpu.pipeline_mode<synchronous>, transform_indices = @transform_2, window_bounds = array<i64: 4, 8>}, {pipeline_mode = #tpu.pipeline_mode<synchronous>, transform_indices = @transform_3, window_bounds = array<i64: 2, 8>}, {pipeline_mode = #tpu.pipeline_mode<synchronous>, transform_indices = @transform_4, window_bounds = array<i64: 2, 8>}]} {
    %c0_i32 = arith.constant 0 : i32
    %0 = arith.cmpi eq, %arg0, %c0_i32 : i32
    %1 = arith.extui %0 : i1 to i32
    %c0_i32_0 = arith.constant 0 : i32
    %2 = arith.cmpi ne, %1, %c0_i32_0 : i32
    scf.if %2 {
      %cst_85 = arith.constant 0.000000e+00 : bf16
      %66 = vector.broadcast %cst_85 : bf16 to vector<1x18x18x4xbf16>
      %c0_86 = arith.constant 0 : index
      %c0_87 = arith.constant 0 : index
      %c0_88 = arith.constant 0 : index
      %c0_89 = arith.constant 0 : index
      %67 = vector.load %arg6[%c0_86, %c0_87, %c0_88, %c0_89] : memref<1x18x18x4xbf16, #tpu.memory_space<vmem>>, vector<1x18x18x4xbf16>
      tpu.vector_store %arg6[%c0_86, %c0_87, %c0_88, %c0_89], %66 {strides = array<i32>} : memref<1x18x18x4xbf16, #tpu.memory_space<vmem>>, vector<1x18x18x4xbf16>,
      %cst_90 = arith.constant 0.000000e+00 : f32
      %68 = vector.broadcast %cst_90 : f32 to vector<2x8xf32>
      %c0_91 = arith.constant 0 : index
      %c0_92 = arith.constant 0 : index
      %69 = vector.load %arg4[%c0_91, %c0_92] : memref<2x8xf32, #tpu.memory_space<vmem>>, vector<2x8xf32>
      tpu.vector_store %arg4[%c0_91, %c0_92], %68 {strides = array<i32>} : memref<2x8xf32, #tpu.memory_space<vmem>>, vector<2x8xf32>,
      %cst_93 = arith.constant 0.000000e+00 : f32
      %70 = vector.broadcast %cst_93 : f32 to vector<2x8xf32>
      %c0_94 = arith.constant 0 : index
      %c0_95 = arith.constant 0 : index
      %71 = vector.load %arg5[%c0_94, %c0_95] : memref<2x8xf32, #tpu.memory_space<vmem>>, vector<2x8xf32>
      tpu.vector_store %arg5[%c0_94, %c0_95], %70 {strides = array<i32>} : memref<2x8xf32, #tpu.memory_space<vmem>>, vector<2x8xf32>,
    } else {
    }
    %c0 = arith.constant 0 : index
    %c0_1 = arith.constant 0 : index
    %c0_2 = arith.constant 0 : index
    %c0_3 = arith.constant 0 : index
    %3 = vector.load %arg1[%c0, %c0_1, %c0_2, %c0_3] : memref<1x16x16x4xf32, #tpu.memory_space<vmem>>, vector<1x16x16x4xf32>
    %4 = arith.truncf %3 : vector<1x16x16x4xf32> to vector<1x16x16x4xbf16>
    %c0_4 = arith.constant 0 : index
    %c1 = arith.constant 1 : index
    %c1_5 = arith.constant 1 : index
    %c0_6 = arith.constant 0 : index
    %5 = vector.load %arg6[%c0_4, %c1, %c1_5, %c0_6] : memref<1x18x18x4xbf16, #tpu.memory_space<vmem>>, vector<1x16x16x4xbf16>
    tpu.vector_store %arg6[%c0_4, %c1, %c1_5, %c0_6], %4 {strides = array<i32>} : memref<1x18x18x4xbf16, #tpu.memory_space<vmem>>, vector<1x16x16x4xbf16>,
    %c0_7 = arith.constant 0 : index
    %c0_8 = arith.constant 0 : index
    %c0_9 = arith.constant 0 : index
    %c0_10 = arith.constant 0 : index
    %6 = vector.load %arg6[%c0_7, %c0_8, %c0_9, %c0_10] : memref<1x18x18x4xbf16, #tpu.memory_space<vmem>>, vector<1x16x16x4xbf16>
    %7 = vector.shape_cast %6 : vector<1x16x16x4xbf16> to vector<256x4xbf16>
    %c0_11 = arith.constant 0 : index
    %c0_12 = arith.constant 0 : index
    %8 = vector.load %arg7[%c0_11, %c0_12] : memref<256x12xbf16, #tpu.memory_space<vmem>>, vector<256x4xbf16>
    tpu.vector_store %arg7[%c0_11, %c0_12], %7 {strides = array<i32>} : memref<256x12xbf16, #tpu.memory_space<vmem>>, vector<256x4xbf16>,
    %c0_13 = arith.constant 0 : index
    %c0_14 = arith.constant 0 : index
    %c1_15 = arith.constant 1 : index
    %c0_16 = arith.constant 0 : index
    %9 = vector.load %arg6[%c0_13, %c0_14, %c1_15, %c0_16] : memref<1x18x18x4xbf16, #tpu.memory_space<vmem>>, vector<1x16x16x4xbf16>
    %10 = vector.shape_cast %9 : vector<1x16x16x4xbf16> to vector<256x4xbf16>
    %c0_17 = arith.constant 0 : index
    %c4 = arith.constant 4 : index
    %11 = vector.load %arg7[%c0_17, %c4] : memref<256x12xbf16, #tpu.memory_space<vmem>>, vector<256x4xbf16>
    tpu.vector_store %arg7[%c0_17, %c4], %10 {strides = array<i32>} : memref<256x12xbf16, #tpu.memory_space<vmem>>, vector<256x4xbf16>,
    %c0_18 = arith.constant 0 : index
    %c0_19 = arith.constant 0 : index
    %c2 = arith.constant 2 : index
    %c0_20 = arith.constant 0 : index
    %12 = vector.load %arg6[%c0_18, %c0_19, %c2, %c0_20] : memref<1x18x18x4xbf16, #tpu.memory_space<vmem>>, vector<1x16x16x4xbf16>
    %13 = vector.shape_cast %12 : vector<1x16x16x4xbf16> to vector<256x4xbf16>
    %c0_21 = arith.constant 0 : index
    %c8 = arith.constant 8 : index
    %14 = vector.load %arg7[%c0_21, %c8] : memref<256x12xbf16, #tpu.memory_space<vmem>>, vector<256x4xbf16>
    tpu.vector_store %arg7[%c0_21, %c8], %13 {strides = array<i32>} : memref<256x12xbf16, #tpu.memory_space<vmem>>, vector<256x4xbf16>,
    %c0_22 = arith.constant 0 : index
    %c0_23 = arith.constant 0 : index
    %15 = vector.load %arg7[%c0_22, %c0_23] : memref<256x12xbf16, #tpu.memory_space<vmem>>, vector<256x12xbf16>
    %c0_24 = arith.constant 0 : index
    %c0_25 = arith.constant 0 : index
    %16 = vector.load %arg2[%c0_24, %c0_25] : memref<36x8xbf16, #tpu.memory_space<vmem>>, vector<12x8xbf16>
    %cst = arith.constant dense<0.000000e+00> : vector<256x8xf32>
    %17 = tpu.matmul %15, %16, %cst {dimension_numbers = #tpu.dot_dimension_numbers<[1], [0], [0], [1], [0, 0, 1, 1], [], []>} : vector<256x12xbf16>, vector<12x8xbf16>, vector<256x8xf32> -> vector<256x8xf32>
    %c0_26 = arith.constant 0 : index
    %c1_27 = arith.constant 1 : index
    %c0_28 = arith.constant 0 : index
    %c0_29 = arith.constant 0 : index
    %18 = vector.load %arg6[%c0_26, %c1_27, %c0_28, %c0_29] : memref<1x18x18x4xbf16, #tpu.memory_space<vmem>>, vector<1x16x16x4xbf16>
    %19 = vector.shape_cast %18 : vector<1x16x16x4xbf16> to vector<256x4xbf16>
    %c0_30 = arith.constant 0 : index
    %c0_31 = arith.constant 0 : index
    %20 = vector.load %arg7[%c0_30, %c0_31] : memref<256x12xbf16, #tpu.memory_space<vmem>>, vector<256x4xbf16>
    tpu.vector_store %arg7[%c0_30, %c0_31], %19 {strides = array<i32>} : memref<256x12xbf16, #tpu.memory_space<vmem>>, vector<256x4xbf16>,
    %c0_32 = arith.constant 0 : index
    %c1_33 = arith.constant 1 : index
    %c1_34 = arith.constant 1 : index
    %c0_35 = arith.constant 0 : index
    %21 = vector.load %arg6[%c0_32, %c1_33, %c1_34, %c0_35] : memref<1x18x18x4xbf16, #tpu.memory_space<vmem>>, vector<1x16x16x4xbf16>
    %22 = vector.shape_cast %21 : vector<1x16x16x4xbf16> to vector<256x4xbf16>
    %c0_36 = arith.constant 0 : index
    %c4_37 = arith.constant 4 : index
    %23 = vector.load %arg7[%c0_36, %c4_37] : memref<256x12xbf16, #tpu.memory_space<vmem>>, vector<256x4xbf16>
    tpu.vector_store %arg7[%c0_36, %c4_37], %22 {strides = array<i32>} : memref<256x12xbf16, #tpu.memory_space<vmem>>, vector<256x4xbf16>,
    %c0_38 = arith.constant 0 : index
    %c1_39 = arith.constant 1 : index
    %c2_40 = arith.constant 2 : index
    %c0_41 = arith.constant 0 : index
    %24 = vector.load %arg6[%c0_38, %c1_39, %c2_40, %c0_41] : memref<1x18x18x4xbf16, #tpu.memory_space<vmem>>, vector<1x16x16x4xbf16>
    %25 = vector.shape_cast %24 : vector<1x16x16x4xbf16> to vector<256x4xbf16>
    %c0_42 = arith.constant 0 : index
    %c8_43 = arith.constant 8 : index
    %26 = vector.load %arg7[%c0_42, %c8_43] : memref<256x12xbf16, #tpu.memory_space<vmem>>, vector<256x4xbf16>
    tpu.vector_store %arg7[%c0_42, %c8_43], %25 {strides = array<i32>} : memref<256x12xbf16, #tpu.memory_space<vmem>>, vector<256x4xbf16>,
    %c0_44 = arith.constant 0 : index
    %c0_45 = arith.constant 0 : index
    %27 = vector.load %arg7[%c0_44, %c0_45] : memref<256x12xbf16, #tpu.memory_space<vmem>>, vector<256x12xbf16>
    %c12 = arith.constant 12 : index
    %c0_46 = arith.constant 0 : index
    %28 = vector.load %arg2[%c12, %c0_46] : memref<36x8xbf16, #tpu.memory_space<vmem>>, vector<12x8xbf16>
    %cst_47 = arith.constant dense<0.000000e+00> : vector<256x8xf32>
    %29 = tpu.matmul %27, %28, %cst_47 {dimension_numbers = #tpu.dot_dimension_numbers<[1], [0], [0], [1], [0, 0, 1, 1], [], []>} : vector<256x12xbf16>, vector<12x8xbf16>, vector<256x8xf32> -> vector<256x8xf32>
    %30 = arith.addf %17, %29 : vector<256x8xf32>
    %c0_48 = arith.constant 0 : index
    %c2_49 = arith.constant 2 : index
    %c0_50 = arith.constant 0 : index
    %c0_51 = arith.constant 0 : index
    %31 = vector.load %arg6[%c0_48, %c2_49, %c0_50, %c0_51] : memref<1x18x18x4xbf16, #tpu.memory_space<vmem>>, vector<1x16x16x4xbf16>
    %32 = vector.shape_cast %31 : vector<1x16x16x4xbf16> to vector<256x4xbf16>
    %c0_52 = arith.constant 0 : index
    %c0_53 = arith.constant 0 : index
    %33 = vector.load %arg7[%c0_52, %c0_53] : memref<256x12xbf16, #tpu.memory_space<vmem>>, vector<256x4xbf16>
    tpu.vector_store %arg7[%c0_52, %c0_53], %32 {strides = array<i32>} : memref<256x12xbf16, #tpu.memory_space<vmem>>, vector<256x4xbf16>,
    %c0_54 = arith.constant 0 : index
    %c2_55 = arith.constant 2 : index
    %c1_56 = arith.constant 1 : index
    %c0_57 = arith.constant 0 : index
    %34 = vector.load %arg6[%c0_54, %c2_55, %c1_56, %c0_57] : memref<1x18x18x4xbf16, #tpu.memory_space<vmem>>, vector<1x16x16x4xbf16>
    %35 = vector.shape_cast %34 : vector<1x16x16x4xbf16> to vector<256x4xbf16>
    %c0_58 = arith.constant 0 : index
    %c4_59 = arith.constant 4 : index
    %36 = vector.load %arg7[%c0_58, %c4_59] : memref<256x12xbf16, #tpu.memory_space<vmem>>, vector<256x4xbf16>
    tpu.vector_store %arg7[%c0_58, %c4_59], %35 {strides = array<i32>} : memref<256x12xbf16, #tpu.memory_space<vmem>>, vector<256x4xbf16>,
    %c0_60 = arith.constant 0 : index
    %c2_61 = arith.constant 2 : index
    %c2_62 = arith.constant 2 : index
    %c0_63 = arith.constant 0 : index
    %37 = vector.load %arg6[%c0_60, %c2_61, %c2_62, %c0_63] : memref<1x18x18x4xbf16, #tpu.memory_space<vmem>>, vector<1x16x16x4xbf16>
    %38 = vector.shape_cast %37 : vector<1x16x16x4xbf16> to vector<256x4xbf16>
    %c0_64 = arith.constant 0 : index
    %c8_65 = arith.constant 8 : index
    %39 = vector.load %arg7[%c0_64, %c8_65] : memref<256x12xbf16, #tpu.memory_space<vmem>>, vector<256x4xbf16>
    tpu.vector_store %arg7[%c0_64, %c8_65], %38 {strides = array<i32>} : memref<256x12xbf16, #tpu.memory_space<vmem>>, vector<256x4xbf16>,
    %c0_66 = arith.constant 0 : index
    %c0_67 = arith.constant 0 : index
    %40 = vector.load %arg7[%c0_66, %c0_67] : memref<256x12xbf16, #tpu.memory_space<vmem>>, vector<256x12xbf16>
    %c24 = arith.constant 24 : index
    %c0_68 = arith.constant 0 : index
    %41 = vector.load %arg2[%c24, %c0_68] : memref<36x8xbf16, #tpu.memory_space<vmem>>, vector<12x8xbf16>
    %cst_69 = arith.constant dense<0.000000e+00> : vector<256x8xf32>
    %42 = tpu.matmul %40, %41, %cst_69 {dimension_numbers = #tpu.dot_dimension_numbers<[1], [0], [0], [1], [0, 0, 1, 1], [], []>} : vector<256x12xbf16>, vector<12x8xbf16>, vector<256x8xf32> -> vector<256x8xf32>
    %43 = arith.addf %30, %42 : vector<256x8xf32>
    %c0_70 = arith.constant 0 : index
    %c0_71 = arith.constant 0 : index
    %44 = vector.load %arg4[%c0_70, %c0_71] : memref<2x8xf32, #tpu.memory_space<vmem>>, vector<2x8xf32>
    %cst_72 = arith.constant dense<0.000000e+00> : vector<8xf32>
    %45 = vector.multi_reduction <add>, %43, %cst_72 [0] : vector<256x8xf32> to vector<8xf32>
    %46 = vector.shape_cast %45 : vector<8xf32> to vector<1x8xf32>
    %47 = arith.mulf %43, %43 : vector<256x8xf32>
    %cst_73 = arith.constant dense<0.000000e+00> : vector<8xf32>
    %48 = vector.multi_reduction <add>, %47, %cst_73 [0] : vector<256x8xf32> to vector<8xf32>
    %49 = vector.shape_cast %48 : vector<8xf32> to vector<1x8xf32>
    %50 = tpu.concatenate %46, %49 in 0 : vector<1x8xf32>, vector<1x8xf32> -> vector<2x8xf32>
    %51 = arith.addf %44, %50 : vector<2x8xf32>
    %c0_74 = arith.constant 0 : index
    %c0_75 = arith.constant 0 : index
    %52 = vector.load %arg4[%c0_74, %c0_75] : memref<2x8xf32, #tpu.memory_space<vmem>>, vector<2x8xf32>
    tpu.vector_store %arg4[%c0_74, %c0_75], %51 {strides = array<i32>} : memref<2x8xf32, #tpu.memory_space<vmem>>, vector<2x8xf32>,
    %53 = vector.shape_cast %3 : vector<1x16x16x4xf32> to vector<256x4xf32>
    %54 = arith.truncf %53 : vector<256x4xf32> to vector<256x4xbf16>
    %c0_76 = arith.constant 0 : index
    %c0_77 = arith.constant 0 : index
    %55 = vector.load %arg3[%c0_76, %c0_77] : memref<4x8xbf16, #tpu.memory_space<vmem>>, vector<4x8xbf16>
    %cst_78 = arith.constant dense<0.000000e+00> : vector<256x8xf32>
    %56 = tpu.matmul %54, %55, %cst_78 {dimension_numbers = #tpu.dot_dimension_numbers<[1], [0], [0], [1], [0, 0, 1, 1], [], []>} : vector<256x4xbf16>, vector<4x8xbf16>, vector<256x8xf32> -> vector<256x8xf32>
    %c0_79 = arith.constant 0 : index
    %c0_80 = arith.constant 0 : index
    %57 = vector.load %arg5[%c0_79, %c0_80] : memref<2x8xf32, #tpu.memory_space<vmem>>, vector<2x8xf32>
    %cst_81 = arith.constant dense<0.000000e+00> : vector<8xf32>
    %58 = vector.multi_reduction <add>, %56, %cst_81 [0] : vector<256x8xf32> to vector<8xf32>
    %59 = vector.shape_cast %58 : vector<8xf32> to vector<1x8xf32>
    %60 = arith.mulf %56, %56 : vector<256x8xf32>
    %cst_82 = arith.constant dense<0.000000e+00> : vector<8xf32>
    %61 = vector.multi_reduction <add>, %60, %cst_82 [0] : vector<256x8xf32> to vector<8xf32>
    %62 = vector.shape_cast %61 : vector<8xf32> to vector<1x8xf32>
    %63 = tpu.concatenate %59, %62 in 0 : vector<1x8xf32>, vector<1x8xf32> -> vector<2x8xf32>
    %64 = arith.addf %57, %63 : vector<2x8xf32>
    %c0_83 = arith.constant 0 : index
    %c0_84 = arith.constant 0 : index
    %65 = vector.load %arg5[%c0_83, %c0_84] : memref<2x8xf32, #tpu.memory_space<vmem>>, vector<2x8xf32>
    tpu.vector_store %arg5[%c0_83, %c0_84], %64 {strides = array<i32>} : memref<2x8xf32, #tpu.memory_space<vmem>>, vector<2x8xf32>,
    return
  }
  func.func @transform_0(%arg0: i32) -> (i32, i32, i32, i32) {
    %c0_i32 = arith.constant 0 : i32
    %c0_i32_0 = arith.constant 0 : i32
    %c0_i32_1 = arith.constant 0 : i32
    %c0_i32_2 = arith.constant 0 : i32
    return %arg0, %c0_i32, %c0_i32_0, %c0_i32_1 : i32, i32, i32, i32
  }
  func.func @transform_1(%arg0: i32) -> (i32, i32) {
    %c0_i32 = arith.constant 0 : i32
    %c0_i32_0 = arith.constant 0 : i32
    %c0_i32_1 = arith.constant 0 : i32
    return %c0_i32, %c0_i32_0 : i32, i32
  }
  func.func @transform_2(%arg0: i32) -> (i32, i32) {
    %c0_i32 = arith.constant 0 : i32
    %c0_i32_0 = arith.constant 0 : i32
    %c0_i32_1 = arith.constant 0 : i32
    return %c0_i32, %c0_i32_0 : i32, i32
  }
  func.func @transform_3(%arg0: i32) -> (i32, i32) {
    %c0_i32 = arith.constant 0 : i32
    %c0_i32_0 = arith.constant 0 : i32
    %c0_i32_1 = arith.constant 0 : i32
    return %c0_i32, %c0_i32_0 : i32, i32
  }
  func.func @transform_4(%arg0: i32) -> (i32, i32) {
    %c0_i32 = arith.constant 0 : i32
    %c0_i32_0 = arith.constant 0 : i32
    %c0_i32_1 = arith.constant 0 : i32
    return %c0_i32, %c0_i32_0 : i32, i32
  }
}

</mosaic_0001>

<bundles_post_ra>
// kernel: tpu_custom_call.1
= control target key start
LH: loop header
LB: loop body
LE: loop exit
PB: predicated region body
PF: predicated region fallthrough
CT: control target
= control target key end

     0   :  { %10 = vsyncpa [#allocation5], 0  ;;  %s7888_s0 = inlined_call_operand.vmem [shape: f32[2,16,16,4], index: 0, kind: input, shape index: {}]   ;;  %s7889_s1 = inlined_call_operand.vmem [shape: bf16[36,8], index: 1, kind: input, shape index: {}]   ;;  %s7890_s2 = inlined_call_operand.vmem [shape: bf16[4,8], index: 2, kind: input, shape index: {}]   ;;  %s7891_s3 = inlined_call_operand.hbm [shape: f32[2,8], index: 3, kind: output, shape index: {0}]   ;;  %s7892_s4 = inlined_call_operand.hbm [shape: f32[2,8], index: 4, kind: output, shape index: {1}]  }
   0x1   :  { %11 = vsyncpa [#allocation7], 0  ;;  %s6042_s15 = smov 0  }
   0x2 LB: > { %s6048_s16 = sadd.s32 4294967295, %s6009_s15   ;;  %p5227_p0 = scmp.ge.s32.totalorder %s6009_s15, 1  ;;  %s6009_s15 = sphi %s6042_s15, %s17_s15  }
   0x3   : > { %p157_p1 = scmp.lt.s32.totalorder %s6009_s15, 3 }
   0x5   : > { %p158_p2 = pnand %p5227_p0, %p157_p1 }
   0x7   : > { %161 = sbr.rel (%p158_p2) target bundleno = 824 (0x338), region = 32 }
   0xe   : > { %p178_p3 = scmp.lt.s32.totalorder %s6048_s16, 1  ;;  %p5230_p4 = scmp.ne.s32.totalorder %s6048_s16, 0 }
   0xf   : > { %vm188_vm0 = vcmask (!%p5230_p4), 27648   ;;  %vm191_vm1 = vcmask (!%p5230_p4), 24576   ;;  %vm244_vm2 = vcmask (!%p5230_p4), 58368   ;;  %v6011_v0 = vmov (!%p5230_p4), 0  }
  0x10   : > { %s179_s17 = scalar_select %p178_p3, %s6048_s16, 1 }
  0x11   : > { %187 = sbr.rel (%p5230_p4) target bundleno = 45 (0x2d), region = 36  ;;  %189 = vst.msk [vmem:[#allocation2] sm:$0xf] (!%p5230_p4), %vm188_vm0, %v6011_v0  ;;  %190 = vst.msk [vmem:[#allocation2 + $0x4] sm:$0xf] (!%p5230_p4), %vm188_vm0, %v6011_v0  ;;  %v6012_v1 = vmov (!%p5230_p4), 0.0  }
  0x12   : > { %s5528_s18 = sshll.u32 %s179_s17, 8  ;;  %193 = vst.msk [vmem:[#allocation2 + $0xc] sm:$0xf] (!%p5230_p4), %vm188_vm0, %v6011_v0  ;;  %194 = vst.msk [vmem:[#allocation2 + $0x10] sm:$0xf] (!%p5230_p4), %vm188_vm0, %v6011_v0 }
  0x13   : > { %s6057_s21 = scalar_lea.vmem %s7888_s0, %s5528_s18  ;;  %196 = vst.msk [vmem:[#allocation2 + $0x18] sm:$0xf] (!%p5230_p4), %vm188_vm0, %v6011_v0  ;;  %197 = vst.msk [vmem:[#allocation2 + $0x1c] sm:$0xf] (!%p5230_p4), %vm188_vm0, %v6011_v0 }
  0x14   : > { %199 = vst.msk [vmem:[#allocation2 + $0x24] sm:$0xf] (!%p5230_p4), %vm188_vm0, %v6011_v0  ;;  %200 = vst.msk [vmem:[#allocation2 + $0x28] sm:$0xf] (!%p5230_p4), %vm188_vm0, %v6011_v0 }
  0x15   : > { %202 = vst.msk [vmem:[#allocation2 + $0x30] sm:$0xf] (!%p5230_p4), %vm188_vm0, %v6011_v0  ;;  %203 = vst.msk [vmem:[#allocation2 + $0x34] sm:$0xf] (!%p5230_p4), %vm188_vm0, %v6011_v0 }
  0x16   : > { %205 = vst.msk [vmem:[#allocation2 + $0x3c] sm:$0xf] (!%p5230_p4), %vm188_vm0, %v6011_v0  ;;  %206 = vst.msk [vmem:[#allocation2 + $0x40] sm:$0xf] (!%p5230_p4), %vm188_vm0, %v6011_v0 }
  0x17   : > { %208 = vst.msk [vmem:[#allocation2 + $0x48] sm:$0xf] (!%p5230_p4), %vm188_vm0, %v6011_v0  ;;  %209 = vst.msk [vmem:[#allocation2 + $0x4c] sm:$0xf] (!%p5230_p4), %vm188_vm0, %v6011_v0 }
  0x18   : > { %211 = vst.msk [vmem:[#allocation2 + $0x54] sm:$0xf] %vm188_vm0, %v6011_v0  ;;  %212 = vst.msk [vmem:[#allocation2 + $0x58] sm:$0xf] %vm188_vm0, %v6011_v0 }
  0x19   : > { %214 = vst.msk [vmem:[#allocation2 + $0x60] sm:$0xf] %vm188_vm0, %v6011_v0  ;;  %215 = vst.msk [vmem:[#allocation2 + $0x64] sm:$0xf] %vm188_vm0, %v6011_v0 }
  0x1a   : > { %217 = vst.msk [vmem:[#allocation2 + $0x6c] sm:$0xf] %vm188_vm0, %v6011_v0  ;;  %218 = vst.msk [vmem:[#allocation2 + $0x70] sm:$0xf] %vm188_vm0, %v6011_v0 }
  0x1b   : > { %220 = vst.msk [vmem:[#allocation2 + $0x78] sm:$0xf] %vm188_vm0, %v6011_v0  ;;  %221 = vst.msk [vmem:[#allocation2 + $0x7c] sm:$0xf] %vm188_vm0, %v6011_v0 }
  0x1c   : > { %223 = vst.msk [vmem:[#allocation2 + $0x84] sm:$0xf] %vm188_vm0, %v6011_v0  ;;  %224 = vst.msk [vmem:[#allocation2 + $0x88] sm:$0xf] %vm188_vm0, %v6011_v0 }
  0x1d   : > { %226 = vst.msk [vmem:[#allocation2 + $0x90] sm:$0xf] %vm188_vm0, %v6011_v0  ;;  %227 = vst.msk [vmem:[#allocation2 + $0x94] sm:$0xf] %vm188_vm0, %v6011_v0 }
  0x1e   : > { %229 = vst.msk [vmem:[#allocation2 + $0x9c] sm:$0xf] %vm188_vm0, %v6011_v0  ;;  %230 = vst.msk [vmem:[#allocation2 + $0xa0] sm:$0xf] %vm188_vm0, %v6011_v0 }
  0x1f   : > { %232 = vst.msk [vmem:[#allocation2 + $0xa8] sm:$0xf] %vm188_vm0, %v6011_v0  ;;  %233 = vst.msk [vmem:[#allocation2 + $0xac] sm:$0xf] %vm188_vm0, %v6011_v0 }
  0x20   : > { %235 = vst.msk [vmem:[#allocation2 + $0xb4] sm:$0xf] %vm188_vm0, %v6011_v0  ;;  %236 = vst.msk [vmem:[#allocation2 + $0xb8] sm:$0xf] %vm188_vm0, %v6011_v0 }
  0x21   : > { %238 = vst.msk [vmem:[#allocation2 + $0xc0] sm:$0xf] %vm188_vm0, %v6011_v0  ;;  %239 = vst.msk [vmem:[#allocation2 + $0xc4] sm:$0xf] %vm188_vm0, %v6011_v0 }
  0x22   : > { %241 = vst.msk [vmem:[#allocation2 + $0xcc] sm:$0xf] %vm188_vm0, %v6011_v0  ;;  %242 = vst.msk [vmem:[#allocation2 + $0xd0] sm:$0xf] %vm188_vm0, %v6011_v0 }
  0x23   : > { %192 = vst.msk [vmem:[#allocation2 + $0x8] sm:$0x1] %vm191_vm1, %v6011_v0  ;;  %195 = vst.msk [vmem:[#allocation2 + $0x14] sm:$0x1] %vm191_vm1, %v6011_v0 }
  0x24   : > { %198 = vst.msk [vmem:[#allocation2 + $0x20] sm:$0x1] %vm191_vm1, %v6011_v0  ;;  %201 = vst.msk [vmem:[#allocation2 + $0x2c] sm:$0x1] %vm191_vm1, %v6011_v0 }
  0x25   : > { %204 = vst.msk [vmem:[#allocation2 + $0x38] sm:$0x1] %vm191_vm1, %v6011_v0  ;;  %207 = vst.msk [vmem:[#allocation2 + $0x44] sm:$0x1] %vm191_vm1, %v6011_v0 }
  0x26   : > { %210 = vst.msk [vmem:[#allocation2 + $0x50] sm:$0x1] %vm191_vm1, %v6011_v0  ;;  %213 = vst.msk [vmem:[#allocation2 + $0x5c] sm:$0x1] %vm191_vm1, %v6011_v0 }
  0x27   : > { %216 = vst.msk [vmem:[#allocation2 + $0x68] sm:$0x1] %vm191_vm1, %v6011_v0  ;;  %219 = vst.msk [vmem:[#allocation2 + $0x74] sm:$0x1] %vm191_vm1, %v6011_v0 }
  0x28   : > { %222 = vst.msk [vmem:[#allocation2 + $0x80] sm:$0x1] %vm191_vm1, %v6011_v0  ;;  %225 = vst.msk [vmem:[#allocation2 + $0x8c] sm:$0x1] %vm191_vm1, %v6011_v0 }
  0x29   : > { %228 = vst.msk [vmem:[#allocation2 + $0x98] sm:$0x1] %vm191_vm1, %v6011_v0  ;;  %231 = vst.msk [vmem:[#allocation2 + $0xa4] sm:$0x1] %vm191_vm1, %v6011_v0 }
  0x2a   : > { %234 = vst.msk [vmem:[#allocation2 + $0xb0] sm:$0x1] %vm191_vm1, %v6011_v0  ;;  %237 = vst.msk [vmem:[#allocation2 + $0xbc] sm:$0x1] %vm191_vm1, %v6011_v0 }
  0x2b   : > { %240 = vst.msk [vmem:[#allocation2 + $0xc8] sm:$0x1] %vm191_vm1, %v6011_v0  ;;  %243 = vst.msk [vmem:[#allocation2 + $0xd4] sm:$0x1] %vm191_vm1, %v6011_v0 }
  0x2c   : > { %245 = vst.msk [vmem:[#allocation4] sm:$0x3] %vm244_vm2, %v6012_v1  ;;  %246 = vst.msk [vmem:[#allocation6] sm:$0x3] %vm244_vm2, %v6012_v1 }
  0x2d PF: > { %v1510_v2 = vld [vmem:[#allocation2] sm:$0xe]  ;;  %v1511_v3 = vld [vmem:[#allocation2 + $0x4] sm:$0xf]  ;;  %v1512_v4 = vld [vmem:[#allocation2 + $0x8] sm:$0x1] }
  0x2e   : > { %vm1606_vm3 = vcmask 1042432   ;;  %vm1607_vm4 = vcmask 1046532   ;;  %v5295_v5 = vrot.slane %v1510_v2, 9  ;;  %v1611_v6 = vrot.slane %v1511_v3, 5  ;;  %v962_v9 = vld [vmem:[#allocation2] sm:$0xf] }
  0x2f   : > { %vm6116_vm5 = vmor %vm1606_vm3, %vm1607_vm4  ;;  %v1614_v8 = vrot.slane %v1512_v4, 5  ;;  %v963_v10 = vld [vmem:[#allocation2 + $0x4] sm:$0xf]  ;;  %vm699_vm6 = vcmask 27648   ;;  %v964_v13 = vld [vmem:[#allocation2 + $0x8] sm:$0x1] }
  0x30   : > { %v1612_v11 = vsel %vm6116_vm5, %v5295_v5, %v1611_v6  ;;  %v1613_v12 = vrot.slane %v1611_v6, 4  ;;  %vm1010_vm7 = vsmask.f32 3328  ;;  %v1014_v14 = vshrl.u32 %v962_v9, 16  ;;  %v249_v18 = vld [vmem:[%s6057_s21 + $0x10] sm:$0xff]  ;;  %v250_v22 = vld [vmem:[%s6057_s21 + $0x18] sm:$0xff] }
  0x31   : > { %vm1011_vm8 = vsmask.f32 7440  ;;  %v1017_v15 = vshll.u32 %v962_v9, 16  ;;  %v1023_v16 = vshll.u32 %v963_v10, 16  ;;  %v1027_v17 = vshrl.u32 %v963_v10, 16  ;;  %v247_v30 = vld [vmem:[%s6057_s21] sm:$0xff] }
  0x32   : > { %v1615_v19 = vsel %vm6116_vm5, %v1613_v12, %v1614_v8  ;;  %v1016_v20 = vrot.slane %v1014_v14, 4  ;;  %v1033_v21 = vshll.u32 %v964_v13, 16  ;;  %v5531_v23 = vpack.c.bf16 %v249_v18, %v249_v18  ;;  %s6013_s22 = smov 8   ;;  %v248_v35 = vld [vmem:[%s6057_s21 + $0x8] sm:$0xff]  ;;  %vm6131_vm11 = vmor %vm1010_vm7, %vm1011_vm8  ;;  %v251_v39 = vld [vmem:[%s6057_s21 + $0x20] sm:$0xff]  ;;  %s6014_s23 = smov 4  }
  0x33   : > { %v5311_v24 = vcombine.low %v1612_v11, %v1615_v19  ;;  %v1019_v25 = vrot.slane %v1017_v15, 5  ;;  %v1025_v26 = vrot.slane %v1023_v16, 5  ;;  %v1029_v27 = vrot.slane %v1027_v17, 4  ;;  %v252_v45 = vld [vmem:[%s6057_s21 + $0x28] sm:$0xff]  ;;  %v712_v48 = vld [vmem:[#allocation2 + $0x18] sm:$0xf] }
  0x34   : > { %v1035_v28 = vrot.slane %v1033_v21, 5  ;;  %v5532_v29 = vpack.c.bf16 %v250_v22, %v250_v22  ;;  %vm375_vm9 = vsmask.f32 256  ;;  %vm376_vm10 = vsmask.f32 4368  ;;  %v253_v2 = vld [vmem:[%s6057_s21 + $0x30] sm:$0xff] }
  0x35   : > { %1769 = vrot.lane.b32.xlu1 %v5311_v24, %s6013_s22  ;;  %v1020_v31 = vor.u32 %v1019_v25, %v1016_v20  ;;  %v1030_v32 = vor.u32 %v1029_v27, %v1025_v26  ;;  %v396_v33 = vshrl.u32 %v5531_v23, 16  ;;  %v399_v34 = vshll.u32 %v5531_v23, 16  ;;  %vm6138_vm14 = vmor %vm375_vm9, %vm376_vm10  ;;  %v716_v57 = vld [vmem:[#allocation2 + $0x20] sm:$0x1]  ;;  %v254_v8 = vld [vmem:[%s6057_s21 + $0x38] sm:$0xff]  ;;  %s6015_s8 = smov [#allocation6]  }
  0x36   : > { %v404_v37 = vshrl.u32 %v5532_v29, 16  ;;  %v407_v38 = vshll.u32 %v5532_v29, 16  ;;  %vm700_vm12 = vsmask.f32 7938  ;;  %vm707_vm13 = vcmask 24576   ;;  %v255_v29 = vld [vmem:[%s6057_s21 + $0x40] sm:$0xff] }
  0x37   : > { %v1021_v40 = vrot.slane %v1020_v31, 4  ;;  %v1031_v41 = vrot.slane %v1030_v32, 4  ;;  %v7900_v42 = vmov 0  ;;  %v398_v43 = vrot.slane %v396_v33, 7  ;;  %vm6144_vm15 = vmand %vm699_vm6, %vm700_vm12  ;;  %v702_v10 = vld [vmem:[#allocation2 + $0xc] sm:$0xf] }
  0x38   : > { %v7901_v42 = vsel %vm6138_vm14, 4294967295, %v7900_v42  ;;  %v5529_v44 = vpack.c.bf16 %v247_v30, %v247_v30  ;;  %v406_v46 = vrot.slane %v404_v37, 7  ;;  %v7903_v47 = vmov 0  ;;  %vm6154_vm0 = vmand %vm707_vm13, %vm375_vm9  ;;  %v709_v16 = vld [vmem:[#allocation2 + $0x14] sm:$0x1]  ;;  %s5174_s9 = sshll.u32 %s6015_s8, 4  ;;  %s5175_s9 = int_to_ptr.vmem [resolvable:$true] %s5174_s9 }
  0x39   : > { %7902 = vst [vmem:[#allocation10_spill] sm:$0xff] %v7901_v42  ;;  %v7904_v47 = vsel %vm6144_vm15, 4294967295, %v7903_v47  ;;  %v5530_v49 = vpack.c.bf16 %v248_v35, %v248_v35  ;;  %v5533_v50 = vpack.c.bf16 %v251_v39, %v251_v39  ;;  %v5534_v51 = vpack.c.bf16 %v252_v45, %v252_v45  ;;  %v719_v22 = vld [vmem:[#allocation2 + $0x24] sm:$0xf]  ;;  %v723_v27 = vld [vmem:[#allocation2 + $0x2c] sm:$0x1]  ;;  %p5950_p9 = scmp.lt.s32.totalorder %s5175_s9, %s5175_s9 }
  0x3a   : > { %7905 = vst [vmem:[#allocation11_spill] sm:$0xff] %v7904_v47  ;;  %v1026_v52 = vsel %vm6131_vm11, %v1021_v40, %v1025_v26  ;;  %v1036_v53 = vsel %vm6131_vm11, %v1031_v41, %v1035_v28  ;;  %v401_v54 = vor.u32 %v399_v34, %v398_v43  ;;  %v402_v55 = vrot.slane %v398_v43, 4  ;;  %v256_v34 = vld [vmem:[%s6057_s21 + $0x48] sm:$0xff]  ;;  %v726_v40 = vld [vmem:[#allocation2 + $0x30] sm:$0xf]  ;;  %p5841_p5 = scmp.eq.s32.totalorder %s6048_s16, 1 }
  0x3b   : > { %v7906_v56 = vmov 0  ;;  %v5279_v58 = vcombine.low %v1026_v52, %v1036_v53  ;;  %v409_v59 = vor.u32 %v407_v38, %v406_v46  ;;  %v411_v60 = vrot.slane %v406_v46, 4  ;;  %s6016_s10 = smov [#allocation4]   ;;  %s5943_s12 = scalar_lea.vmem %s5175_s9, 32 }
  0x3c   : > { %v7907_v56 = vsel %vm6154_vm0, 4294967295, %v7906_v56  ;;  %v379_v61 = vshrl.u32 %v5529_v44, 16  ;;  %v713_v62 = vsel %vm6144_vm15, %v401_v54, %v712_v48  ;;  %v382_v63 = vshll.u32 %v5529_v44, 16  ;;  %s5163_s11 = sshll.u32 %s6016_s10, 4  ;;  %p5944_p6 = scmp.ne.s32.totalorder %s5175_s9, %s5943_s12  ;;  %s7832_s11 = int_to_ptr.vmem [resolvable:$true] %s5163_s11 }
  0x3d   : > { %7908 = vst [vmem:[#allocation12_spill] sm:$0xff] %v7907_v56  ;;  %v387_v0 = vshrl.u32 %v5530_v49, 16  ;;  %v390_v1 = vshll.u32 %v5530_v49, 16  ;;  %1445 = vrot.lane.b32.xlu0 %v5279_v58, %s6014_s23  ;;  %v410_v3 = vsel %vm6138_vm14, %v402_v55, %v409_v59  ;;  %714 = vst [vmem:[#allocation2 + $0x18] sm:$0xf] %v713_v62  ;;  %v717_v4 = vsel %vm6154_vm0, %v411_v60, %v716_v57  ;;  %v257_v49 = vld [vmem:[%s6057_s21 + $0x50] sm:$0xff]  ;;  %p5951_p10 = scmp.lt.s32.totalorder %s5943_s12, %s5943_s12 }
  0x3e   : > { %v381_v5 = vrot.slane %v379_v61, 7  ;;  %v413_v6 = vshrl.u32 %v5533_v50, 16  ;;  %715 = vst.msk [vmem:[#allocation2 + $0x1c] sm:$0xf] %vm699_vm6, %v410_v3  ;;  %718 = vst [vmem:[#allocation2 + $0x20] sm:$0x1] %v717_v4  ;;  %v5535_v18 = vpack.c.bf16 %v253_v2, %v253_v2  ;;  %v5536_v23 = vpack.c.bf16 %v254_v8, %v254_v8  ;;  %p5945_p7 = pnand %p5944_p6, %p5841_p5 }
  0x3f   : > { %v389_v9 = vrot.slane %v387_v0, 7  ;;  %v416_v11 = vshll.u32 %v5533_v50, 16  ;;  %v421_v12 = vshrl.u32 %v5534_v51, 16  ;;  %v424_v13 = vshll.u32 %v5534_v51, 16  ;;  %v730_v8 = vld [vmem:[#allocation2 + $0x38] sm:$0x1]  ;;  %p5952_p11 = por %p5951_p10, %p5950_p9 }
  0x40   : > { %v384_v14 = vor.u32 %v382_v63, %v381_v5  ;;  %v385_v15 = vrot.slane %v381_v5, 4  ;;  %v415_v17 = vrot.slane %v413_v6, 7  ;;  %v430_v28 = vshrl.u32 %v5535_v18, 16  ;;  %p5946_p8 = pneg %p5945_p7 }
  0x41   : > { %v392_v19 = vor.u32 %v390_v1, %v389_v9  ;;  %v394_v20 = vrot.slane %v389_v9, 4  ;;  %v423_v21 = vrot.slane %v421_v12, 7  ;;  %v433_v38 = vshll.u32 %v5535_v18, 16  ;;  %v258_v9 = vld [vmem:[%s6057_s21 + $0x58] sm:$0xff] }
  0x42   : > { %v703_v24 = vsel %vm6144_vm15, %v384_v14, %v702_v10  ;;  %v418_v25 = vor.u32 %v416_v11, %v415_v17  ;;  %v419_v26 = vrot.slane %v415_v17, 4  ;;  %v432_v37 = vrot.slane %v430_v28, 7  ;;  %p5953_p12 = pnand %p5952_p11, %p5946_p8 }
  0x43   : > { %v393_v30 = vsel %vm6138_vm14, %v385_v15, %v392_v19  ;;  %704 = vst [vmem:[#allocation2 + $0xc] sm:$0xf] %v703_v24  ;;  %v710_v31 = vsel %vm6154_vm0, %v394_v20, %v709_v16  ;;  %v426_v32 = vor.u32 %v424_v13, %v423_v21  ;;  %v428_v33 = vrot.slane %v423_v21, 4 }
  0x44   : > { %706 = vst.msk [vmem:[#allocation2 + $0x10] sm:$0xf] %vm699_vm6, %v393_v30  ;;  %711 = vst [vmem:[#allocation2 + $0x14] sm:$0x1] %v710_v31  ;;  %v720_v35 = vsel %vm6144_vm15, %v418_v25, %v719_v22  ;;  %v438_v39 = vshrl.u32 %v5536_v23, 16  ;;  %v441_v45 = vshll.u32 %v5536_v23, 16  ;;  %v6183_v48 = vpack.c.bf16 %v255_v29, %v255_v29 }
  0x45   : > { %v1516_v41 = vld [vmem:[#allocation2 + $0x18] sm:$0xe]  ;;  %v427_v43 = vsel %vm6138_vm14, %v419_v26, %v426_v32  ;;  %721 = vst [vmem:[#allocation2 + $0x24] sm:$0xf] %v720_v35  ;;  %v724_v44 = vsel %vm6154_vm0, %v428_v33, %v723_v27  ;;  %v1517_v50 = vld [vmem:[#allocation2 + $0x1c] sm:$0xf]  ;;  %v435_v53 = vor.u32 %v433_v38, %v432_v37  ;;  %v6187_v55 = vpack.c.bf16 %v256_v34, %v256_v34 }
  0x46   : > { %v2543_v46 = vld [vmem:[#allocation2 + $0x18] sm:$0xe]  ;;  %v1518_v51 = vld [vmem:[#allocation2 + $0x20] sm:$0x1]  ;;  %v5297_v52 = vrot.slane %v1516_v41, 9  ;;  %v436_v54 = vrot.slane %v432_v37, 4  ;;  %v6200_v15 = vpack.c.bf16 %v257_v49, %v257_v49  ;;  %v6213_v33 = vpack.c.bf16 %v258_v9, %v258_v9 }
  0x47   : > { %722 = vst.msk [vmem:[#allocation2 + $0x28] sm:$0xf] %vm699_vm6, %v427_v43  ;;  %725 = vst [vmem:[#allocation2 + $0x2c] sm:$0x1] %v724_v44  ;;  %v1625_v57 = vrot.slane %v1517_v50, 5  ;;  %v1628_v58 = vrot.slane %v1518_v51, 5  ;;  %v727_v62 = vsel %vm6144_vm15, %v435_v53, %v726_v40 }
  0x48   : > { %v440_v59 = vrot.slane %v438_v39, 7  ;;  %v2544_v60 = vld [vmem:[#allocation2 + $0x1c] sm:$0xf]  ;;  %v5360_v61 = vrot.slane %v2543_v46, 9  ;;  %v2545_v63 = vld [vmem:[#allocation2 + $0x20] sm:$0x1] }
  0x49   : > { %v2645_v0 = vrot.slane %v2544_v60, 5  ;;  %v447_v1 = vshrl.u32 %v6183_v48, 16  ;;  %v450_v2 = vshll.u32 %v6183_v48, 16  ;;  %v1626_v3 = vsel %vm6116_vm5, %v5297_v52, %v1625_v57  ;;  %728 = vst [vmem:[#allocation2 + $0x30] sm:$0xf] %v727_v62 }
  0x4a   : > { %v1627_v4 = vrot.slane %v1625_v57, 4  ;;  %v443_v5 = vor.u32 %v441_v45, %v440_v59  ;;  %v445_v6 = vrot.slane %v440_v59, 4  ;;  %v1513_v10 = vld [vmem:[#allocation2 + $0xc] sm:$0xe]  ;;  %v2648_v14 = vrot.slane %v2545_v63, 5 }
  0x4b   : > { %v2540_v11 = vld [vmem:[#allocation2 + $0xc] sm:$0xe]  ;;  %v6198_v12 = vsel %vm6116_vm5, %v5360_v61, %v2645_v0  ;;  %v2647_v13 = vrot.slane %v2645_v0, 4  ;;  %v1514_v17 = vld [vmem:[#allocation2 + $0x10] sm:$0xf]  ;;  %v5296_v19 = vrot.slane %v1513_v10, 9 }
  0x4c   : > { %v1629_v16 = vsel %vm6116_vm5, %v1627_v4, %v1628_v58  ;;  %v1515_v18 = vld [vmem:[#allocation2 + $0x14] sm:$0x1]  ;;  %v5359_v20 = vrot.slane %v2540_v11, 9  ;;  %v444_v21 = vsel %vm6138_vm14, %v436_v54, %v443_v5  ;;  %v1618_v23 = vrot.slane %v1514_v17, 5  ;;  %v2541_v25 = vld [vmem:[#allocation2 + $0x10] sm:$0xf] }
  0x4d   : > { %v5313_v22 = vcombine.low %v1626_v3, %v1629_v16  ;;  %v1621_v24 = vrot.slane %v1515_v18, 5  ;;  %v2542_v26 = vld [vmem:[#allocation2 + $0x14] sm:$0x1]  ;;  %729 = vst.msk [vmem:[#allocation2 + $0x34] sm:$0xf] %vm699_vm6, %v444_v21  ;;  %v731_v27 = vsel %vm6154_vm0, %v445_v6, %v730_v8  ;;  %v2638_v28 = vrot.slane %v2541_v25, 5 }
  0x4e   : > { %v2641_v29 = vrot.slane %v2542_v26, 5  ;;  %v1519_v30 = vld [vmem:[#allocation2 + $0x24] sm:$0xe]  ;;  %v1520_v31 = vld [vmem:[#allocation2 + $0x28] sm:$0xf]  ;;  %v6211_v32 = vsel %vm6116_vm5, %v2647_v13, %v2648_v14  ;;  %v1619_v34 = vsel %vm6116_vm5, %v5296_v19, %v1618_v23  ;;  %v1620_v35 = vrot.slane %v1618_v23, 4 }
  0x4f   : > { %732 = vst [vmem:[#allocation2 + $0x38] sm:$0x1] %v731_v27  ;;  %1773 = vrot.lane.b32.xlu0 %v5313_v22, %s6013_s22  ;;  %v1521_v37 = vld [vmem:[#allocation2 + $0x2c] sm:$0x1]  ;;  %v5298_v38 = vrot.slane %v1519_v30, 9  ;;  %v1632_v39 = vrot.slane %v1520_v31, 5  ;;  %v2639_v40 = vsel %vm6116_vm5, %v5359_v20, %v2638_v28  ;;  %v5376_v44 = vcombine.low %v6198_v12, %v6211_v32 }
  0x50   : > { %v2640_v41 = vrot.slane %v2638_v28, 4  ;;  %v1635_v43 = vrot.slane %v1521_v37, 5  ;;  %v1622_v45 = vsel %vm6116_vm5, %v1620_v35, %v1621_v24  ;;  %v1522_v49 = vld [vmem:[#allocation2 + $0x30] sm:$0xe]  ;;  %v449_v50 = vrot.slane %v447_v1, 7 }
  0x51   : > { %v1633_v46 = vsel %vm6116_vm5, %v5298_v38, %v1632_v39  ;;  %v1634_v48 = vrot.slane %v1632_v39, 4  ;;  %v965_v51 = vld [vmem:[#allocation2 + $0xc] sm:$0xf]  ;;  %v5312_v52 = vcombine.low %v1619_v34, %v1622_v45  ;;  %v5299_v54 = vrot.slane %v1522_v49, 9  ;;  %v733_v58 = vld [vmem:[#allocation2 + $0x3c] sm:$0xf] }
  0x52   : > { %v2642_v53 = vsel %vm6116_vm5, %v2640_v41, %v2641_v29  ;;  %v455_v57 = vshrl.u32 %v6187_v55, 16  ;;  %v966_v59 = vld [vmem:[#allocation2 + $0x10] sm:$0xf]  ;;  %v452_v62 = vor.u32 %v450_v2, %v449_v50  ;;  %v453_v63 = vrot.slane %v449_v50, 4  ;;  %v737_v0 = vld [vmem:[#allocation2 + $0x44] sm:$0x1] }
  0x53   : > { %v5375_v60 = vcombine.low %v2639_v40, %v2642_v53  ;;  %v1636_v61 = vsel %vm6116_vm5, %v1634_v48, %v1635_v43  ;;  %v967_v3 = vld [vmem:[#allocation2 + $0x14] sm:$0x1]  ;;  %1771 = vrot.lane.b32.xlu1 %v5312_v52, %s6013_s22  ;;  %v458_v6 = vshll.u32 %v6187_v55, 16  ;;  %v1038_v8 = vshrl.u32 %v965_v51, 16  ;;  %v971_v19 = vld [vmem:[#allocation2 + $0x24] sm:$0xf] }
  0x54   : > { %v5314_v1 = vcombine.low %v1633_v46, %v1636_v61  ;;  %v1523_v4 = vld [vmem:[#allocation2 + $0x34] sm:$0xf]  ;;  %v457_v5 = vrot.slane %v455_v57, 7  ;;  %v734_v11 = vsel %vm6144_vm15, %v452_v62, %v733_v58  ;;  %v1041_v13 = vshll.u32 %v965_v51, 16  ;;  %v972_v23 = vld [vmem:[#allocation2 + $0x28] sm:$0xf] }
  0x55   : > { %2796 = vrot.lane.b32.xlu0 %v5375_v60, %s6013_s22  ;;  %v1639_v10 = vrot.slane %v1523_v4, 5  ;;  %v1047_v2 = vshll.u32 %v966_v59, 16  ;;  %735 = vst [vmem:[#allocation2 + $0x3c] sm:$0xf] %v734_v11  ;;  %v1040_v18 = vrot.slane %v1038_v8, 4  ;;  %v1051_v26 = vshrl.u32 %v966_v59, 16 }
  0x56   : > { %v1524_v9 = vld [vmem:[#allocation2 + $0x38] sm:$0x1]  ;;  %v460_v16 = vor.u32 %v458_v6, %v457_v5  ;;  %v462_v17 = vrot.slane %v457_v5, 4  ;;  %v1043_v21 = vrot.slane %v1041_v13, 5  ;;  %v1057_v27 = vshll.u32 %v967_v3, 16  ;;  %v259_v53 = vld [vmem:[%s6057_s21 + $0x60] sm:$0xff] }
  0x57   : > { %v1642_v14 = vrot.slane %v1524_v9, 5  ;;  %v1640_v20 = vsel %vm6116_vm5, %v5299_v54, %v1639_v10  ;;  %v1641_v55 = vrot.slane %v1639_v10, 4  ;;  %v1049_v22 = vrot.slane %v1047_v2, 5  ;;  %1775 = vrot.lane.b32.xlu1 %v5314_v1, %s6013_s22  ;;  %v973_v30 = vld [vmem:[#allocation2 + $0x2c] sm:$0x1] }
  0x58   : > { %v461_v24 = vsel %vm6138_vm14, %v453_v63, %v460_v16  ;;  %v738_v25 = vsel %vm6154_vm0, %v462_v17, %v737_v0  ;;  %v1044_v29 = vor.u32 %v1043_v21, %v1040_v18  ;;  %v1086_v31 = vshrl.u32 %v971_v19, 16  ;;  %v968_v35 = vld [vmem:[#allocation2 + $0x18] sm:$0xf]  ;;  %v969_v51 = vld [vmem:[#allocation2 + $0x1c] sm:$0xf] }
  0x59   : > { %v1643_v28 = vsel %vm6116_vm5, %v1641_v55, %v1642_v14  ;;  %736 = vst.msk [vmem:[#allocation2 + $0x40] sm:$0xf] %vm699_vm6, %v461_v24  ;;  %739 = vst [vmem:[#allocation2 + $0x44] sm:$0x1] %v738_v25  ;;  %v1089_v34 = vshll.u32 %v971_v19, 16  ;;  %v1053_v38 = vrot.slane %v1051_v26, 4  ;;  %v6256_v11 = vpack.c.bf16 %v259_v53, %v259_v53 }
  0x5a   : > { %v5315_v37 = vcombine.low %v1640_v20, %v1643_v28  ;;  %v1059_v39 = vrot.slane %v1057_v27, 5  ;;  %v1095_v40 = vshll.u32 %v972_v23, 16  ;;  %v1045_v41 = vrot.slane %v1044_v29, 4  ;;  %v970_v60 = vld [vmem:[#allocation2 + $0x20] sm:$0x1] }
  0x5b   : > { %v1088_v43 = vrot.slane %v1086_v31, 4  ;;  %v1091_v45 = vrot.slane %v1089_v34, 5  ;;  %v1099_v46 = vshrl.u32 %v972_v23, 16  ;;  %2798 = vrot.lane.b32.xlu1 %v5376_v44, %s6013_s22  ;;  %v1054_v48 = vor.u32 %v1053_v38, %v1049_v22  ;;  %v1999_v4 = vld [vmem:[#allocation2 + $0x18] sm:$0xf] }
  0x5c   : > { %1777 = vrot.lane.b32.xlu0 %v5315_v37, %s6013_s22  ;;  %v1097_v49 = vrot.slane %v1095_v40, 5  ;;  %v1105_v50 = vshll.u32 %v973_v30, 16  ;;  %v1062_v52 = vshrl.u32 %v968_v35, 16  ;;  %v1525_v54 = vld [vmem:[#allocation2 + $0x3c] sm:$0xe]  ;;  %v1050_v57 = vsel %vm6131_vm11, %v1045_v41, %v1049_v22 }
  0x5d   : > { %v1092_v58 = vor.u32 %v1091_v45, %v1088_v43  ;;  %v1101_v59 = vrot.slane %v1099_v46, 4  ;;  %v1065_v61 = vshll.u32 %v968_v35, 16  ;;  %v5300_v62 = vrot.slane %v1525_v54, 9  ;;  %v2000_v55 = vld [vmem:[#allocation2 + $0x1c] sm:$0xf] }
  0x5e   : > { %v1055_v63 = vrot.slane %v1054_v48, 4  ;;  %v1107_v0 = vrot.slane %v1105_v50, 5  ;;  %v1064_v3 = vrot.slane %v1062_v52, 4  ;;  %v1071_v1 = vshll.u32 %v969_v51, 16  ;;  %v2001_v28 = vld [vmem:[#allocation2 + $0x20] sm:$0x1] }
  0x5f   : > { %v1093_v12 = vrot.slane %v1092_v58, 4  ;;  %v1102_v32 = vor.u32 %v1101_v59, %v1097_v49  ;;  %v1067_v44 = vrot.slane %v1065_v61, 5  ;;  %v1075_v9 = vshrl.u32 %v969_v51, 16  ;;  %v1996_v30 = vld [vmem:[#allocation2 + $0xc] sm:$0xf] }
  0x60   : > { %v1526_v5 = vld [vmem:[#allocation2 + $0x40] sm:$0xf]  ;;  %v1527_v6 = vld [vmem:[#allocation2 + $0x44] sm:$0x1]  ;;  %v1060_v8 = vsel %vm6131_vm11, %v1055_v63, %v1059_v39  ;;  %v1081_v10 = vshll.u32 %v970_v60, 16  ;;  %v1073_v19 = vrot.slane %v1071_v1, 5 }
  0x61   : > { %v1646_v13 = vrot.slane %v1526_v5, 5  ;;  %v1649_v2 = vrot.slane %v1527_v6, 5  ;;  %v5280_v14 = vcombine.low %v1050_v57, %v1060_v8  ;;  %v1098_v16 = vsel %vm6131_vm11, %v1093_v12, %v1097_v49  ;;  %v1997_v38 = vld [vmem:[#allocation2 + $0x10] sm:$0xf]  ;;  %v1998_v52 = vld [vmem:[#allocation2 + $0x14] sm:$0x1] }
  0x62   : > { %v1103_v17 = vrot.slane %v1102_v32, 4  ;;  %v1068_v18 = vor.u32 %v1067_v44, %v1064_v3  ;;  %v1077_v20 = vrot.slane %v1075_v9, 4  ;;  %v1083_v23 = vrot.slane %v1081_v10, 5  ;;  %v977_v57 = vld [vmem:[#allocation2 + $0x3c] sm:$0xf] }
  0x63   : > { %v1647_v21 = vsel %vm6116_vm5, %v5300_v62, %v1646_v13  ;;  %v1648_v22 = vrot.slane %v1646_v13, 4  ;;  %1447 = vrot.lane.b32.xlu0 %v5280_v14, %s6014_s23  ;;  %v2069_v24 = vshrl.u32 %v1999_v4, 16  ;;  %v2072_v29 = vshll.u32 %v1999_v4, 16  ;;  %v978_v62 = vld [vmem:[#allocation2 + $0x40] sm:$0xf] }
  0x64   : > { %v1108_v25 = vsel %vm6131_vm11, %v1103_v17, %v1107_v0  ;;  %v1069_v26 = vrot.slane %v1068_v18, 4  ;;  %v1078_v27 = vor.u32 %v1077_v20, %v1073_v19  ;;  %v2078_v37 = vshll.u32 %v2000_v55, 16  ;;  %v979_v9 = vld [vmem:[#allocation2 + $0x44] sm:$0x1]  ;;  %v974_v13 = vld [vmem:[#allocation2 + $0x30] sm:$0xf] }
  0x65   : > { %v1650_v31 = vsel %vm6116_vm5, %v1648_v22, %v1649_v2  ;;  %v5282_v34 = vcombine.low %v1098_v16, %v1108_v25  ;;  %v2071_v35 = vrot.slane %v2069_v24, 4  ;;  %v2074_v43 = vrot.slane %v2072_v29, 5  ;;  %v975_v24 = vld [vmem:[#allocation2 + $0x34] sm:$0xf] }
  0x66   : > { %v5316_v39 = vcombine.low %v1647_v21, %v1650_v31  ;;  %v1074_v40 = vsel %vm6131_vm11, %v1069_v26, %v1073_v19  ;;  %v1079_v41 = vrot.slane %v1078_v27, 4  ;;  %v2080_v45 = vrot.slane %v2078_v37, 5 }
  0x67   : > { %v2082_v46 = vshrl.u32 %v2000_v55, 16  ;;  %v2088_v48 = vshll.u32 %v2001_v28, 16  ;;  %v2045_v49 = vshrl.u32 %v1996_v30, 16  ;;  %v2075_v51 = vor.u32 %v2074_v43, %v2071_v35 }
  0x68   : > { %1779 = vrot.lane.b32.xlu1 %v5316_v39, %s6013_s22  ;;  %v1084_v50 = vsel %vm6131_vm11, %v1079_v41, %v1083_v23  ;;  %v2048_v53 = vshll.u32 %v1996_v30, 16  ;;  %v2054_v54 = vshll.u32 %v1997_v38, 16  ;;  %v2058_v12 = vshrl.u32 %v1997_v38, 16  ;;  %v976_v30 = vld [vmem:[#allocation2 + $0x38] sm:$0x1] }
  0x69   : > { %v5281_v58 = vcombine.low %v1074_v40, %v1084_v50  ;;  %v2084_v59 = vrot.slane %v2082_v46, 4  ;;  %v2090_v60 = vrot.slane %v2088_v48, 5  ;;  %v2047_v61 = vrot.slane %v2045_v49, 4  ;;  %v2002_v38 = vld [vmem:[#allocation2 + $0x24] sm:$0xf] }
  0x6a   : > { %v2076_v63 = vrot.slane %v2075_v51, 4  ;;  %v2050_v0 = vrot.slane %v2048_v53, 5  ;;  %v2056_v3 = vrot.slane %v2054_v54, 5  ;;  %v2064_v44 = vshll.u32 %v1998_v52, 16  ;;  %v2004_v51 = vld [vmem:[#allocation2 + $0x2c] sm:$0x1] }
  0x6b   : > { %1449 = vrot.lane.b32.xlu0 %v5281_v58, %s6014_s23  ;;  %v2085_v32 = vor.u32 %v2084_v59, %v2080_v45  ;;  %v1134_v1 = vshrl.u32 %v977_v57, 16  ;;  %v1137_v4 = vshll.u32 %v977_v57, 16  ;;  %v2060_v8 = vrot.slane %v2058_v12, 4  ;;  %v2005_v52 = vld [vmem:[#allocation2 + $0x30] sm:$0xf] }
  0x6c   : > { %1451 = vrot.lane.b32.xlu1 %v5282_v34, %s6014_s23  ;;  %v2081_v5 = vsel %vm6131_vm11, %v2076_v63, %v2080_v45  ;;  %v2051_v6 = vor.u32 %v2050_v0, %v2047_v61  ;;  %v1143_v10 = vshll.u32 %v978_v62, 16  ;;  %v2066_v14 = vrot.slane %v2064_v44, 5  ;;  %v2003_v45 = vld [vmem:[#allocation2 + $0x28] sm:$0xf]  ;;  %v2006_v59 = vld [vmem:[#allocation2 + $0x34] sm:$0xf] }
  0x6d   : > { %v2086_v2 = vrot.slane %v2085_v32, 4  ;;  %v1136_v16 = vrot.slane %v1134_v1, 4  ;;  %v1139_v17 = vrot.slane %v1137_v4, 5  ;;  %v2061_v19 = vor.u32 %v2060_v8, %v2056_v3  ;;  %v2546_v8 = vld [vmem:[#allocation2 + $0x24] sm:$0xe] }
  0x6e   : > { %v2052_v18 = vrot.slane %v2051_v6, 4  ;;  %v1145_v20 = vrot.slane %v1143_v10, 5  ;;  %v1147_v55 = vshrl.u32 %v978_v62, 16  ;;  %v1153_v23 = vshll.u32 %v979_v9, 16  ;;  %v2007_v6 = vld [vmem:[#allocation2 + $0x38] sm:$0x1] }
  0x6f   : > { %v2091_v21 = vsel %vm6131_vm11, %v2086_v2, %v2090_v60  ;;  %v1140_v22 = vor.u32 %v1139_v17, %v1136_v16  ;;  %v1110_v25 = vshrl.u32 %v974_v13, 16  ;;  %v2062_v28 = vrot.slane %v2061_v19, 4  ;;  %v2548_v16 = vld [vmem:[#allocation2 + $0x2c] sm:$0x1] }
  0x70   : > { %v5344_v26 = vcombine.low %v2081_v5, %v2091_v21  ;;  %v2057_v27 = vsel %vm6131_vm11, %v2052_v18, %v2056_v3  ;;  %v1149_v29 = vrot.slane %v1147_v55, 4  ;;  %v1155_v34 = vrot.slane %v1153_v23, 5  ;;  %v2549_v55 = vld [vmem:[#allocation2 + $0x30] sm:$0xe] }
  0x71   : > { %v1141_v31 = vrot.slane %v1140_v22, 4  ;;  %v1112_v35 = vrot.slane %v1110_v25, 4  ;;  %v1113_v37 = vshll.u32 %v974_v13, 16  ;;  %v2067_v39 = vsel %vm6131_vm11, %v2062_v28, %v2066_v14  ;;  %v2547_v14 = vld [vmem:[#allocation2 + $0x28] sm:$0xf] }
  0x72   : > { %2478 = vrot.lane.b32.xlu1 %v5344_v26, %s6014_s23  ;;  %v1150_v40 = vor.u32 %v1149_v29, %v1145_v20  ;;  %v1119_v41 = vshll.u32 %v975_v24, 16  ;;  %v1123_v43 = vshrl.u32 %v975_v24, 16  ;;  %v5343_v46 = vcombine.low %v2057_v27, %v2067_v39  ;;  %v2550_v29 = vld [vmem:[#allocation2 + $0x34] sm:$0xf] }
  0x73   : > { %v1146_v48 = vsel %vm6131_vm11, %v1141_v31, %v1145_v20  ;;  %v1115_v49 = vrot.slane %v1113_v37, 5  ;;  %v1129_v50 = vshll.u32 %v976_v30, 16  ;;  %v2093_v58 = vshrl.u32 %v2002_v38, 16  ;;  %v2551_v30 = vld [vmem:[#allocation2 + $0x38] sm:$0x1] }
  0x74   : > { %v1151_v53 = vrot.slane %v1150_v40, 4  ;;  %v1121_v54 = vrot.slane %v1119_v41, 5  ;;  %v1125_v57 = vrot.slane %v1123_v43, 4  ;;  %2476 = vrot.lane.b32.xlu0 %v5343_v46, %s6014_s23  ;;  %v2096_v62 = vshll.u32 %v2002_v38, 16 }
  0x75   : > { %v1116_v60 = vor.u32 %v1115_v49, %v1112_v35  ;;  %v1131_v61 = vrot.slane %v1129_v50, 5  ;;  %v2102_v63 = vshll.u32 %v2003_v45, 16  ;;  %v2095_v12 = vrot.slane %v2093_v58, 4 }
  0x76   : > { %v1156_v0 = vsel %vm6131_vm11, %v1151_v53, %v1155_v34  ;;  %v1126_v3 = vor.u32 %v1125_v57, %v1121_v54  ;;  %v2106_v32 = vshrl.u32 %v2003_v45, 16  ;;  %v2098_v4 = vrot.slane %v2096_v62, 5 }
  0x77   : > { %v5284_v44 = vcombine.low %v1146_v48, %v1156_v0  ;;  %v1117_v1 = vrot.slane %v1116_v60, 4  ;;  %v2104_v5 = vrot.slane %v2102_v63, 5  ;;  %v2112_v13 = vshll.u32 %v2004_v51, 16 }
  0x78   : > { %v1127_v9 = vrot.slane %v1126_v3, 4  ;;  %v2108_v10 = vrot.slane %v2106_v32, 4  ;;  %v2117_v2 = vshrl.u32 %v2005_v52, 16  ;;  %v2099_v18 = vor.u32 %v2098_v4, %v2095_v12 }
  0x79   : > { %1455 = vrot.lane.b32.xlu1 %v5284_v44, %s6014_s23  ;;  %v1122_v17 = vsel %vm6131_vm11, %v1117_v1, %v1121_v54  ;;  %v2120_v19 = vshll.u32 %v2005_v52, 16  ;;  %v2126_v20 = vshll.u32 %v2006_v59, 16  ;;  %v2114_v23 = vrot.slane %v2112_v13, 5  ;;  %v740_v44 = vld [vmem:[#allocation2 + $0x48] sm:$0xf] }
  0x7a   : > { %v1132_v21 = vsel %vm6131_vm11, %v1127_v9, %v1131_v61  ;;  %v2109_v22 = vor.u32 %v2108_v10, %v2104_v5  ;;  %v2119_v24 = vrot.slane %v2117_v2, 4  ;;  %v2100_v26 = vrot.slane %v2099_v18, 4  ;;  %v2008_v1 = vld [vmem:[#allocation2 + $0x3c] sm:$0xf] }
  0x7b   : > { %v5283_v25 = vcombine.low %v1122_v17, %v1132_v21  ;;  %v2122_v27 = vrot.slane %v2120_v19, 5  ;;  %v2128_v28 = vrot.slane %v2126_v20, 5  ;;  %v2130_v34 = vshrl.u32 %v2006_v59, 16  ;;  %v260_v59 = vld [vmem:[%s6057_s21 + $0x68] sm:$0xff]  ;;  %v2010_v20 = vld [vmem:[#allocation2 + $0x44] sm:$0x1] }
  0x7c   : > { %v2110_v31 = vrot.slane %v2109_v22, 4  ;;  %v2136_v35 = vshll.u32 %v2007_v6, 16  ;;  %v5361_v37 = vrot.slane %v2546_v8, 9  ;;  %v2105_v38 = vsel %vm6131_vm11, %v2100_v26, %v2104_v5  ;;  %v744_v8 = vld [vmem:[#allocation2 + $0x50] sm:$0x1] }
  0x7d   : > { %1453 = vrot.lane.b32.xlu0 %v5283_v25, %s6014_s23  ;;  %v2123_v39 = vor.u32 %v2122_v27, %v2119_v24  ;;  %v2652_v40 = vrot.slane %v2547_v14, 5  ;;  %v2655_v41 = vrot.slane %v2548_v16, 5  ;;  %v2132_v45 = vrot.slane %v2130_v34, 4  ;;  %v2009_v14 = vld [vmem:[#allocation2 + $0x40] sm:$0xf] }
  0x7e   : > { %v2115_v43 = vsel %vm6131_vm11, %v2110_v31, %v2114_v23  ;;  %v2138_v46 = vrot.slane %v2136_v35, 5  ;;  %v5362_v48 = vrot.slane %v2549_v55, 9  ;;  %v2659_v54 = vrot.slane %v2550_v29, 5  ;;  %v2552_v55 = vld [vmem:[#allocation2 + $0x3c] sm:$0xe] }
  0x7f   : > { %v5345_v49 = vcombine.low %v2105_v38, %v2115_v43  ;;  %v2124_v50 = vrot.slane %v2123_v39, 4  ;;  %v2653_v51 = vsel %vm6116_vm5, %v5361_v37, %v2652_v40  ;;  %v2654_v52 = vrot.slane %v2652_v40, 4  ;;  %v751_v34 = vld [vmem:[#allocation2 + $0x5c] sm:$0x1]  ;;  %v2553_v40 = vld [vmem:[#allocation2 + $0x40] sm:$0xf] }
  0x80   : > { %v2133_v53 = vor.u32 %v2132_v45, %v2128_v28  ;;  %v2662_v57 = vrot.slane %v2551_v30, 5  ;;  %v464_v58 = vshrl.u32 %v6200_v15, 16  ;;  %v467_v62 = vshll.u32 %v6200_v15, 16 }
  0x81   : > { %2480 = vrot.lane.b32.xlu0 %v5345_v49, %s6014_s23  ;;  %v2129_v60 = vsel %vm6131_vm11, %v2124_v50, %v2128_v28  ;;  %v2656_v61 = vsel %vm6116_vm5, %v2654_v52, %v2655_v41  ;;  %v472_v63 = vshrl.u32 %v6213_v33, 16  ;;  %v2660_v12 = vsel %vm6116_vm5, %v5362_v48, %v2659_v54  ;;  %v261_v49 = vld [vmem:[%s6057_s21 + $0x70] sm:$0xff] }
  0x82   : > { %v2134_v0 = vrot.slane %v2133_v53, 4  ;;  %v5377_v3 = vcombine.low %v2653_v51, %v2656_v61  ;;  %v2661_v32 = vrot.slane %v2659_v54, 4  ;;  %v466_v4 = vrot.slane %v464_v58, 7  ;;  %v262_v58 = vld [vmem:[%s6057_s21 + $0x78] sm:$0xff] }
  0x83   : > { %v474_v5 = vrot.slane %v472_v63, 7  ;;  %v475_v6 = vshll.u32 %v6213_v33, 16  ;;  %v5542_v9 = vpack.c.bf16 %v260_v59, %v260_v59  ;;  %v481_v13 = vshrl.u32 %v6256_v11, 16  ;;  %v747_v33 = vld [vmem:[#allocation2 + $0x54] sm:$0xf]  ;;  %v263_v59 = vld [vmem:[%s6057_s21 + $0x80] sm:$0xff] }
  0x84   : > { %v2139_v10 = vsel %vm6131_vm11, %v2134_v0, %v2138_v46  ;;  %v2663_v15 = vsel %vm6116_vm5, %v2661_v32, %v2662_v57  ;;  %v484_v2 = vshll.u32 %v6256_v11, 16  ;;  %v469_v18 = vor.u32 %v467_v62, %v466_v4  ;;  %v2554_v46 = vld [vmem:[#allocation2 + $0x44] sm:$0x1]  ;;  %v264_v0 = vld [vmem:[%s6057_s21 + $0x88] sm:$0xff] }
  0x85   : > { %v5346_v16 = vcombine.low %v2129_v60, %v2139_v10  ;;  %2800 = vrot.lane.b32.xlu0 %v5377_v3, %s6013_s22  ;;  %v5378_v17 = vcombine.low %v2660_v12, %v2663_v15  ;;  %v470_v19 = vrot.slane %v466_v4, 4  ;;  %v477_v21 = vor.u32 %v475_v6, %v474_v5  ;;  %v265_v3 = vld [vmem:[%s6057_s21 + $0x90] sm:$0xff]  ;;  %v266_v15 = vld [vmem:[%s6057_s21 + $0x98] sm:$0xff] }
  0x86   : > { %v479_v22 = vrot.slane %v474_v5, 4  ;;  %v483_v23 = vrot.slane %v481_v13, 7  ;;  %v489_v24 = vshrl.u32 %v5542_v9, 16  ;;  %v741_v25 = vsel %vm6144_vm15, %v469_v18, %v740_v44 }
  0x87   : > { %2482 = vrot.lane.b32.xlu1 %v5346_v16, %s6014_s23  ;;  %v492_v11 = vshll.u32 %v5542_v9, 16  ;;  %v2141_v26 = vshrl.u32 %v2008_v1, 16  ;;  %v2144_v27 = vshll.u32 %v2008_v1, 16  ;;  %v478_v28 = vsel %vm6138_vm14, %v470_v19, %v477_v21  ;;  %742 = vst [vmem:[#allocation2 + $0x48] sm:$0xf] %v741_v25 }
  0x88   : > { %v745_v29 = vsel %vm6154_vm0, %v479_v22, %v744_v8  ;;  %v486_v30 = vor.u32 %v484_v2, %v483_v23  ;;  %v487_v31 = vrot.slane %v483_v23, 4  ;;  %743 = vst.msk [vmem:[#allocation2 + $0x4c] sm:$0xf] %vm699_vm6, %v478_v28  ;;  %v491_v35 = vrot.slane %v489_v24, 7 }
  0x89   : > { %746 = vst [vmem:[#allocation2 + $0x50] sm:$0x1] %v745_v29  ;;  %v2143_v37 = vrot.slane %v2141_v26, 4  ;;  %v2146_v38 = vrot.slane %v2144_v27, 5  ;;  %v2150_v39 = vshll.u32 %v2009_v14, 16  ;;  %v2154_v43 = vshrl.u32 %v2009_v14, 16 }
  0x8a   : > { %v748_v41 = vsel %vm6144_vm15, %v486_v30, %v747_v33  ;;  %v2160_v45 = vshll.u32 %v2010_v20, 16  ;;  %v5363_v48 = vrot.slane %v2552_v55, 9  ;;  %v494_v50 = vor.u32 %v492_v11, %v491_v35 }
  0x8b   : > { %2802 = vrot.lane.b32.xlu1 %v5378_v17, %s6013_s22  ;;  %v496_v51 = vrot.slane %v491_v35, 4  ;;  %749 = vst [vmem:[#allocation2 + $0x54] sm:$0xf] %v748_v41  ;;  %v2147_v52 = vor.u32 %v2146_v38, %v2143_v37  ;;  %v6331_v53 = vrot.slane %v2150_v39, 5  ;;  %v6333_v54 = vrot.slane %v2154_v43, 4 }
  0x8c   : > { %v2666_v57 = vrot.slane %v2553_v40, 5  ;;  %v495_v60 = vsel %vm6138_vm14, %v487_v31, %v494_v50  ;;  %v6343_v63 = vrot.slane %v2160_v45, 5  ;;  %v2669_v44 = vrot.slane %v2554_v46, 5 }
  0x8d   : > { %v752_v61 = vsel %vm6154_vm0, %v496_v51, %v751_v34  ;;  %v6341_v62 = vrot.slane %v2147_v52, 4  ;;  %750 = vst.msk [vmem:[#allocation2 + $0x58] sm:$0xf] %vm699_vm6, %v495_v60  ;;  %v2157_v12 = vor.u32 %v6333_v54, %v6331_v53  ;;  %v6350_v1 = vpack.c.bf16 %v261_v49, %v261_v49 }
  0x8e   : > { %753 = vst [vmem:[#allocation2 + $0x5c] sm:$0x1] %v752_v61  ;;  %v2668_v32 = vrot.slane %v2666_v57, 4  ;;  %v980_v4 = vld [vmem:[#allocation2 + $0x48] sm:$0xf]  ;;  %v6358_v8 = vsel %vm6116_vm5, %v5363_v48, %v2666_v57  ;;  %v6360_v9 = vpack.c.bf16 %v262_v58, %v262_v58  ;;  %v6362_v10 = vpack.c.bf16 %v263_v59, %v263_v59 }
  0x8f   : > { %v1528_v5 = vld [vmem:[#allocation2 + $0x48] sm:$0xe]  ;;  %v2153_v6 = vsel %vm6131_vm11, %v6341_v62, %v6331_v53  ;;  %v981_v13 = vld [vmem:[#allocation2 + $0x4c] sm:$0xf]  ;;  %v1158_v14 = vshrl.u32 %v980_v4, 16  ;;  %v1161_v16 = vshll.u32 %v980_v4, 16  ;;  %v6365_v17 = vpack.c.bf16 %v264_v0, %v264_v0 }
  0x90   : > { %v982_v2 = vld [vmem:[#allocation2 + $0x50] sm:$0x1]  ;;  %v6367_v18 = vpack.c.bf16 %v265_v3, %v265_v3  ;;  %v1167_v19 = vshll.u32 %v981_v13, 16  ;;  %v1171_v33 = vshrl.u32 %v981_v13, 16  ;;  %v1529_v55 = vld [vmem:[#allocation2 + $0x4c] sm:$0xf]  ;;  %v6371_v11 = vsel %vm6116_vm5, %v2668_v32, %v2669_v44 }
  0x91   : > { %v1177_v20 = vshll.u32 %v982_v2, 16  ;;  %v5301_v21 = vrot.slane %v1528_v5, 9  ;;  %v1160_v22 = vrot.slane %v1158_v14, 4  ;;  %v1163_v23 = vrot.slane %v1161_v16, 5  ;;  %v1530_v25 = vld [vmem:[#allocation2 + $0x50] sm:$0x1] }
  0x92   : > { %v983_v24 = vld [vmem:[#allocation2 + $0x54] sm:$0xf]  ;;  %v6373_v26 = vpack.c.bf16 %v266_v15, %v266_v15  ;;  %v1169_v27 = vrot.slane %v1167_v19, 5  ;;  %v1173_v28 = vrot.slane %v1171_v33, 4  ;;  %v1653_v37 = vrot.slane %v1529_v55, 5 }
  0x93   : > { %v1179_v29 = vrot.slane %v1177_v20, 5  ;;  %v1182_v30 = vshrl.u32 %v983_v24, 16  ;;  %v1531_v31 = vld [vmem:[#allocation2 + $0x54] sm:$0xe]  ;;  %v1164_v34 = vor.u32 %v1163_v23, %v1160_v22  ;;  %v1185_v35 = vshll.u32 %v983_v24, 16 }
  0x94   : > { %v1656_v38 = vrot.slane %v1530_v25, 5  ;;  %v1174_v39 = vor.u32 %v1173_v28, %v1169_v27  ;;  %v984_v40 = vld [vmem:[#allocation2 + $0x58] sm:$0xf]  ;;  %v5302_v45 = vrot.slane %v1531_v31, 9  ;;  %v5379_v46 = vcombine.low %v6358_v8, %v6371_v11  ;;  %v2011_v2 = vld [vmem:[#allocation2 + $0x48] sm:$0xf] }
  0x95   : > { %v985_v41 = vld [vmem:[#allocation2 + $0x5c] sm:$0x1]  ;;  %v1184_v43 = vrot.slane %v1182_v30, 4  ;;  %v1165_v48 = vrot.slane %v1164_v34, 4  ;;  %v1187_v49 = vrot.slane %v1185_v35, 5  ;;  %v1191_v50 = vshll.u32 %v984_v40, 16 }
  0x96   : > { %v1195_v51 = vshrl.u32 %v984_v40, 16  ;;  %v1532_v52 = vld [vmem:[#allocation2 + $0x58] sm:$0xf]  ;;  %v1175_v57 = vrot.slane %v1174_v39, 4  ;;  %v1201_v58 = vshll.u32 %v985_v41, 16  ;;  %v1654_v59 = vsel %vm6116_vm5, %v5301_v21, %v1653_v37 }
  0x97   : > { %v1655_v60 = vrot.slane %v1653_v37, 4  ;;  %v1170_v61 = vsel %vm6131_vm11, %v1165_v48, %v1169_v27  ;;  %v1188_v0 = vor.u32 %v1187_v49, %v1184_v43  ;;  %v1193_v3 = vrot.slane %v1191_v50, 5  ;;  %v1533_v44 = vld [vmem:[#allocation2 + $0x5c] sm:$0x1]  ;;  %v2012_v20 = vld [vmem:[#allocation2 + $0x4c] sm:$0xf] }
  0x98   : > { %v1197_v32 = vrot.slane %v1195_v51, 4  ;;  %v1180_v4 = vsel %vm6131_vm11, %v1175_v57, %v1179_v29  ;;  %v1203_v5 = vrot.slane %v1201_v58, 5  ;;  %v1660_v13 = vrot.slane %v1532_v52, 5  ;;  %v2013_v24 = vld [vmem:[#allocation2 + $0x50] sm:$0x1] }
  0x99   : > { %v1657_v15 = vsel %vm6116_vm5, %v1655_v60, %v1656_v38  ;;  %v5285_v14 = vcombine.low %v1170_v61, %v1180_v4  ;;  %v1189_v16 = vrot.slane %v1188_v0, 4  ;;  %v1663_v22 = vrot.slane %v1533_v44, 5  ;;  %v2555_v30 = vld [vmem:[#allocation2 + $0x48] sm:$0xe]  ;;  %v2557_v37 = vld [vmem:[#allocation2 + $0x50] sm:$0x1] }
  0x9a   : > { %v1198_v19 = vor.u32 %v1197_v32, %v1193_v3  ;;  %v5317_v33 = vcombine.low %v1654_v59, %v1657_v15  ;;  %v1661_v55 = vsel %vm6116_vm5, %v5302_v45, %v1660_v13  ;;  %v1662_v21 = vrot.slane %v1660_v13, 4  ;;  %v754_v0 = vld [vmem:[#allocation2 + $0x60] sm:$0xf]  ;;  %v2014_v15 = vld [vmem:[#allocation2 + $0x54] sm:$0xf] }
  0x9b   : > { %v2158_v23 = vrot.slane %v2157_v12, 4  ;;  %1457 = vrot.lane.b32.xlu0 %v5285_v14, %s6014_s23  ;;  %v1194_v25 = vsel %vm6131_vm11, %v1189_v16, %v1193_v3  ;;  %v2165_v28 = vshrl.u32 %v2011_v2, 16  ;;  %v2168_v29 = vshll.u32 %v2011_v2, 16  ;;  %v2556_v12 = vld [vmem:[#allocation2 + $0x4c] sm:$0xf] }
  0x9c   : > { %v1199_v27 = vrot.slane %v1198_v19, 4  ;;  %v1664_v31 = vsel %vm6116_vm5, %v1662_v21, %v1663_v22  ;;  %v2174_v35 = vshll.u32 %v2012_v20, 16  ;;  %v2178_v54 = vshrl.u32 %v2012_v20, 16 }
  0x9d   : > { %v2163_v34 = vsel %vm6131_vm11, %v2158_v23, %v6343_v63  ;;  %v5318_v39 = vcombine.low %v1661_v55, %v1664_v31  ;;  %v2167_v41 = vrot.slane %v2165_v28, 4  ;;  %v2170_v45 = vrot.slane %v2168_v29, 5  ;;  %v761_v23 = vld [vmem:[#allocation2 + $0x6c] sm:$0xf]  ;;  %v2016_v29 = vld [vmem:[#allocation2 + $0x5c] sm:$0x1] }
  0x9e   : > { %v1204_v38 = vsel %vm6131_vm11, %v1199_v27, %v1203_v5  ;;  %v5347_v40 = vcombine.low %v2153_v6, %v2163_v34  ;;  %v2176_v48 = vrot.slane %v2174_v35, 5  ;;  %v2180_v49 = vrot.slane %v2178_v54, 4  ;;  %v758_v5 = vld [vmem:[#allocation2 + $0x68] sm:$0x1]  ;;  %v765_v34 = vld [vmem:[#allocation2 + $0x74] sm:$0x1] }
  0x9f   : > { %v5286_v43 = vcombine.low %v1194_v25, %v1204_v38  ;;  %1781 = vrot.lane.b32.xlu0 %v5317_v33, %s6013_s22  ;;  %v2184_v63 = vshll.u32 %v2013_v24, 16  ;;  %v5364_v50 = vrot.slane %v2555_v30, 9  ;;  %v2673_v51 = vrot.slane %v2556_v12, 5  ;;  %v2015_v24 = vld [vmem:[#allocation2 + $0x58] sm:$0xf]  ;;  %v267_v12 = vld [vmem:[%s6057_s21 + $0xa0] sm:$0xff] }
  0xa0   : > { %v2676_v52 = vrot.slane %v2557_v37, 5  ;;  %v2171_v57 = vor.u32 %v2170_v45, %v2167_v41  ;;  %v2181_v58 = vor.u32 %v2180_v49, %v2176_v48  ;;  %v498_v59 = vshrl.u32 %v6350_v1, 16  ;;  %v2558_v37 = vld [vmem:[#allocation2 + $0x54] sm:$0xe]  ;;  %v268_v38 = vld [vmem:[%s6057_s21 + $0xa8] sm:$0xff] }
  0xa1   : > { %1459 = vrot.lane.b32.xlu1 %v5286_v43, %s6014_s23  ;;  %v501_v53 = vshll.u32 %v6350_v1, 16  ;;  %v2186_v62 = vrot.slane %v2184_v63, 5  ;;  %v6411_v6 = vsel %vm6116_vm5, %v5364_v50, %v2673_v51  ;;  %v2675_v60 = vrot.slane %v2673_v51, 4  ;;  %v6442_v45 = vld [vmem:[#allocation2 + $0x58] sm:$0xf] }
  0xa2   : > { %v506_v61 = vshrl.u32 %v6360_v9, 16  ;;  %v2172_v3 = vrot.slane %v2171_v57, 4  ;;  %v2182_v32 = vrot.slane %v2181_v58, 4  ;;  %v500_v44 = vrot.slane %v498_v59, 7  ;;  %v6448_v51 = vld [vmem:[#allocation2 + $0x5c] sm:$0x1] }
  0xa3   : > { %v509_v4 = vshll.u32 %v6360_v9, 16  ;;  %2484 = vrot.lane.b32.xlu0 %v5347_v40, %s6014_s23  ;;  %v2677_v1 = vsel %vm6116_vm5, %v2675_v60, %v2676_v52  ;;  %v515_v2 = vshrl.u32 %v6362_v10, 16  ;;  %v518_v14 = vshll.u32 %v6362_v10, 16 }
  0xa4   : > { %v508_v13 = vrot.slane %v506_v61, 7  ;;  %v2177_v16 = vsel %vm6131_vm11, %v2172_v3, %v2176_v48  ;;  %v2187_v9 = vsel %vm6131_vm11, %v2182_v32, %v2186_v62  ;;  %v5380_v19 = vcombine.low %v6411_v6, %v2677_v1 }
  0xa5   : > { %1783 = vrot.lane.b32.xlu1 %v5318_v39, %s6013_s22  ;;  %v503_v33 = vor.u32 %v501_v53, %v500_v44  ;;  %v5348_v20 = vcombine.low %v2177_v16, %v2187_v9  ;;  %v504_v55 = vrot.slane %v500_v44, 4  ;;  %v517_v25 = vrot.slane %v515_v2, 7  ;;  %v269_v53 = vld [vmem:[%s6057_s21 + $0xb0] sm:$0xff] }
  0xa6   : > { %v511_v21 = vor.u32 %v509_v4, %v508_v13  ;;  %v513_v22 = vrot.slane %v508_v13, 4  ;;  %v523_v27 = vshrl.u32 %v6365_v17, 16  ;;  %v526_v28 = vshll.u32 %v6365_v17, 16 }
  0xa7   : > { %v755_v10 = vsel %vm6144_vm15, %v503_v33, %v754_v0  ;;  %2804 = vrot.lane.b32.xlu0 %v5379_v46, %s6013_s22  ;;  %v2189_v35 = vshrl.u32 %v2014_v15, 16  ;;  %v2192_v54 = vshll.u32 %v2014_v15, 16  ;;  %v520_v17 = vor.u32 %v518_v14, %v517_v25  ;;  %v270_v0 = vld [vmem:[%s6057_s21 + $0xb8] sm:$0xff] }
  0xa8   : > { %v512_v30 = vsel %vm6138_vm14, %v504_v55, %v511_v21  ;;  %756 = vst [vmem:[#allocation2 + $0x60] sm:$0xf] %v755_v10  ;;  %v759_v31 = vsel %vm6154_vm0, %v513_v22, %v758_v5  ;;  %v521_v8 = vrot.slane %v517_v25, 4  ;;  %v525_v11 = vrot.slane %v523_v27, 7 }
  0xa9   : > { %2486 = vrot.lane.b32.xlu1 %v5348_v20, %s6014_s23  ;;  %757 = vst.msk [vmem:[#allocation2 + $0x64] sm:$0xf] %vm699_vm6, %v512_v30  ;;  %760 = vst [vmem:[#allocation2 + $0x68] sm:$0x1] %v759_v31  ;;  %v2198_v46 = vshll.u32 %v2015_v24, 16  ;;  %v2191_v39 = vrot.slane %v2189_v35, 4  ;;  %v762_v63 = vsel %vm6144_vm15, %v520_v17, %v761_v23  ;;  %v6450_v59 = vpack.c.bf16 %v267_v12, %v267_v12 }
  0xaa   : > { %v2194_v40 = vrot.slane %v2192_v54, 5  ;;  %v2202_v41 = vshrl.u32 %v2015_v24, 16  ;;  %v2208_v43 = vshll.u32 %v2016_v29, 16  ;;  %v528_v48 = vor.u32 %v526_v28, %v525_v11  ;;  %763 = vst [vmem:[#allocation2 + $0x6c] sm:$0xf] %v762_v63 }
  0xab   : > { %v530_v49 = vrot.slane %v525_v11, 4  ;;  %v6446_v50 = vrot.slane %v2198_v46, 5  ;;  %v5365_v58 = vrot.slane %v2558_v37, 9  ;;  %v2680_v60 = vrot.slane %v6442_v45, 5 }
  0xac   : > { %v2195_v52 = vor.u32 %v2194_v40, %v2191_v39  ;;  %v2204_v57 = vrot.slane %v2202_v41, 4  ;;  %v529_v62 = vsel %vm6138_vm14, %v521_v8, %v528_v48  ;;  %v6459_v61 = vpack.c.bf16 %v268_v38, %v268_v38 }
  0xad   : > { %2806 = vrot.lane.b32.xlu1 %v5380_v19, %s6013_s22  ;;  %v766_v6 = vsel %vm6154_vm0, %v530_v49, %v765_v34  ;;  %764 = vst.msk [vmem:[#allocation2 + $0x70] sm:$0xf] %vm699_vm6, %v529_v62  ;;  %v6466_v44 = vrot.slane %v2208_v43, 5  ;;  %v2683_v4 = vrot.slane %v6448_v51, 5  ;;  %v6473_v1 = vsel %vm6116_vm5, %v5365_v58, %v2680_v60  ;;  %v768_v51 = vld [vmem:[#allocation2 + $0x78] sm:$0xf] }
  0xae   : > { %767 = vst [vmem:[#allocation2 + $0x74] sm:$0x1] %v766_v6  ;;  %v6463_v3 = vrot.slane %v2195_v52, 4  ;;  %v2205_v32 = vor.u32 %v2204_v57, %v6446_v50  ;;  %v532_v13 = vshrl.u32 %v6367_v18, 16  ;;  %v535_v2 = vshll.u32 %v6367_v18, 16 }
  0xaf   : > { %v986_v5 = vld [vmem:[#allocation2 + $0x60] sm:$0xf]  ;;  %v6477_v14 = vpack.c.bf16 %v269_v53, %v269_v53  ;;  %v6483_v55 = vpack.c.bf16 %v270_v0, %v270_v0  ;;  %vm1493_vm1 = vcmask 64544   ;;  %vm1817_vm2 = vcmask 97344  }
  0xb0   : > { %v1534_v15 = vld [vmem:[#allocation2 + $0x60] sm:$0xe]  ;;  %v987_v16 = vld [vmem:[#allocation2 + $0x64] sm:$0xf]  ;;  %v988_v9 = vld [vmem:[#allocation2 + $0x68] sm:$0x1]  ;;  %v2201_v20 = vsel %vm6131_vm11, %v6463_v3, %v6446_v50 }
  0xb1   : > { %v1206_v19 = vshrl.u32 %v986_v5, 16  ;;  %v1209_v33 = vshll.u32 %v986_v5, 16  ;;  %v1215_v21 = vshll.u32 %v987_v16, 16  ;;  %v1219_v22 = vshrl.u32 %v987_v16, 16  ;;  %v1535_v24 = vld [vmem:[#allocation2 + $0x64] sm:$0xf] }
  0xb2   : > { %v1225_v23 = vshll.u32 %v988_v9, 16  ;;  %v5303_v10 = vrot.slane %v1534_v15, 9  ;;  %v1536_v28 = vld [vmem:[#allocation2 + $0x68] sm:$0x1]  ;;  %v1667_v29 = vrot.slane %v1535_v24, 5  ;;  %v2206_v30 = vrot.slane %v2205_v32, 4 }
  0xb3   : > { %v1208_v25 = vrot.slane %v1206_v19, 4  ;;  %v1211_v27 = vrot.slane %v1209_v33, 5  ;;  %v1217_v31 = vrot.slane %v1215_v21, 5  ;;  %v1221_v34 = vrot.slane %v1219_v22, 4  ;;  %v989_v54 = vld [vmem:[#allocation2 + $0x6c] sm:$0xf] }
  0xb4   : > { %v1227_v35 = vrot.slane %v1225_v23, 5  ;;  %v1670_v12 = vrot.slane %v1536_v28, 5  ;;  %v1230_v8 = vshrl.u32 %v989_v54, 16  ;;  %v1233_v11 = vshll.u32 %v989_v54, 16  ;;  %v1537_v37 = vld [vmem:[#allocation2 + $0x6c] sm:$0xe] }
  0xb5   : > { %v1212_v17 = vor.u32 %v1211_v27, %v1208_v25  ;;  %v1668_v46 = vsel %vm6116_vm5, %v5303_v10, %v1667_v29  ;;  %v1222_v38 = vor.u32 %v1221_v34, %v1217_v31  ;;  %v990_v39 = vld [vmem:[#allocation2 + $0x70] sm:$0xf]  ;;  %v991_v40 = vld [vmem:[#allocation2 + $0x74] sm:$0x1]  ;;  %v1669_v41 = vrot.slane %v1667_v29, 4 }
  0xb6   : > { %v5304_v43 = vrot.slane %v1537_v37, 9  ;;  %v2211_v48 = vsel %vm6131_vm11, %v2206_v30, %v6466_v44  ;;  %v1232_v63 = vrot.slane %v1230_v8, 4  ;;  %v1235_v50 = vrot.slane %v1233_v11, 5  ;;  %v1538_v57 = vld [vmem:[#allocation2 + $0x70] sm:$0xf] }
  0xb7   : > { %v1213_v49 = vrot.slane %v1212_v17, 4  ;;  %v1239_v52 = vshll.u32 %v990_v39, 16  ;;  %v1223_v58 = vrot.slane %v1222_v38, 4  ;;  %v1243_v53 = vshrl.u32 %v990_v39, 16  ;;  %v1539_v0 = vld [vmem:[#allocation2 + $0x74] sm:$0x1] }
  0xb8   : > { %v1249_v62 = vshll.u32 %v991_v40, 16  ;;  %v1671_v6 = vsel %vm6116_vm5, %v1669_v41, %v1670_v12  ;;  %v1236_v32 = vor.u32 %v1235_v50, %v1232_v63  ;;  %v2017_v16 = vld [vmem:[#allocation2 + $0x60] sm:$0xf]  ;;  %v1674_v33 = vrot.slane %v1538_v57, 5  ;;  %v2018_v21 = vld [vmem:[#allocation2 + $0x64] sm:$0xf] }
  0xb9   : > { %v1218_v3 = vsel %vm6131_vm11, %v1213_v49, %v1217_v31  ;;  %v1241_v5 = vrot.slane %v1239_v52, 5  ;;  %v5319_v15 = vcombine.low %v1668_v46, %v1671_v6  ;;  %v1228_v44 = vsel %vm6131_vm11, %v1223_v58, %v1227_v35  ;;  %v2019_v25 = vld [vmem:[#allocation2 + $0x68] sm:$0x1]  ;;  %v2561_v12 = vld [vmem:[#allocation2 + $0x60] sm:$0xe] }
  0xba   : > { %v1245_v9 = vrot.slane %v1243_v53, 4  ;;  %v1251_v19 = vrot.slane %v1249_v62, 5  ;;  %v5287_v22 = vcombine.low %v1218_v3, %v1228_v44  ;;  %v1237_v23 = vrot.slane %v1236_v32, 4  ;;  %v2562_v46 = vld [vmem:[#allocation2 + $0x64] sm:$0xf] }
  0xbb   : > { %v1677_v24 = vrot.slane %v1539_v0, 5  ;;  %v5349_v10 = vcombine.low %v2201_v20, %v2211_v48  ;;  %v1675_v28 = vsel %vm6116_vm5, %v5304_v43, %v1674_v33  ;;  %v1676_v29 = vrot.slane %v1674_v33, 4  ;;  %v2563_v41 = vld [vmem:[#allocation2 + $0x68] sm:$0x1]  ;;  %v2020_v33 = vld [vmem:[#allocation2 + $0x6c] sm:$0xf] }
  0xbc   : > { %v1246_v27 = vor.u32 %v1245_v9, %v1241_v5  ;;  %v2213_v30 = vshrl.u32 %v2017_v16, 16  ;;  %1461 = vrot.lane.b32.xlu0 %v5287_v22, %s6014_s23  ;;  %v1242_v31 = vsel %vm6131_vm11, %v1237_v23, %v1241_v5  ;;  %v2216_v34 = vshll.u32 %v2017_v16, 16  ;;  %v772_v9 = vld [vmem:[#allocation2 + $0x80] sm:$0x1]  ;;  %v775_v23 = vld [vmem:[#allocation2 + $0x84] sm:$0xf] }
  0xbd   : > { %v2222_v35 = vshll.u32 %v2018_v21, 16  ;;  %v2226_v54 = vshrl.u32 %v2018_v21, 16  ;;  %v1678_v20 = vsel %vm6116_vm5, %v1676_v29, %v1677_v24  ;;  %v2232_v11 = vshll.u32 %v2019_v25, 16 }
  0xbe   : > { %v1247_v17 = vrot.slane %v1246_v27, 4  ;;  %v2215_v8 = vrot.slane %v2213_v30, 4  ;;  %v5320_v37 = vcombine.low %v1675_v28, %v1678_v20  ;;  %v2218_v38 = vrot.slane %v2216_v34, 5  ;;  %v2021_v27 = vld [vmem:[#allocation2 + $0x70] sm:$0xf] }
  0xbf   : > { %v2224_v39 = vrot.slane %v2222_v35, 5  ;;  %v2228_v40 = vrot.slane %v2226_v54, 4  ;;  %v2234_v48 = vrot.slane %v2232_v11, 5  ;;  %v2682_v49 = vrot.slane %v2680_v60, 4  ;;  %v2022_v28 = vld [vmem:[#allocation2 + $0x74] sm:$0x1] }
  0xc0   : > { %v1252_v43 = vsel %vm6131_vm11, %v1247_v17, %v1251_v19  ;;  %v5366_v63 = vrot.slane %v2561_v12, 9  ;;  %1785 = vrot.lane.b32.xlu0 %v5319_v15, %s6013_s22  ;;  %v2219_v52 = vor.u32 %v2218_v38, %v2215_v8  ;;  %v2687_v58 = vrot.slane %v2562_v46, 5  ;;  %v6541_v35 = vld [vmem:[#allocation2 + $0x6c] sm:$0xe]  ;;  %v6546_v20 = vld [vmem:[#allocation2 + $0x70] sm:$0xf] }
  0xc1   : > { %v5288_v50 = vcombine.low %v1242_v31, %v1252_v43  ;;  %v2229_v57 = vor.u32 %v2228_v40, %v2224_v39  ;;  %v2684_v53 = vsel %vm6116_vm5, %v2682_v49, %v2683_v4  ;;  %v2690_v62 = vrot.slane %v2563_v41, 5 }
  0xc2   : > { %v534_v6 = vrot.slane %v532_v13, 7  ;;  %v540_v0 = vshrl.u32 %v6373_v26, 16  ;;  %v2220_v45 = vrot.slane %v2219_v52, 4  ;;  %v5381_v3 = vcombine.low %v6473_v1, %v2684_v53 }
  0xc3   : > { %1463 = vrot.lane.b32.xlu1 %v5288_v50, %s6014_s23  ;;  %v2230_v60 = vrot.slane %v2229_v57, 4  ;;  %v6519_v32 = vsel %vm6116_vm5, %v5366_v63, %v2687_v58  ;;  %v2689_v5 = vrot.slane %v2687_v58, 4  ;;  %v543_v1 = vshll.u32 %v6373_v26, 16 }
  0xc4   : > { %v537_v4 = vor.u32 %v535_v2, %v534_v6  ;;  %v538_v15 = vrot.slane %v534_v6, 4  ;;  %v542_v16 = vrot.slane %v540_v0, 7  ;;  %2488 = vrot.lane.b32.xlu0 %v5349_v10, %s6014_s23  ;;  %v2225_v13 = vsel %vm6131_vm11, %v2220_v45, %v2224_v39  ;;  %v779_v39 = vld [vmem:[#allocation2 + $0x8c] sm:$0x1]  ;;  %v273_v0 = vld [vmem:[%s6057_s21 + $0xd0] sm:$0xff] }
  0xc5   : > { %v2235_v44 = vsel %vm6131_vm11, %v2230_v60, %v2234_v48  ;;  %v549_v19 = vshrl.u32 %v6450_v59, 16  ;;  %v2691_v18 = vsel %vm6116_vm5, %v2689_v5, %v2690_v62  ;;  %v552_v25 = vshll.u32 %v6450_v59, 16  ;;  %v271_v48 = vld [vmem:[%s6057_s21 + $0xc0] sm:$0xff]  ;;  %v272_v6 = vld [vmem:[%s6057_s21 + $0xc8] sm:$0xff] }
  0xc6   : > { %v5350_v21 = vcombine.low %v2225_v13, %v2235_v44  ;;  %v547_v2 = vrot.slane %v542_v16, 4  ;;  %v769_v22 = vsel %vm6144_vm15, %v537_v4, %v768_v51  ;;  %v5382_v24 = vcombine.low %v6519_v32, %v2691_v18 }
  0xc7   : > { %1787 = vrot.lane.b32.xlu1 %v5320_v37, %s6013_s22  ;;  %v545_v10 = vor.u32 %v543_v1, %v542_v16  ;;  %770 = vst [vmem:[#allocation2 + $0x78] sm:$0xf] %v769_v22  ;;  %v551_v26 = vrot.slane %v549_v19, 7  ;;  %v557_v30 = vshrl.u32 %v6459_v61, 16  ;;  %v560_v31 = vshll.u32 %v6459_v61, 16 }
  0xc8   : > { %v773_v29 = vsel %vm6154_vm0, %v547_v2, %v772_v9  ;;  %v2237_v34 = vshrl.u32 %v2020_v33, 16  ;;  %2808 = vrot.lane.b32.xlu0 %v5381_v3, %s6013_s22  ;;  %v2240_v17 = vshll.u32 %v2020_v33, 16  ;;  %v2246_v61 = vshll.u32 %v2021_v27, 16  ;;  %v6549_v37 = vld [vmem:[#allocation2 + $0x74] sm:$0x1] }
  0xc9   : > { %v546_v54 = vsel %vm6138_vm14, %v538_v15, %v545_v10  ;;  %774 = vst [vmem:[#allocation2 + $0x80] sm:$0x1] %v773_v29  ;;  %v554_v12 = vor.u32 %v552_v25, %v551_v26  ;;  %v555_v59 = vrot.slane %v551_v26, 4  ;;  %v559_v8 = vrot.slane %v557_v30, 7 }
  0xca   : > { %771 = vst.msk [vmem:[#allocation2 + $0x7c] sm:$0xf] %vm699_vm6, %v546_v54  ;;  %v2239_v11 = vrot.slane %v2237_v34, 4  ;;  %v2250_v46 = vshrl.u32 %v2021_v27, 16  ;;  %v2242_v40 = vrot.slane %v2240_v17, 5  ;;  %v2256_v41 = vshll.u32 %v2022_v28, 16 }
  0xcb   : > { %2490 = vrot.lane.b32.xlu1 %v5350_v21, %s6014_s23  ;;  %v776_v38 = vsel %vm6144_vm15, %v554_v12, %v775_v23  ;;  %v5367_v43 = vrot.slane %v6541_v35, 9  ;;  %v562_v49 = vor.u32 %v560_v31, %v559_v8  ;;  %v564_v63 = vrot.slane %v559_v8, 4 }
  0xcc   : > { %777 = vst [vmem:[#allocation2 + $0x84] sm:$0xf] %v776_v38  ;;  %v2248_v50 = vrot.slane %v2246_v61, 5  ;;  %v2252_v52 = vrot.slane %v2250_v46, 4  ;;  %v2243_v57 = vor.u32 %v2242_v40, %v2239_v11  ;;  %v2258_v58 = vrot.slane %v2256_v41, 5 }
  0xcd   : > { %v2694_v53 = vrot.slane %v6546_v20, 5  ;;  %v2697_v62 = vrot.slane %v6549_v37, 5  ;;  %v563_v60 = vsel %vm6138_vm14, %v555_v59, %v562_v49  ;;  %v780_v3 = vsel %vm6154_vm0, %v564_v63, %v779_v39 }
  0xce   : > { %v992_v45 = vld [vmem:[#allocation2 + $0x78] sm:$0xf]  ;;  %v2253_v51 = vor.u32 %v2252_v52, %v2248_v50  ;;  %v6566_v4 = vpack.c.bf16 %v271_v48, %v271_v48  ;;  %778 = vst.msk [vmem:[#allocation2 + $0x88] sm:$0xf] %vm699_vm6, %v563_v60  ;;  %781 = vst [vmem:[#allocation2 + $0x8c] sm:$0x1] %v780_v3  ;;  %v6571_v21 = vpack.c.bf16 %v272_v6, %v272_v6 }
  0xcf   : > { %v1540_v32 = vld [vmem:[#allocation2 + $0x78] sm:$0xe]  ;;  %2810 = vrot.lane.b32.xlu1 %v5382_v24, %s6013_s22  ;;  %v1254_v15 = vshrl.u32 %v992_v45, 16  ;;  %v1257_v16 = vshll.u32 %v992_v45, 16  ;;  %v2244_v44 = vrot.slane %v2243_v57, 4  ;;  %v6573_v18 = vpack.c.bf16 %v273_v0, %v273_v0 }
  0xd0   : > { %v6564_v5 = vld [vmem:[#allocation2 + $0x78] sm:$0xf]  ;;  %v5305_v13 = vrot.slane %v1540_v32, 9  ;;  %v994_v1 = vld [vmem:[#allocation2 + $0x80] sm:$0x1]  ;;  %v2254_v19 = vrot.slane %v2253_v51, 4  ;;  %v6583_v12 = vsel %vm6116_vm5, %v5367_v43, %v2694_v53 }
  0xd1   : > { %v1542_v9 = vld [vmem:[#allocation2 + $0x80] sm:$0x1]  ;;  %v2261_v33 = vshrl.u32 %v6564_v5, 16  ;;  %v993_v2 = vld [vmem:[#allocation2 + $0x7c] sm:$0xf]  ;;  %v1256_v22 = vrot.slane %v1254_v15, 4  ;;  %v2249_v28 = vsel %vm6131_vm11, %v2244_v44, %v2248_v50 }
  0xd2   : > { %v1259_v23 = vrot.slane %v1257_v16, 5  ;;  %v1273_v24 = vshll.u32 %v994_v1, 16  ;;  %v1684_v10 = vrot.slane %v1542_v9, 5  ;;  %v1263_v26 = vshll.u32 %v993_v2, 16  ;;  %v1541_v27 = vld [vmem:[#allocation2 + $0x7c] sm:$0xf] }
  0xd3   : > { %v1267_v25 = vshrl.u32 %v993_v2, 16  ;;  %v2259_v29 = vsel %vm6131_vm11, %v2254_v19, %v2258_v58  ;;  %v995_v34 = vld [vmem:[#allocation2 + $0x84] sm:$0xf]  ;;  %v1681_v35 = vrot.slane %v1541_v27, 5  ;;  %v2024_v1 = vld [vmem:[#allocation2 + $0x7c] sm:$0xf]  ;;  %v6599_v27 = vpop.permute.xlu1 %1769 }
  0xd4   : > { %v1260_v30 = vor.u32 %v1259_v23, %v1256_v22  ;;  %v1275_v31 = vrot.slane %v1273_v24, 5  ;;  %v1543_v54 = vld [vmem:[#allocation2 + $0x84] sm:$0xe]  ;;  %v1265_v59 = vrot.slane %v1263_v26, 5  ;;  %v1278_v8 = vshrl.u32 %v995_v34, 16  ;;  %v6597_v23 = vpop.permute.xlu0 %1445  ;;  %v5879_v42 = vld [vmem:[#allocation2 + $0x78] sm:$0xff]  }
  0xd5   : > { %v1269_v17 = vrot.slane %v1267_v25, 4  ;;  %v1281_v11 = vshll.u32 %v995_v34, 16  ;;  %v1683_v46 = vrot.slane %v1681_v35, 4  ;;  %v5306_v38 = vrot.slane %v1543_v54, 9  ;;  %v996_v41 = vld [vmem:[#allocation2 + $0x88] sm:$0xf] }
  0xd6   : > { %v1261_v61 = vrot.slane %v1260_v30, 4  ;;  %v6585_v39 = vcombine.low %v2249_v28, %v2259_v29  ;;  %v997_v48 = vld [vmem:[#allocation2 + $0x8c] sm:$0x1]  ;;  %v1280_v49 = vrot.slane %v1278_v8, 4  ;;  %v1682_v50 = vsel %vm6116_vm5, %v5305_v13, %v1681_v35  ;;  %v1544_v6 = vld [vmem:[#allocation2 + $0x88] sm:$0xf] }
  0xd7   : > { %v1270_v40 = vor.u32 %v1269_v17, %v1265_v59  ;;  %v1283_v63 = vrot.slane %v1281_v11, 5  ;;  %v1287_v52 = vshll.u32 %v996_v41, 16  ;;  %v1291_v57 = vshrl.u32 %v996_v41, 16  ;;  %v1545_v3 = vld [vmem:[#allocation2 + $0x8c] sm:$0x1]  ;;  %v6621_v37 = vpop.permute.xlu1 %1771 }
  0xd8   : > { %v1266_v43 = vsel %vm6131_vm11, %v1261_v61, %v1265_v59  ;;  %v1297_v58 = vshll.u32 %v997_v48, 16  ;;  %v1685_v60 = vsel %vm6116_vm5, %v1683_v46, %v1684_v10  ;;  %v1688_v32 = vrot.slane %v1544_v6, 5  ;;  %v2025_v22 = vld [vmem:[#allocation2 + $0x80] sm:$0x1]  ;;  %v2567_v34 = vld [vmem:[#allocation2 + $0x78] sm:$0xe] }
  0xd9   : > { %v1271_v0 = vrot.slane %v1270_v40, 4  ;;  %v1284_v45 = vor.u32 %v1283_v63, %v1280_v49  ;;  %v1289_v51 = vrot.slane %v1287_v52, 5  ;;  %v1293_v15 = vrot.slane %v1291_v57, 4  ;;  %v2568_v17 = vld [vmem:[#allocation2 + $0x7c] sm:$0xf] }
  0xda   : > { %v1299_v16 = vrot.slane %v1297_v58, 5  ;;  %v5321_v44 = vcombine.low %v1682_v50, %v1685_v60  ;;  %v1689_v19 = vsel %vm6116_vm5, %v5306_v38, %v1688_v32  ;;  %v1690_v2 = vrot.slane %v1688_v32, 4  ;;  %v2569_v38 = vld [vmem:[#allocation2 + $0x80] sm:$0x1]  ;;  %v6616_v50 = vpop.permute.xlu0 %1773 }
  0xdb   : > { %v1276_v13 = vsel %vm6131_vm11, %v1271_v0, %v1275_v31  ;;  %v1285_v9 = vrot.slane %v1284_v45, 4  ;;  %v1294_v10 = vor.u32 %v1293_v15, %v1289_v51  ;;  %v1691_v26 = vrot.slane %v1545_v3, 5 }
  0xdc   : > { %v5289_v24 = vcombine.low %v1266_v43, %v1276_v13  ;;  %v2263_v25 = vrot.slane %v2261_v33, 4  ;;  %v2264_v29 = vshll.u32 %v6564_v5, 16  ;;  %v2270_v30 = vshll.u32 %v2024_v1, 16 }
  0xdd   : > { %v1290_v28 = vsel %vm6131_vm11, %v1285_v9, %v1289_v51  ;;  %v2274_v31 = vshrl.u32 %v2024_v1, 16  ;;  %v1295_v35 = vrot.slane %v1294_v10, 4  ;;  %v1692_v54 = vsel %vm6116_vm5, %v1690_v2, %v1691_v26  ;;  %v2026_v1 = vld [vmem:[#allocation2 + $0x84] sm:$0xf]  ;;  %v786_v2 = vld [vmem:[#allocation2 + $0x98] sm:$0x1] }
  0xde   : > { %1465 = vrot.lane.b32.xlu0 %v5289_v24, %s6014_s23  ;;  %v2280_v59 = vshll.u32 %v2025_v22, 16  ;;  %v2696_v33 = vrot.slane %v2694_v53, 4  ;;  %v5322_v8 = vcombine.low %v1689_v19, %v1692_v54  ;;  %v2266_v11 = vrot.slane %v2264_v29, 5  ;;  %v789_v22 = vld [vmem:[#allocation2 + $0x9c] sm:$0xf]  ;;  %v6642_v29 = vpop.permute.xlu0 %2796  ;;  %v6648_v54 = vpop.permute.xlu1 %1775 }
  0xdf   : > { %v2272_v61 = vrot.slane %v2270_v30, 5  ;;  %v2276_v46 = vrot.slane %v2274_v31, 4  ;;  %v1300_v5 = vsel %vm6131_vm11, %v1295_v35, %v1299_v16  ;;  %v5368_v48 = vrot.slane %v2567_v34, 9  ;;  %v782_v16 = vld [vmem:[#allocation2 + $0x90] sm:$0xf]  ;;  %7909 = vst [vmem:[#allocation13_spill] sm:$0xff] %v6642_v29 }
  0xe0   : > { %v2282_v40 = vrot.slane %v2280_v59, 5  ;;  %v2698_v41 = vsel %vm6116_vm5, %v2696_v33, %v2697_v62  ;;  %v5290_v49 = vcombine.low %v1290_v28, %v1300_v5  ;;  %v2267_v63 = vor.u32 %v2266_v11, %v2263_v25  ;;  %v2028_v28 = vld [vmem:[#allocation2 + $0x8c] sm:$0x1]  ;;  %v2570_v35 = vld [vmem:[#allocation2 + $0x84] sm:$0xe] }
  0xe1   : > { %v2277_v20 = vor.u32 %v2276_v46, %v2272_v61  ;;  %v5383_v53 = vcombine.low %v6583_v12, %v2698_v41  ;;  %v2701_v43 = vrot.slane %v2568_v17, 5  ;;  %v2704_v52 = vrot.slane %v2569_v38, 5  ;;  %v2571_v11 = vld [vmem:[#allocation2 + $0x88] sm:$0xf] }
  0xe2   : > { %1789 = vrot.lane.b32.xlu0 %v5321_v44, %s6013_s22  ;;  %v566_v57 = vshrl.u32 %v6477_v14, 16  ;;  %v569_v58 = vshll.u32 %v6477_v14, 16  ;;  %1467 = vrot.lane.b32.xlu1 %v5290_v49, %s6014_s23  ;;  %v2268_v62 = vrot.slane %v2267_v63, 4  ;;  %v574_v0 = vshrl.u32 %v6483_v55, 16 }
  0xe3   : > { %v2278_v6 = vrot.slane %v2277_v20, 4  ;;  %v577_v12 = vshll.u32 %v6483_v55, 16  ;;  %v6628_v45 = vsel %vm6116_vm5, %v5368_v48, %v2701_v43  ;;  %v2703_v60 = vrot.slane %v2701_v43, 4  ;;  %v793_v48 = vld [vmem:[#allocation2 + $0xa4] sm:$0x1] }
  0xe4   : > { %v568_v3 = vrot.slane %v566_v57, 7  ;;  %v583_v32 = vshrl.u32 %v6566_v4, 16  ;;  %v2273_v14 = vsel %vm6131_vm11, %v2268_v62, %v2272_v61  ;;  %v576_v15 = vrot.slane %v574_v0, 7  ;;  %v274_v61 = vld [vmem:[%s6057_s21 + $0xd8] sm:$0xff] }
  0xe5   : > { %v2283_v51 = vsel %vm6131_vm11, %v2278_v6, %v2282_v40  ;;  %v586_v44 = vshll.u32 %v6566_v4, 16  ;;  %v2705_v13 = vsel %vm6116_vm5, %v2703_v60, %v2704_v52  ;;  %v2027_v4 = vld [vmem:[#allocation2 + $0x88] sm:$0xf]  ;;  %v591_v30 = vshrl.u32 %v6571_v21, 16  ;;  %v2572_v40 = vld [vmem:[#allocation2 + $0x8c] sm:$0x1] }
  0xe6   : > { %2492 = vrot.lane.b32.xlu0 %v6585_v39, %s6014_s23  ;;  %v5352_v55 = vcombine.low %v2273_v14, %v2283_v51  ;;  %v571_v9 = vor.u32 %v569_v58, %v568_v3  ;;  %v572_v19 = vrot.slane %v568_v3, 4  ;;  %1791 = vrot.lane.b32.xlu1 %v5322_v8, %s6013_s22  ;;  %v5384_v24 = vcombine.low %v6628_v45, %v2705_v13  ;;  %v275_v58 = vld [vmem:[%s6057_s21 + $0xe0] sm:$0xff]  ;;  %v6667_v45 = vpop.permute.xlu0 %1777  ;;  %v276_v51 = vld [vmem:[%s6057_s21 + $0xe8] sm:$0xff] }
  0xe7   : > { %v579_v10 = vor.u32 %v577_v12, %v576_v15  ;;  %v581_v26 = vrot.slane %v576_v15, 4  ;;  %v585_v25 = vrot.slane %v583_v32, 7  ;;  %v594_v31 = vshll.u32 %v6571_v21, 16  ;;  %v6675_v15 = vpop.permute.xlu1 %2798 }
  0xe8   : > { %v783_v39 = vsel %vm6144_vm15, %v571_v9, %v782_v16  ;;  %v2285_v34 = vshrl.u32 %v2026_v1, 16  ;;  %v593_v21 = vrot.slane %v591_v30, 7  ;;  %v2288_v38 = vshll.u32 %v2026_v1, 16 }
  0xe9   : > { %v580_v59 = vsel %vm6138_vm14, %v572_v19, %v579_v10  ;;  %784 = vst [vmem:[#allocation2 + $0x90] sm:$0xf] %v783_v39  ;;  %v787_v33 = vsel %vm6154_vm0, %v581_v26, %v786_v2  ;;  %v588_v17 = vor.u32 %v586_v44, %v585_v25  ;;  %v589_v8 = vrot.slane %v585_v25, 4 }
  0xea   : > { %2812 = vrot.lane.b32.xlu0 %v5383_v53, %s6013_s22  ;;  %785 = vst.msk [vmem:[#allocation2 + $0x94] sm:$0xf] %vm699_vm6, %v580_v59  ;;  %788 = vst [vmem:[#allocation2 + $0x98] sm:$0x1] %v787_v33  ;;  %v2287_v46 = vrot.slane %v2285_v34, 4  ;;  %v2294_v5 = vshll.u32 %v2027_v4, 16  ;;  %2494 = vrot.lane.b32.xlu1 %v5352_v55, %s6014_s23  ;;  %v596_v53 = vor.u32 %v594_v31, %v593_v21 }
  0xeb   : > { %v790_v41 = vsel %vm6144_vm15, %v588_v17, %v789_v22  ;;  %v2298_v49 = vshrl.u32 %v2027_v4, 16  ;;  %v2304_v63 = vshll.u32 %v2028_v28, 16  ;;  %v5369_v20 = vrot.slane %v2570_v35, 9 }
  0xec   : > { %v598_v43 = vrot.slane %v593_v21, 4  ;;  %791 = vst [vmem:[#allocation2 + $0x9c] sm:$0xf] %v790_v41  ;;  %v2290_v52 = vrot.slane %v2288_v38, 5  ;;  %v6660_v57 = vrot.slane %v2294_v5, 5  ;;  %v2708_v6 = vrot.slane %v2571_v11, 5  ;;  %v6706_v21 = vpop.permute.xlu0 %1447 }
  0xed   : > { %v6663_v62 = vrot.slane %v2298_v49, 4  ;;  %v2711_v0 = vrot.slane %v2572_v40, 5  ;;  %v6665_v12 = vpack.c.bf16 %v274_v61, %v274_v61  ;;  %v597_v60 = vsel %vm6138_vm14, %v589_v8, %v596_v53 }
  0xee   : > { %v794_v3 = vsel %vm6154_vm0, %v598_v43, %v793_v48  ;;  %v2291_v32 = vor.u32 %v2290_v52, %v2287_v46  ;;  %v600_v14 = vshrl.u32 %v6573_v18, 16  ;;  %2814 = vrot.lane.b32.xlu1 %v5384_v24, %s6013_s22  ;;  %792 = vst.msk [vmem:[#allocation2 + $0xa0] sm:$0xf] %vm699_vm6, %v597_v60  ;;  %v6679_v16 = vrot.slane %v2304_v63, 5  ;;  %v6708_v48 = vpop.permute.xlu1 %1779 }
  0xef   : > { %795 = vst [vmem:[#allocation2 + $0xa4] sm:$0x1] %v794_v3  ;;  %v2710_v44 = vrot.slane %v2708_v6, 4  ;;  %v603_v1 = vshll.u32 %v6573_v18, 16  ;;  %v6682_v55 = vpack.c.bf16 %v275_v58, %v275_v58  ;;  %v2301_v2 = vor.u32 %v6663_v62, %v6660_v57 }
  0xf0   : > { %v998_v13 = vld [vmem:[#allocation2 + $0x90] sm:$0xf]  ;;  %v6684_v19 = vrot.slane %v2291_v32, 4  ;;  %v6690_v22 = vsel %vm6116_vm5, %v5369_v20, %v2708_v6  ;;  %v6692_v24 = vrot.slane %v600_v14, 7  ;;  %v6698_v28 = vpack.c.bf16 %v276_v51, %v276_v51 }
  0xf1   : > { %v1546_v9 = vld [vmem:[#allocation2 + $0x90] sm:$0xe]  ;;  %v999_v10 = vld [vmem:[#allocation2 + $0x94] sm:$0xf]  ;;  %v1000_v26 = vld [vmem:[#allocation2 + $0x98] sm:$0x1]  ;;  %v6696_v18 = vsel %vm6116_vm5, %v2710_v44, %v2711_v0 }
  0xf2   : > { %v1302_v25 = vshrl.u32 %v998_v13, 16  ;;  %v1305_v4 = vshll.u32 %v998_v13, 16  ;;  %v1311_v39 = vshll.u32 %v999_v10, 16  ;;  %v1315_v30 = vshrl.u32 %v999_v10, 16  ;;  %v1547_v34 = vld [vmem:[#allocation2 + $0x94] sm:$0xf] }
  0xf3   : > { %v1321_v31 = vshll.u32 %v1000_v26, 16  ;;  %v5307_v35 = vrot.slane %v1546_v9, 9  ;;  %v1001_v17 = vld [vmem:[#allocation2 + $0x9c] sm:$0xf]  ;;  %v1548_v8 = vld [vmem:[#allocation2 + $0x98] sm:$0x1]  ;;  %v2297_v11 = vsel %vm6131_vm11, %v6684_v19, %v6660_v57  ;;  %v5385_v61 = vcombine.low %v6690_v22, %v6696_v18 }
  0xf4   : > { %v1304_v59 = vrot.slane %v1302_v25, 4  ;;  %v1307_v33 = vrot.slane %v1305_v4, 5  ;;  %v1313_v46 = vrot.slane %v1311_v39, 5  ;;  %v1317_v38 = vrot.slane %v1315_v30, 4  ;;  %v1549_v41 = vld [vmem:[#allocation2 + $0x9c] sm:$0xe] }
  0xf5   : > { %v1323_v5 = vrot.slane %v1321_v31, 5  ;;  %v1326_v40 = vshrl.u32 %v1001_v17, 16  ;;  %v1329_v63 = vshll.u32 %v1001_v17, 16  ;;  %v1695_v20 = vrot.slane %v1547_v34, 5  ;;  %v1002_v52 = vld [vmem:[#allocation2 + $0xa0] sm:$0xf] }
  0xf6   : > { %v1308_v49 = vor.u32 %v1307_v33, %v1304_v59  ;;  %v1698_v53 = vrot.slane %v1548_v8, 5  ;;  %v1318_v43 = vor.u32 %v1317_v38, %v1313_v46  ;;  %v1003_v58 = vld [vmem:[#allocation2 + $0xa4] sm:$0x1]  ;;  %v5308_v0 = vrot.slane %v1549_v41, 9  ;;  %v1550_v44 = vld [vmem:[#allocation2 + $0xa0] sm:$0xf] }
  0xf7   : > { %v1328_v6 = vrot.slane %v1326_v40, 4  ;;  %v6711_v60 = vor.u32 %v603_v1, %v6692_v24  ;;  %v1331_v32 = vrot.slane %v1329_v63, 5  ;;  %v1335_v14 = vshll.u32 %v1002_v52, 16  ;;  %v1551_v31 = vld [vmem:[#allocation2 + $0xa4] sm:$0x1]  ;;  %v6717_v1 = vpop.permute.xlu0 %1449 }
  0xf8   : > { %v1309_v3 = vrot.slane %v1308_v49, 4  ;;  %v1339_v51 = vshrl.u32 %v1002_v52, 16  ;;  %v1319_v13 = vrot.slane %v1318_v43, 4  ;;  %v1345_v9 = vshll.u32 %v1003_v58, 16  ;;  %v2029_v8 = vld [vmem:[#allocation2 + $0x90] sm:$0xf] }
  0xf9   : > { %v1696_v10 = vsel %vm6116_vm5, %v5307_v35, %v1695_v20  ;;  %v1697_v26 = vrot.slane %v1695_v20, 4  ;;  %v1332_v4 = vor.u32 %v1331_v32, %v1328_v6  ;;  %v1337_v39 = vrot.slane %v1335_v14, 5  ;;  %v6723_v35 = vpop.permute.xlu1 %1451  ;;  %v2030_v49 = vld [vmem:[#allocation2 + $0x94] sm:$0xf]  ;;  %v2031_v52 = vld [vmem:[#allocation2 + $0x98] sm:$0x1] }
  0xfa   : > { %v1314_v25 = vsel %vm6131_vm11, %v1309_v3, %v1313_v46  ;;  %v1341_v30 = vrot.slane %v1339_v51, 4  ;;  %v1324_v34 = vsel %vm6131_vm11, %v1319_v13, %v1323_v5  ;;  %v1347_v59 = vrot.slane %v1345_v9, 5  ;;  %v2573_v32 = vld [vmem:[#allocation2 + $0x90] sm:$0xe] }
  0xfb   : > { %v1699_v33 = vsel %vm6116_vm5, %v1697_v26, %v1698_v53  ;;  %v1702_v17 = vrot.slane %v1550_v44, 5  ;;  %v5291_v38 = vcombine.low %v1314_v25, %v1324_v34  ;;  %v1333_v40 = vrot.slane %v1332_v4, 4  ;;  %v2575_v44 = vld [vmem:[#allocation2 + $0x98] sm:$0x1]  ;;  %v6745_v25 = vpop.permute.xlu0 %2476 }
  0xfc   : > { %v1342_v46 = vor.u32 %v1341_v30, %v1337_v39  ;;  %v5323_v41 = vcombine.low %v1696_v10, %v1699_v33  ;;  %v1705_v43 = vrot.slane %v1551_v31, 5  ;;  %v2302_v5 = vrot.slane %v2301_v2, 4  ;;  %v2574_v2 = vld [vmem:[#allocation2 + $0x94] sm:$0xf] }
  0xfd   : > { %v1703_v63 = vsel %vm6116_vm5, %v5308_v0, %v1702_v17  ;;  %v1704_v20 = vrot.slane %v1702_v17, 4  ;;  %1469 = vrot.lane.b32.xlu0 %v5291_v38, %s6014_s23  ;;  %v1338_v53 = vsel %vm6131_vm11, %v1333_v40, %v1337_v39  ;;  %v2309_v6 = vshrl.u32 %v2029_v8, 16  ;;  %v6747_v31 = vpop.permute.xlu1 %2478 }
  0xfe   : > { %v1343_v58 = vrot.slane %v1342_v46, 4  ;;  %v2312_v3 = vshll.u32 %v2029_v8, 16  ;;  %v2307_v0 = vsel %vm6131_vm11, %v2302_v5, %v6679_v16  ;;  %v2318_v51 = vshll.u32 %v2030_v49, 16  ;;  %v796_v8 = vld [vmem:[#allocation2 + $0xa8] sm:$0xf] }
  0xff   : > { %v1706_v14 = vsel %vm6116_vm5, %v1704_v20, %v1705_v43  ;;  %v2322_v62 = vshrl.u32 %v2030_v49, 16  ;;  %v5353_v10 = vcombine.low %v2297_v11, %v2307_v0  ;;  %v2311_v26 = vrot.slane %v2309_v6, 4  ;;  %v6767_v6 = vpop.permute.xlu0 %1453  ;;  %v800_v0 = vld [vmem:[#allocation2 + $0xb0] sm:$0x1] }
 0x100   : > { %v1348_v13 = vsel %vm6131_vm11, %v1343_v58, %v1347_v59  ;;  %v5324_v9 = vcombine.low %v1703_v63, %v1706_v14  ;;  %v2314_v39 = vrot.slane %v2312_v3, 5  ;;  %v2320_v16 = vrot.slane %v2318_v51, 5  ;;  %v803_v51 = vld [vmem:[#allocation2 + $0xb4] sm:$0xf] }
 0x101   : > { %v5292_v4 = vcombine.low %v1338_v53, %v1348_v13  ;;  %v2324_v30 = vrot.slane %v2322_v62, 4  ;;  %1793 = vrot.lane.b32.xlu0 %v5323_v41, %s6013_s22  ;;  %v2328_v34 = vshll.u32 %v2031_v52, 16  ;;  %v5370_v59 = vrot.slane %v2573_v32, 9  ;;  %v6775_v62 = vpop.permute.xlu1 %1455 }
 0x102   : > { %v2715_v33 = vrot.slane %v2574_v2, 5  ;;  %v2718_v17 = vrot.slane %v2575_v44, 5  ;;  %v2315_v57 = vor.u32 %v2314_v39, %v2311_v26  ;;  %v606_v11 = vrot.slane %v6692_v24, 4 }
 0x103   : > { %1471 = vrot.lane.b32.xlu1 %v5292_v4, %s6014_s23  ;;  %v2325_v19 = vor.u32 %v2324_v30, %v2320_v16  ;;  %v608_v38 = vshrl.u32 %v6665_v12, 16  ;;  %v2330_v40 = vrot.slane %v2328_v34, 5  ;;  %v611_v41 = vshll.u32 %v6665_v12, 16  ;;  %v2032_v12 = vld [vmem:[#allocation2 + $0x9c] sm:$0xf] }
 0x104   : > { %v6755_v46 = vsel %vm6116_vm5, %v5370_v59, %v2715_v33  ;;  %v2717_v49 = vrot.slane %v2715_v33, 4  ;;  %v2316_v63 = vrot.slane %v2315_v57, 4  ;;  %v797_v5 = vsel %vm6144_vm15, %v6711_v60, %v796_v8  ;;  %v807_v4 = vld [vmem:[#allocation2 + $0xbc] sm:$0x1] }
 0x105   : > { %v2326_v20 = vrot.slane %v2325_v19, 4  ;;  %v610_v43 = vrot.slane %v608_v38, 7  ;;  %2496 = vrot.lane.b32.xlu0 %v5353_v10, %s6014_s23  ;;  %798 = vst [vmem:[#allocation2 + $0xa8] sm:$0xf] %v797_v5  ;;  %v617_v52 = vshrl.u32 %v6682_v55, 16  ;;  %v620_v53 = vshll.u32 %v6682_v55, 16  ;;  %v6793_v38 = vpop.permute.xlu0 %2480 }
 0x106   : > { %v2719_v24 = vsel %vm6116_vm5, %v2717_v49, %v2718_v17  ;;  %v625_v58 = vshrl.u32 %v6698_v28, 16  ;;  %v2321_v60 = vsel %vm6131_vm11, %v2316_v63, %v2320_v16  ;;  %v2033_v10 = vld [vmem:[#allocation2 + $0xa0] sm:$0xf]  ;;  %v628_v26 = vshll.u32 %v6698_v28, 16  ;;  %v2034_v17 = vld [vmem:[#allocation2 + $0xa4] sm:$0x1] }
 0x107   : > { %1795 = vrot.lane.b32.xlu1 %v5324_v9, %s6013_s22  ;;  %v2331_v3 = vsel %vm6131_vm11, %v2326_v20, %v2330_v40  ;;  %v5386_v32 = vcombine.low %v6755_v46, %v2719_v24  ;;  %v613_v14 = vor.u32 %v611_v41, %v610_v43  ;;  %v615_v2 = vrot.slane %v610_v43, 4  ;;  %v6799_v43 = vpop.permute.xlu1 %2482 }
 0x108   : > { %v5354_v55 = vcombine.low %v2321_v60, %v2331_v3  ;;  %v619_v44 = vrot.slane %v617_v52, 7  ;;  %v627_v13 = vrot.slane %v625_v58, 7  ;;  %v2333_v39 = vshrl.u32 %v2032_v12, 16  ;;  %7910 = vst [vmem:[#allocation14_spill] sm:$0xff] %v6799_v43  ;;  %v278_v58 = vld [vmem:[%s6057_s21 + $0xf8] sm:$0xff] }
 0x109   : > { %v614_v9 = vsel %vm6138_vm14, %v606_v11, %v613_v14  ;;  %v2336_v16 = vshll.u32 %v2032_v12, 16  ;;  %2816 = vrot.lane.b32.xlu0 %v5385_v61, %s6013_s22  ;;  %v801_v30 = vsel %vm6154_vm0, %v615_v2, %v800_v0  ;;  %v2342_v19 = vshll.u32 %v2033_v10, 16  ;;  %v277_v11 = vld [vmem:[%s6057_s21 + $0xf0] sm:$0xff] }
 0x10a   : > { %799 = vst.msk [vmem:[#allocation2 + $0xac] sm:$0xf] %vm699_vm6, %v614_v9  ;;  %v622_v34 = vor.u32 %v620_v53, %v619_v44  ;;  %v623_v59 = vrot.slane %v619_v44, 4  ;;  %v632_v33 = vrot.slane %v627_v13, 4  ;;  %802 = vst [vmem:[#allocation2 + $0xb0] sm:$0x1] %v801_v30  ;;  %v630_v28 = vor.u32 %v628_v26, %v627_v13 }
 0x10b   : > { %2498 = vrot.lane.b32.xlu1 %v5354_v55, %s6014_s23  ;;  %v2335_v8 = vrot.slane %v2333_v39, 4  ;;  %v2338_v57 = vrot.slane %v2336_v16, 5  ;;  %v2346_v61 = vshrl.u32 %v2033_v10, 16  ;;  %v6797_v63 = vrot.slane %v2342_v19, 5 }
 0x10c   : > { %v804_v22 = vsel %vm6144_vm15, %v622_v34, %v803_v51  ;;  %v808_v18 = vsel %vm6154_vm0, %v632_v33, %v807_v4  ;;  %v1004_v40 = vld [vmem:[#allocation2 + $0xa8] sm:$0xf]  ;;  %v631_v46 = vsel %vm6138_vm14, %v623_v59, %v630_v28  ;;  %v2352_v20 = vshll.u32 %v2034_v17, 16  ;;  %v6821_v34 = vpop.permute.xlu0 %2800 }
 0x10d   : > { %805 = vst [vmem:[#allocation2 + $0xb4] sm:$0xf] %v804_v22  ;;  %809 = vst [vmem:[#allocation2 + $0xbc] sm:$0x1] %v808_v18  ;;  %v1552_v49 = vld [vmem:[#allocation2 + $0xa8] sm:$0xe]  ;;  %v2339_v41 = vor.u32 %v2338_v57, %v2335_v8  ;;  %v6813_v10 = vpack.c.bf16 %v277_v11, %v277_v11  ;;  %v6815_v9 = vpack.c.bf16 %v278_v58, %v278_v58  ;;  %v6823_v8 = vpop.permute.xlu1 %2802 }
 0x10e   : > { %v1350_v5 = vshrl.u32 %v1004_v40, 16  ;;  %v1353_v24 = vshll.u32 %v1004_v40, 16  ;;  %806 = vst.msk [vmem:[#allocation2 + $0xb8] sm:$0xf] %vm699_vm6, %v631_v46  ;;  %v2348_v52 = vrot.slane %v2346_v61, 4  ;;  %v5309_v12 = vrot.slane %v1552_v49, 9 }
 0x10f   : > { %v6802_v53 = vld [vmem:[#allocation2 + $0xa8] sm:$0xf]  ;;  %2818 = vrot.lane.b32.xlu1 %v5386_v32, %s6013_s22  ;;  %v6806_v60 = vrot.slane %v2339_v41, 4  ;;  %v6810_v44 = vrot.slane %v2352_v20, 5  ;;  %7911 = vst [vmem:[#allocation15_spill] sm:$0xff] %v6821_v34  ;;  %7912 = vst [vmem:[#allocation16_spill] sm:$0xff] %v6823_v8 }
 0x110   : > { %v1352_v3 = vrot.slane %v1350_v5, 4  ;;  %v1355_v14 = vrot.slane %v1353_v24, 5  ;;  %v2349_v0 = vor.u32 %v2348_v52, %v6797_v63  ;;  %v2357_v51 = vshrl.u32 %v6802_v53, 16  ;;  %v5880_v8 = vld [vmem:[#allocation2 + $0x84] sm:$0xff]  }
 0x111   : > { %v1005_v55 = vld [vmem:[#allocation2 + $0xac] sm:$0xf]  ;;  %v1006_v32 = vld [vmem:[#allocation2 + $0xb0] sm:$0x1]  ;;  %vm945_vm3 = vcmask 31744   ;;  %vm2884_vm4 = vcmask 97280  }
 0x112   : > { %v1553_v2 = vld [vmem:[#allocation2 + $0xac] sm:$0xf]  ;;  %v1356_v26 = vor.u32 %v1355_v14, %v1352_v3  ;;  %v1359_v4 = vshll.u32 %v1005_v55, 16  ;;  %v1363_v39 = vshrl.u32 %v1005_v55, 16  ;;  %v1554_v16 = vld [vmem:[#allocation2 + $0xb0] sm:$0x1] }
 0x113   : > { %v1369_v59 = vshll.u32 %v1006_v32, 16  ;;  %v1709_v33 = vrot.slane %v1553_v2, 5  ;;  %v1712_v17 = vrot.slane %v1554_v16, 5  ;;  %v2350_v28 = vrot.slane %v2349_v0, 4  ;;  %956 = vst.msk [vmem:[#allocation3 + $0x50] sm:$0xff] %vm945_vm3, %v5879_v42  ;;  %957 = vst.msk [vmem:[#allocation3 + $0x58] sm:$0xff] %vm945_vm3, %v5880_v8 }
 0x114   : > { %v1357_v57 = vrot.slane %v1356_v26, 4  ;;  %v1361_v19 = vrot.slane %v1359_v4, 5  ;;  %v1365_v22 = vrot.slane %v1363_v39, 4  ;;  %v1007_v18 = vld [vmem:[#allocation2 + $0xb4] sm:$0xf]  ;;  %v6825_v61 = vrot.slane %v2357_v51, 4 }
 0x115   : > { %v1371_v11 = vrot.slane %v1369_v59, 5  ;;  %v1008_v40 = vld [vmem:[#allocation2 + $0xb8] sm:$0xf]  ;;  %v1009_v46 = vld [vmem:[#allocation2 + $0xbc] sm:$0x1]  ;;  %v1374_v49 = vshrl.u32 %v1007_v18, 16  ;;  %v6829_v41 = vsel %vm6116_vm5, %v5309_v12, %v1709_v33  ;;  %v2355_v20 = vsel %vm6131_vm11, %v2350_v28, %v6810_v44  ;;  %v6836_v44 = vpop.permute.xlu0 %1457 }
 0x116   : > { %v1362_v5 = vsel %vm6131_vm11, %v1357_v57, %v1361_v19  ;;  %v1366_v24 = vor.u32 %v1365_v22, %v1361_v19  ;;  %v1377_v52 = vshll.u32 %v1007_v18, 16  ;;  %v1383_v58 = vshll.u32 %v1008_v40, 16  ;;  %v1555_v3 = vld [vmem:[#allocation2 + $0xb4] sm:$0xe]  ;;  %v1556_v14 = vld [vmem:[#allocation2 + $0xb8] sm:$0xf]  ;;  %v6842_v22 = vpop.permute.xlu1 %1459 }
 0x117   : > { %v1376_v0 = vrot.slane %v1374_v49, 4  ;;  %v1387_v51 = vshrl.u32 %v1008_v40, 16  ;;  %v1393_v55 = vshll.u32 %v1009_v46, 16  ;;  %v1711_v2 = vrot.slane %v1709_v33, 4  ;;  %v1557_v32 = vld [vmem:[#allocation2 + $0xbc] sm:$0x1] }
 0x118   : > { %v1367_v12 = vrot.slane %v1366_v24, 4  ;;  %v1379_v26 = vrot.slane %v1377_v52, 5  ;;  %v1385_v4 = vrot.slane %v1383_v58, 5  ;;  %v5310_v39 = vrot.slane %v1555_v3, 9  ;;  %v2036_v19 = vld [vmem:[#allocation2 + $0xac] sm:$0xf] }
 0x119   : > { %v1389_v16 = vrot.slane %v1387_v51, 4  ;;  %v1395_v59 = vrot.slane %v1393_v55, 5  ;;  %v6840_v28 = vsel %vm6116_vm5, %v1711_v2, %v1712_v17  ;;  %v1716_v57 = vrot.slane %v1556_v14, 5  ;;  %v2037_v49 = vld [vmem:[#allocation2 + $0xb0] sm:$0x1]  ;;  %v5859_v24 = vld [vmem:[#allocation2] sm:$0xff]   ;;  %v1782_v43 = vpop.permute.xlu0 %1781 }
 0x11a   : > { %v1372_v33 = vsel %vm6131_vm11, %v1367_v12, %v1371_v11  ;;  %v1380_v18 = vor.u32 %v1379_v26, %v1376_v0  ;;  %v1719_v46 = vrot.slane %v1557_v32, 5  ;;  %v5860_v52 = vld [vmem:[#allocation2 + $0xc] sm:$0xff]   ;;  %v5861_v58 = vld [vmem:[#allocation2 + $0x24] sm:$0xff]   ;;  %v5862_v3 = vld [vmem:[#allocation2 + $0x18] sm:$0xff]   ;;  %v7913_v40 = vsel %vm6131_vm11, %v6806_v60, %v6797_v63  ;;  %946 = vst.msk [vmem:[#allocation3] sm:$0xff] %vm945_vm3, %v5859_v24 }
 0x11b   : > { %v5866_v51 = vld [vmem:[#allocation2 + $0x3c] sm:$0xff]   ;;  %v5867_v17 = vld [vmem:[#allocation2 + $0x30] sm:$0xff]   ;;  %v5871_v55 = vld [vmem:[#allocation2 + $0x48] sm:$0xff]   ;;  %v5293_v2 = vcombine.low %v1362_v5, %v1372_v33  ;;  %v1390_v13 = vor.u32 %v1389_v16, %v1385_v4  ;;  %v6850_v30 = vsel %vm6116_vm5, %v5310_v39, %v1716_v57  ;;  %v1718_v11 = vrot.slane %v1716_v57, 4  ;;  %947 = vst.msk [vmem:[#allocation3 + $0x8] sm:$0xff] %vm945_vm3, %v5860_v52 }
 0x11c   : > { %v5872_v14 = vld [vmem:[#allocation2 + $0x54] sm:$0xff]   ;;  %v6852_v0 = vld [vmem:[#allocation2 + $0x9c] sm:$0xe]  ;;  %v6854_v12 = vld [vmem:[#allocation2 + $0xa0] sm:$0xf]  ;;  %v1381_v26 = vrot.slane %v1380_v18, 4  ;;  %v6861_v56 = vcombine.low %v7913_v40, %v2355_v20 }
 0x11d   : > { %v5875_v32 = vld [vmem:[#allocation2 + $0x60] sm:$0xff]   ;;  %v7914_v5 = vshll.u32 %v6802_v53, 16  ;;  %v2366_v33 = vshll.u32 %v2036_v19, 16  ;;  %v5876_v57 = vld [vmem:[#allocation2 + $0x6c] sm:$0xff]   ;;  %1473 = vrot.lane.b32.xlu0 %v5293_v2, %s6014_s23  ;;  %v1391_v47 = vrot.slane %v1390_v13, 4  ;;  %v6870_v18 = vsel %vm6116_vm5, %v1718_v11, %v1719_v46  ;;  %949 = vst.msk [vmem:[#allocation3 + $0x18] sm:$0xff] %vm945_vm3, %v5861_v58 }
 0x11e   : > { %v6865_v39 = vld [vmem:[#allocation2 + $0xa4] sm:$0x1]  ;;  %v2370_v34 = vshrl.u32 %v2036_v19, 16  ;;  %v2376_v63 = vshll.u32 %v2037_v49, 16  ;;  %v6872_v60 = vld [vmem:[#allocation2 + $0xa8] sm:$0xe]  ;;  %v1386_v53 = vsel %vm6131_vm11, %v1381_v26, %v1385_v4  ;;  %v1784_v4 = vpop.permute.xlu1 %1783 }
 0x11f   : > { %v2362_v16 = vrot.slane %v7914_v5, 5  ;;  %v6879_v5 = vrot.slane %v2366_v33, 5  ;;  %v2580_v2 = vld [vmem:[#allocation2 + $0xac] sm:$0xf]  ;;  %v6881_v13 = vld [vmem:[#allocation2 + $0xb0] sm:$0x1]  ;;  %v1396_v19 = vsel %vm6131_vm11, %v1391_v47, %v1395_v59 }
 0x120   : > { %v2372_v46 = vrot.slane %v2370_v34, 4  ;;  %v6885_v49 = vrot.slane %v2376_v63, 5  ;;  %v6887_v11 = vld [vmem:[#allocation2 + $0xb4] sm:$0xf]  ;;  %v5294_v20 = vcombine.low %v1386_v53, %v1396_v19  ;;  %v6894_v33 = vld [vmem:[#allocation2 + $0xb8] sm:$0xf]  ;;  %v7915_v34 = vcombine.low %v6829_v41, %v6840_v28  ;;  %v6964_v41 = vpop.permute.xlu0 %2484 }
 0x121   : > { %v2363_v40 = vor.u32 %v2362_v16, %v6825_v61  ;;  %v5884_v26 = vld [vmem:[#allocation2 + $0x90] sm:$0xff]   ;;  %v5371_v61 = vrot.slane %v6852_v0, 9  ;;  %v2722_v16 = vrot.slane %v6854_v12, 5  ;;  %948 = vst.msk [vmem:[#allocation3 + $0x10] sm:$0xff] %vm945_vm3, %v5862_v3  ;;  %951 = vst.msk [vmem:[#allocation3 + $0x28] sm:$0xff] %vm945_vm3, %v5866_v51  ;;  %v5885_v47 = vld [vmem:[#allocation2 + $0x9c] sm:$0xff]   ;;  %v7916_v12 = vcombine.low %v6850_v30, %v6870_v18 }
 0x122   : > { %950 = vst.msk [vmem:[#allocation3 + $0x20] sm:$0xff] %vm945_vm3, %v5867_v17  ;;  %952 = vst.msk [vmem:[#allocation3 + $0x30] sm:$0xff] %vm945_vm3, %v5871_v55  ;;  %1797 = vrot.lane.b32.xlu0 %v7915_v34, %s6013_s22  ;;  %v2373_v59 = vor.u32 %v2372_v46, %v6879_v5  ;;  %v2725_v24 = vrot.slane %v6865_v39, 5  ;;  %v5372_v52 = vrot.slane %v6872_v60, 9  ;;  %v2729_v58 = vrot.slane %v2580_v2, 5  ;;  %1475 = vrot.lane.b32.xlu1 %v5294_v20, %s6014_s23  ;;  %v5869_v8 = vld [vmem:[#allocation2 + $0x24] sm:$0xff]  }
 0x123   : > { %v6889_v29 = vrot.slane %v2363_v40, 4  ;;  %953 = vst.msk [vmem:[#allocation3 + $0x38] sm:$0xff] %vm945_vm3, %v5872_v14  ;;  %954 = vst.msk [vmem:[#allocation3 + $0x40] sm:$0xff] %vm945_vm3, %v5875_v32  ;;  %v5870_v17 = vld [vmem:[#allocation2 + $0x30] sm:$0xff]   ;;  %v5873_v55 = vld [vmem:[#allocation2 + $0x3c] sm:$0xff]   ;;  %v6975_v14 = vpop.permute.xlu1 %2486  ;;  %v637_v30 = vshll.u32 %v6813_v10, 16 }
 0x124   : > { %955 = vst.msk [vmem:[#allocation3 + $0x48] sm:$0xff] %vm945_vm3, %v5876_v57  ;;  %958 = vst.msk [vmem:[#allocation3 + $0x60] sm:$0xff] %vm945_vm3, %v5884_v26  ;;  %v5889_v0 = vld [vmem:[#allocation2 + $0xb4] sm:$0xff]   ;;  %v6992_v18 = vld [vmem:[#allocation2 + $0xbc] sm:$0x1]  ;;  %v645_v19 = vshll.u32 %v6815_v9, 16 }
 0x125   : > { %1494 = vst.msk [vmem:[#allocation3] sm:$0xff] %vm1493_vm1, %v6597_v23  ;;  %1495 = vst.msk [vmem:[#allocation3 + $0x8] sm:$0xff] %vm1493_vm1, %v6706_v21  ;;  %v2369_v42 = vsel %vm6131_vm11, %v6889_v29, %v6879_v5  ;;  %v2723_v23 = vsel %vm6116_vm5, %v5371_v61, %v2722_v16  ;;  %v2724_v21 = vrot.slane %v2722_v16, 4  ;;  %v2731_v29 = vrot.slane %v2729_v58, 4  ;;  %v2582_v63 = vld [vmem:[#allocation2 + $0xb4] sm:$0xe] }
 0x126   : > { %1497 = vst.msk [vmem:[#allocation3 + $0x18] sm:$0xff] %vm1493_vm1, %v6723_v35  ;;  %1496 = vst.msk [vmem:[#allocation3 + $0x10] sm:$0xff] %vm1493_vm1, %v6717_v1  ;;  %v2732_v1 = vrot.slane %v6881_v13, 5  ;;  %v2390_v35 = vshll.u32 %v6894_v33, 16  ;;  %2500 = vrot.lane.b32.xlu0 %v6861_v56, %s6014_s23  ;;  %1799 = vrot.lane.b32.xlu1 %v7916_v12, %s6013_s22  ;;  %v6985_v60 = vld [vmem:[#allocation2 + $0xb8] sm:$0xf] }
 0x127   : > { %1499 = vst.msk [vmem:[#allocation3 + $0x28] sm:$0xff] %vm1493_vm1, %v6775_v62  ;;  %1498 = vst.msk [vmem:[#allocation3 + $0x20] sm:$0xff] %vm1493_vm1, %v6767_v6  ;;  %v2394_v6 = vshrl.u32 %v6894_v33, 16  ;;  %v5864_v62 = vld [vmem:[#allocation2 + $0x18] sm:$0xff]   ;;  %v634_v5 = vshrl.u32 %v6813_v10, 16  ;;  %v642_v13 = vshrl.u32 %v6815_v9, 16 }
 0x128   : > { %1500 = vst.msk [vmem:[#allocation3 + $0x30] sm:$0xff] %vm1493_vm1, %v6836_v44  ;;  %1501 = vst.msk [vmem:[#allocation3 + $0x38] sm:$0xff] %vm1493_vm1, %v6842_v22  ;;  %v5888_v44 = vld [vmem:[#allocation2 + $0xa8] sm:$0xff]   ;;  %v6973_v3 = vsel %vm6116_vm5, %v2731_v29, %v2732_v1  ;;  %v6983_v57 = vrot.slane %v2390_v35, 5  ;;  %v6987_v53 = vld [vmem:[#allocation2 + $0x18] sm:$0xf] }
 0x129   : > { %1818 = vst.msk [vmem:[#allocation3] sm:$0xff] %vm1817_vm2, %v6599_v27  ;;  %1819 = vst.msk [vmem:[#allocation3 + $0x8] sm:$0xff] %vm1817_vm2, %v6621_v37  ;;  %v2374_v27 = vrot.slane %v2373_v59, 4  ;;  %v6956_v37 = vsel %vm6116_vm5, %v5372_v52, %v2729_v58  ;;  %v2396_v20 = vrot.slane %v2394_v6, 4  ;;  %v6997_v46 = vld [vmem:[#allocation2 + $0xc0] sm:$0xf] }
 0x12a   : > { %1821 = vst.msk [vmem:[#allocation3 + $0x18] sm:$0xff] %vm1817_vm2, %v6648_v54  ;;  %1820 = vst.msk [vmem:[#allocation3 + $0x10] sm:$0xff] %vm1817_vm2, %v6616_v50  ;;  %v2381_v50 = vshrl.u32 %v6887_v11, 16  ;;  %v2726_v54 = vsel %vm6116_vm5, %v2724_v21, %v2725_v24  ;;  %v5388_v32 = vcombine.low %v6956_v37, %v6973_v3  ;;  %v636_v61 = vrot.slane %v634_v5, 7  ;;  %v814_v16 = vld [vmem:[#allocation2 + $0xc8] sm:$0x1]  ;;  %v2805_v21 = vpop.permute.xlu0 %2804 }
 0x12b   : > { %1823 = vst.msk [vmem:[#allocation3 + $0x28] sm:$0xff] %vm1817_vm2, %v6708_v48  ;;  %1822 = vst.msk [vmem:[#allocation3 + $0x20] sm:$0xff] %vm1817_vm2, %v6667_v45  ;;  %v2040_v48 = vld [vmem:[#allocation2 + $0xbc] sm:$0x1]  ;;  %v2384_v45 = vshll.u32 %v6887_v11, 16  ;;  %v2379_v28 = vsel %vm6131_vm11, %v2374_v27, %v6885_v49  ;;  %v5387_v22 = vcombine.low %v2723_v23, %v2726_v54  ;;  %v5874_v49 = vld [vmem:[#allocation2 + $0x48] sm:$0xff]   ;;  %v2397_v26 = vor.u32 %v2396_v20, %v6983_v57 }
 0x12c   : > { %1824 = vst.msk [vmem:[#allocation3 + $0x30] sm:$0xff] %vm1817_vm2, %v1782_v43  ;;  %1825 = vst.msk [vmem:[#allocation3 + $0x38] sm:$0xff] %vm1817_vm2, %v1784_v4  ;;  %v5865_v43 = vld [vmem:[#allocation2 + $0xc] sm:$0xff]   ;;  %v2383_v51 = vrot.slane %v2381_v50, 4  ;;  %v5356_v56 = vcombine.low %v2369_v42, %v2379_v28  ;;  %v2400_v40 = vshll.u32 %v2040_v48, 16  ;;  %v5877_v11 = vld [vmem:[#allocation2 + $0x54] sm:$0xff]   ;;  %v639_v27 = vor.u32 %v637_v30, %v636_v61  ;;  %v2807_v48 = vpop.permute.xlu1 %2806 }
 0x12d   : > { %959 = vst.msk [vmem:[#allocation3 + $0x68] sm:$0xff] %vm945_vm3, %v5885_v47  ;;  %v2386_v39 = vrot.slane %v2384_v45, 5  ;;  %960 = vst.msk [vmem:[#allocation3 + $0x70] sm:$0xff] %vm945_vm3, %v5888_v44  ;;  %v5878_v4 = vld [vmem:[#allocation2 + $0x60] sm:$0xff]   ;;  %2820 = vrot.lane.b32.xlu0 %v5387_v22, %s6013_s22  ;;  %v5373_v47 = vrot.slane %v2582_v63, 9  ;;  %v644_v24 = vrot.slane %v642_v13, 7 }
 0x12e   : > { %961 = vst.msk [vmem:[#allocation3 + $0x78] sm:$0xff] %vm945_vm3, %v5889_v0  ;;  %v2402_v10 = vrot.slane %v2400_v40, 5  ;;  %2502 = vrot.lane.b32.xlu1 %v5356_v56, %s6014_s23  ;;  %v2736_v52 = vrot.slane %v6985_v60, 5  ;;  %v2739_v58 = vrot.slane %v6992_v18, 5  ;;  %v2398_v1 = vrot.slane %v2397_v26, 4  ;;  %v7918_v44 = vld [vmem:[#allocation14_spill] sm:$0xff] }
 0x12f   : > { %v2387_v2 = vor.u32 %v2386_v39, %v2383_v51  ;;  %v640_v29 = vrot.slane %v636_v61, 4  ;;  %v3509_v50 = vshrl.u32 %v6987_v53, 16  ;;  %v647_v6 = vor.u32 %v645_v19, %v644_v24  ;;  %v7919_v28 = vld [vmem:[#allocation15_spill] sm:$0xff]  ;;  %v7921_v56 = vld [vmem:[#allocation16_spill] sm:$0xff]  ;;  %v7073_v13 = vld [vmem:[#allocation2 + $0x1c] sm:$0xf] }
 0x130   : > { %v1834_v33 = vld [vmem:[#allocation3] sm:$0xff]  ;;  %v7001_v34 = vld [vmem:[#allocation3 + $0x8] sm:$0xff]  ;;  %v811_v51 = vsel %vm6144_vm15, %v639_v27, %v6997_v46  ;;  %v3464_v12 = vld [vmem:[#allocation2 + $0x28] sm:$0xf]  ;;  %v3512_v20 = vshll.u32 %v6987_v53, 16  ;;  %vm4817_vm7 = vcmask 1041408  }
 0x131   : > { %v7003_v59 = vld [vmem:[#allocation3 + $0x10] sm:$0xff]  ;;  %v2388_v9 = vrot.slane %v2387_v2, 4  ;;  %5665 = vmatprep.mubr.msk.bf16.mxu0 %vm2884_vm4, %v1834_v33  ;;  %1981 = vst.msk [vmem:[#allocation3 + $0x8] sm:$0xff] %vm945_vm3, %v5864_v62  ;;  %1980 = vst.msk [vmem:[#allocation3] sm:$0xff] %vm945_vm3, %v5865_v43  ;;  %v7012_v42 = vld [vmem:[#allocation3 + $0x18] sm:$0xff]  ;;  %v3542_v46 = vshll.u32 %v3464_v12, 16 }
 0x132   : > { %1982 = vst.msk [vmem:[#allocation3 + $0x10] sm:$0xff] %vm945_vm3, %v5869_v8  ;;  %v7014_v23 = vld [vmem:[#allocation3 + $0x20] sm:$0xff]  ;;  %1983 = vst.msk [vmem:[#allocation3 + $0x18] sm:$0xff] %vm945_vm3, %v5870_v17  ;;  %v7024_v54 = vld [vmem:[#allocation3 + $0x28] sm:$0xff]  ;;  %v2738_v17 = vrot.slane %v2736_v52, 4  ;;  %2822 = vrot.lane.b32.xlu1 %v5388_v32, %s6013_s22  ;;  %v3514_v30 = vrot.slane %v3512_v20, 5 }
 0x133   : > { %2525 = vst.msk [vmem:[#allocation3 + $0x8] sm:$0xff] %vm1493_vm1, %v6747_v31  ;;  %2524 = vst.msk [vmem:[#allocation3] sm:$0xff] %vm1493_vm1, %v6745_v25  ;;  %v7027_v45 = vld [vmem:[#allocation3 + $0x30] sm:$0xff]  ;;  %v7029_v35 = vld [vmem:[#allocation3 + $0x38] sm:$0xff]  ;;  %v2393_v31 = vsel %vm6131_vm11, %v2388_v9, %v6983_v57  ;;  %v649_v25 = vrot.slane %v644_v24, 4  ;;  %v648_v57 = vsel %vm6138_vm14, %v640_v29, %v647_v6  ;;  %v3546_v61 = vshrl.u32 %v3464_v12, 16 }
 0x134   : > { %2526 = vst.msk [vmem:[#allocation3 + $0x10] sm:$0xff] %vm1493_vm1, %v6793_v38  ;;  %v2737_v38 = vsel %vm6116_vm5, %v5373_v47, %v2736_v52  ;;  %v3461_v62 = vld [vmem:[#allocation2 + $0x1c] sm:$0xf]  ;;  %v3462_v43 = vld [vmem:[#allocation2 + $0x20] sm:$0x1]  ;;  %v7917_v8 = vld [vmem:[#allocation13_spill] sm:$0xff]  ;;  %v2740_v37 = vsel %vm6116_vm5, %v2738_v17, %v2739_v58 }
 0x135   : > { %1984 = vst.msk [vmem:[#allocation3 + $0x20] sm:$0xff] %vm945_vm3, %v5873_v55  ;;  %1985 = vst.msk [vmem:[#allocation3 + $0x28] sm:$0xff] %vm945_vm3, %v5874_v49  ;;  %v3511_v55 = vrot.slane %v3509_v50, 4  ;;  %v3463_v0 = vld [vmem:[#allocation2 + $0x24] sm:$0xf]  ;;  %v815_v60 = vsel %vm6154_vm0, %v649_v25, %v814_v16  ;;  %v3518_v3 = vshll.u32 %v3461_v62, 16  ;;  %v5389_v5 = vcombine.low %v2737_v38, %v2740_v37 }
 0x136   : > { %2845 = vst.msk [vmem:[#allocation3 + $0x8] sm:$0xff] %vm1817_vm2, %v6675_v15  ;;  %2844 = vst.msk [vmem:[#allocation3] sm:$0xff] %vm1817_vm2, %v7917_v8  ;;  %v2403_v15 = vsel %vm6131_vm11, %v2398_v1, %v2402_v10  ;;  %v3465_v40 = vld [vmem:[#allocation2 + $0x2c] sm:$0x1]  ;;  %v3528_v32 = vshll.u32 %v3462_v43, 16  ;;  %v3533_v18 = vshrl.u32 %v3463_v0, 16 }
 0x137   : > { %2527 = vst.msk [vmem:[#allocation3 + $0x18] sm:$0xff] %vm1493_vm1, %v7918_v44  ;;  %2528 = vst.msk [vmem:[#allocation3 + $0x20] sm:$0xff] %vm1493_vm1, %v6964_v41  ;;  %v5357_v41 = vcombine.low %v2393_v31, %v2403_v15  ;;  %v3536_v2 = vshll.u32 %v3463_v0, 16  ;;  %v3520_v53 = vrot.slane %v3518_v3, 5  ;;  %v4004_v49 = vld [vmem:[#allocation2 + $0x18] sm:$0xe] }
 0x138   : > { %2846 = vst.msk [vmem:[#allocation3 + $0x10] sm:$0xff] %vm1817_vm2, %v7919_v28  ;;  %2847 = vst.msk [vmem:[#allocation3 + $0x18] sm:$0xff] %vm1817_vm2, %v7921_v56  ;;  %v3535_v26 = vrot.slane %v3533_v18, 4  ;;  %v3530_v33 = vrot.slane %v3528_v32, 5  ;;  %v7076_v47 = vrot.slane %v3542_v46, 5  ;;  %v3552_v9 = vshll.u32 %v3465_v40, 16 }
 0x139   : > { %1986 = vst.msk [vmem:[#allocation3 + $0x30] sm:$0xff] %vm945_vm3, %v5877_v11  ;;  %1987 = vst.msk [vmem:[#allocation3 + $0x38] sm:$0xff] %vm945_vm3, %v5878_v4  ;;  %2504 = vrot.lane.b32.xlu0 %v5357_v41, %s6014_s23  ;;  %v1462_v11 = vpop.permute.xlu0 %1461  ;;  %v3515_v4 = vor.u32 %v3514_v30, %v3511_v55  ;;  %v3538_v10 = vrot.slane %v3536_v2, 5  ;;  %v3548_v58 = vrot.slane %v3546_v61, 4  ;;  %v4102_v1 = vrot.slane %v7073_v13, 5  ;;  %v1464_v55 = vpop.permute.xlu1 %1463  ;;  %v5882_v2 = vld [vmem:[#allocation2 + $0x6c] sm:$0xff]  }
 0x13a   : > { %2529 = vst.msk [vmem:[#allocation3 + $0x28] sm:$0xff] %vm1493_vm1, %v6975_v14  ;;  %812 = vst [vmem:[#allocation2 + $0xc0] sm:$0xf] %v811_v51  ;;  %v3522_v14 = vshrl.u32 %v3461_v62, 16  ;;  %v3554_v31 = vrot.slane %v3552_v9, 5  ;;  %v5894_v9 = vld [vmem:[#allocation2 + $0x18] sm:$0xff]  }
 0x13b   : > { %2848 = vst.msk [vmem:[#allocation3 + $0x20] sm:$0xff] %vm1817_vm2, %v2805_v21  ;;  %2849 = vst.msk [vmem:[#allocation3 + $0x28] sm:$0xff] %vm1817_vm2, %v2807_v48  ;;  %v3516_v52 = vrot.slane %v3515_v4, 4  ;;  %v5457_v21 = vrot.slane %v4004_v49, 9  ;;  %v3539_v48 = vor.u32 %v3538_v10, %v3535_v26  ;;  %v3549_v44 = vor.u32 %v3548_v58, %v7076_v47  ;;  %v4006_v40 = vld [vmem:[#allocation2 + $0x20] sm:$0x1] }
 0x13c   : > { %813 = vst.msk [vmem:[#allocation2 + $0xc4] sm:$0xf] %vm699_vm6, %v648_v57  ;;  %816 = vst [vmem:[#allocation2 + $0xc8] sm:$0x1] %v815_v60  ;;  %v3524_v19 = vrot.slane %v3522_v14, 4  ;;  %v4104_v61 = vrot.slane %v4102_v1, 4 }
 0x13d   : > { %1502 = vst.msk [vmem:[#allocation3 + $0x40] sm:$0xff] %vm1493_vm1, %v1462_v11  ;;  %v2860_v24 = vld [vmem:[#allocation3] sm:$0xff]  ;;  %2824 = vrot.lane.b32.xlu0 %v5389_v5, %s6013_s22  ;;  %v1786_v6 = vpop.permute.xlu0 %1785  ;;  %v3521_v8 = vsel %vm6131_vm11, %v3516_v52, %v3520_v53  ;;  %1503 = vst.msk [vmem:[#allocation3 + $0x48] sm:$0xff] %vm1493_vm1, %v1464_v55  ;;  %v4007_v30 = vld [vmem:[#allocation2 + $0x24] sm:$0xe]  ;;  %v4103_v46 = vsel %vm6116_vm5, %v5457_v21, %v4102_v1  ;;  %v1788_v4 = vpop.permute.xlu1 %1787  ;;  %vm2933_vm6 = vcmask 1045504  }
 0x13e   : > { %v3525_v16 = vor.u32 %v3524_v19, %v3520_v53  ;;  %5631 = vmatprep.mubr.msk.bf16.mxu1 %vm2884_vm4, %v2860_v24  ;;  %1826 = vst.msk [vmem:[#allocation3 + $0x40] sm:$0xff] %vm1817_vm2, %v1786_v6  ;;  %v4008_v18 = vld [vmem:[#allocation2 + $0x28] sm:$0xf]  ;;  %v3540_v53 = vrot.slane %v3539_v48, 4  ;;  %v3550_v19 = vrot.slane %v3549_v44, 4  ;;  %1827 = vst.msk [vmem:[#allocation3 + $0x48] sm:$0xff] %vm1817_vm2, %v1788_v4 }
 0x13f   : > { %v4009_v49 = vld [vmem:[#allocation2 + $0x2c] sm:$0x1]  ;;  %v3466_v11 = vld [vmem:[#allocation2 + $0x30] sm:$0xf]  ;;  %v5863_v1 = vld [vmem:[%s7889_s1] sm:$0x3f]  }
 0x140   : > { %v3526_v50 = vrot.slane %v3525_v16, 4  ;;  %v4105_v16 = vrot.slane %v4006_v40, 5  ;;  %v3545_v58 = vsel %vm6131_vm11, %v3540_v53, %v7076_v47  ;;  %v3555_v21 = vsel %vm6131_vm11, %v3550_v19, %v3554_v31  ;;  %3444 = vst.msk [vmem:[#allocation3] sm:$0xff] %vm945_vm3, %v5894_v9  ;;  %v5895_v31 = vld [vmem:[#allocation2 + $0x24] sm:$0xff]   ;;  %v3470_v55 = vld [vmem:[#allocation2 + $0x40] sm:$0xf]  ;;  %5830 = vmatprep.subr.msk.bf16.mxu0 %vm2933_vm6, %v5863_v1 }
 0x141   : > { %v2041_v27 = vld [vmem:[#allocation2 + $0xc0] sm:$0xf]  ;;  %v2489_v37 = vpop.permute.xlu0 %2488  ;;  %v7115_v6 = vcombine.low %v3545_v58, %v3555_v21  ;;  %v5458_v47 = vrot.slane %v4007_v30, 9  ;;  %v4109_v44 = vrot.slane %v4008_v18, 5  ;;  %v4011_v4 = vld [vmem:[#allocation2 + $0x34] sm:$0xf] }
 0x142   : > { %v2585_v29 = vld [vmem:[#allocation2 + $0xc0] sm:$0xe]  ;;  %v2405_v62 = vshrl.u32 %v2041_v27, 16  ;;  %v2408_v43 = vshll.u32 %v2041_v27, 16  ;;  %v3531_v39 = vsel %vm6131_vm11, %v3526_v50, %v3530_v33  ;;  %2530 = vst.msk [vmem:[#allocation3 + $0x30] sm:$0xff] %vm1493_vm1, %v2489_v37  ;;  %v3152_v37 = vsel %vm2933_vm6, %v5863_v1, 0 }
 0x143   : > { %v2042_v25 = vld [vmem:[#allocation2 + $0xc4] sm:$0xf]  ;;  %v2043_v38 = vld [vmem:[#allocation2 + $0xc8] sm:$0x1]  ;;  %v5374_v17 = vrot.slane %v2585_v29, 9  ;;  %v5441_v5 = vcombine.low %v3521_v8, %v3531_v39  ;;  %5664 = vmatpush3.bf16.msra.mxu0 %v3152_v37  ;;  %v3594_v9 = vshrl.u32 %v3470_v55, 16 }
 0x144   : > { %v2414_v28 = vshll.u32 %v2042_v25, 16  ;;  %v2418_v15 = vshrl.u32 %v2042_v25, 16  ;;  %v2424_v22 = vshll.u32 %v2043_v38, 16  ;;  %v2586_v51 = vld [vmem:[#allocation2 + $0xc4] sm:$0xf]  ;;  %v2407_v0 = vrot.slane %v2405_v62, 4 }
 0x145   : > { %v2410_v12 = vrot.slane %v2408_v43, 5  ;;  %v2587_v56 = vld [vmem:[#allocation2 + $0xc8] sm:$0x1]  ;;  %v2743_v41 = vrot.slane %v2586_v51, 5  ;;  %3940 = vrot.lane.b32.xlu0 %v5441_v5, %s6014_s23  ;;  %v3467_v33 = vld [vmem:[#allocation2 + $0x34] sm:$0xf]  ;;  %v2809_v29 = vpop.permute.xlu0 %2808  ;;  %v4106_v25 = vsel %vm6116_vm5, %v4104_v61, %v4105_v16 }
 0x146   : > { %v2416_v57 = vrot.slane %v2414_v28, 5  ;;  %v2420_v63 = vrot.slane %v2418_v15, 4  ;;  %v2426_v60 = vrot.slane %v2424_v22, 5  ;;  %v2746_v20 = vrot.slane %v2587_v56, 5  ;;  %v3468_v27 = vld [vmem:[#allocation2 + $0x38] sm:$0x1]  ;;  %v2491_v15 = vpop.permute.xlu1 %2490  ;;  %5666 = vmatmul.mubr.msk.bf16.vlgmr.msra.gmra.mrb[0].mxu0 %vm2884_vm4, %v7001_v34 }
 0x147   : > { %v2411_v3 = vor.u32 %v2410_v12, %v2407_v0  ;;  %v7090_v14 = vsel %vm6116_vm5, %v5374_v17, %v2743_v41  ;;  %v2745_v32 = vrot.slane %v2743_v41, 4  ;;  %v7111_v50 = vld [vmem:[#allocation3 + $0x40] sm:$0xff]  ;;  %v7119_v62 = vld [vmem:[#allocation3 + $0x8] sm:$0xff]  ;;  %2850 = vst.msk [vmem:[#allocation3 + $0x30] sm:$0xff] %vm1817_vm2, %v2809_v29  ;;  %v5473_v8 = vcombine.low %v4103_v46, %v4106_v25  ;;  %v5881_v25 = vld [vmem:[%s7889_s1 + $0xc] sm:$0x3f]   ;;  %5669 = vmatprep.mubr.msk.bf16.mxu0 %vm2884_vm4, %v7003_v59 }
 0x148   : > { %v2421_v13 = vor.u32 %v2420_v63, %v2416_v57  ;;  %v3469_v38 = vld [vmem:[#allocation2 + $0x3c] sm:$0xf]  ;;  %1988 = vst.msk [vmem:[#allocation3 + $0x40] sm:$0xff] %vm945_vm3, %v5882_v2  ;;  %v4112_v28 = vrot.slane %v4009_v49, 5  ;;  %v3557_v51 = vshrl.u32 %v3466_v11, 16  ;;  %v3560_v17 = vshll.u32 %v3466_v11, 16  ;;  %5831 = vmatprep.subr.msk.bf16.mxu0 %vm2933_vm6, %v5881_v25 }
 0x149   : > { %v2412_v26 = vrot.slane %v2411_v3, 4  ;;  %v7097_v10 = vsel %vm6116_vm5, %v2745_v32, %v2746_v20  ;;  %2531 = vst.msk [vmem:[#allocation3 + $0x38] sm:$0xff] %vm1493_vm1, %v2491_v15  ;;  %v5883_v0 = vld [vmem:[#allocation2 + $0x78] sm:$0xff]   ;;  %4260 = vrot.lane.b32.xlu0 %v5473_v8, %s6013_s22  ;;  %v7131_v12 = vsel %vm6116_vm5, %v5458_v47, %v4109_v44  ;;  %v4111_v56 = vrot.slane %v4109_v44, 4  ;;  %v5896_v63 = vld [vmem:[#allocation2 + $0x30] sm:$0xff]   ;;  %v7136_v3 = vld [vmem:[#allocation3 + $0x10] sm:$0xff] }
 0x14a   : > { %v2422_v24 = vrot.slane %v2421_v13, 4  ;;  %v5390_v52 = vcombine.low %v7090_v14, %v7097_v10  ;;  %3445 = vst.msk [vmem:[#allocation3 + $0x8] sm:$0xff] %vm945_vm3, %v5895_v31  ;;  %v3566_v41 = vshll.u32 %v3467_v33, 16  ;;  %v3570_v39 = vshrl.u32 %v3467_v33, 16  ;;  %v4010_v2 = vld [vmem:[#allocation2 + $0x30] sm:$0xe]  ;;  %v2811_v13 = vpop.permute.xlu1 %2810 }
 0x14b   : > { %v2417_v48 = vsel %vm6131_vm11, %v2412_v26, %v2416_v57  ;;  %v3471_v57 = vld [vmem:[#allocation2 + $0x44] sm:$0x1]  ;;  %v3562_v20 = vrot.slane %v3560_v17, 5  ;;  %v3576_v40 = vshll.u32 %v3468_v27, 16  ;;  %v7140_v32 = vsel %vm6116_vm5, %v4111_v56, %v4112_v28  ;;  %3446 = vst.msk [vmem:[#allocation3 + $0x10] sm:$0xff] %vm945_vm3, %v5896_v63  ;;  %v7162_v28 = vld [vmem:[#allocation3 + $0x18] sm:$0xff] }
 0x14c   : > { %v2427_v43 = vsel %vm6131_vm11, %v2422_v24, %v2426_v60  ;;  %v3559_v60 = vrot.slane %v3557_v51, 4  ;;  %v3568_v5 = vrot.slane %v3566_v41, 5  ;;  %v3572_v30 = vrot.slane %v3570_v39, 4  ;;  %v7142_v53 = vld [vmem:[#allocation3 + $0x48] sm:$0xff]  ;;  %v4012_v26 = vld [vmem:[#allocation2 + $0x38] sm:$0x1] }
 0x14d   : > { %v5358_v22 = vcombine.low %v2417_v48, %v2427_v43  ;;  %v3581_v18 = vshrl.u32 %v3469_v38, 16  ;;  %v5474_v19 = vcombine.low %v7131_v12, %v7140_v32  ;;  %v3578_v49 = vrot.slane %v3576_v40, 5  ;;  %2851 = vst.msk [vmem:[#allocation3 + $0x38] sm:$0xff] %vm1817_vm2, %v2811_v13  ;;  %v4013_v24 = vld [vmem:[#allocation2 + $0x3c] sm:$0xe]  ;;  %v5898_v63 = vld [vmem:[#allocation2 + $0x48] sm:$0xff]  }
 0x14e   : > { %v3563_v46 = vor.u32 %v3562_v20, %v3559_v60  ;;  %v3584_v11 = vshll.u32 %v3469_v38, 16  ;;  %1989 = vst.msk [vmem:[#allocation3 + $0x48] sm:$0xff] %vm945_vm3, %v5883_v0  ;;  %v3573_v61 = vor.u32 %v3572_v30, %v3568_v5  ;;  %v3590_v33 = vshll.u32 %v3470_v55, 16  ;;  %v4014_v58 = vld [vmem:[#allocation2 + $0x40] sm:$0xf]  ;;  %v7173_v30 = vld [vmem:[#allocation3 + $0x20] sm:$0xff]  ;;  %5670 = vmatmul.mubr.msk.bf16.gmra.mrb[4].mxu0 %vm2884_vm4, %v7012_v42 }
 0x14f   : > { %2506 = vrot.lane.b32.xlu1 %v5358_v22, %s6014_s23  ;;  %v3583_v16 = vrot.slane %v3581_v18, 4  ;;  %v3600_v27 = vshll.u32 %v3471_v57, 16  ;;  %v5459_v29 = vrot.slane %v4010_v2, 9  ;;  %v4015_v48 = vld [vmem:[#allocation2 + $0x44] sm:$0x1]  ;;  %v3596_v31 = vrot.slane %v3594_v9, 4  ;;  %5673 = vmatprep.mubr.msk.bf16.mxu0 %vm2884_vm4, %v7014_v23 }
 0x150   : > { %v3564_v21 = vrot.slane %v3563_v46, 4  ;;  %v3586_v1 = vrot.slane %v3584_v11, 5  ;;  %v3574_v47 = vrot.slane %v3573_v61, 4  ;;  %v3592_v38 = vrot.slane %v3590_v33, 5  ;;  %v3472_v8 = vld [vmem:[#allocation2 + $0x48] sm:$0xf] }
 0x151   : > { %v4116_v43 = vrot.slane %v4011_v4, 5  ;;  %v4119_v44 = vrot.slane %v4012_v26, 5  ;;  %v3473_v34 = vld [vmem:[#allocation2 + $0x4c] sm:$0xf]  ;;  %v3474_v59 = vld [vmem:[#allocation2 + $0x50] sm:$0x1] }
 0x152   : > { %v3569_v14 = vsel %vm6131_vm11, %v3564_v21, %v3568_v5  ;;  %v3587_v10 = vor.u32 %v3586_v1, %v3583_v16  ;;  %v3579_v15 = vsel %vm6131_vm11, %v3574_v47, %v3578_v49  ;;  %v3597_v22 = vor.u32 %v3596_v31, %v3592_v38  ;;  %v5897_v55 = vld [vmem:[#allocation2 + $0x3c] sm:$0xff]   ;;  %v3475_v57 = vld [vmem:[#allocation2 + $0x54] sm:$0xf]  ;;  %v3476_v5 = vld [vmem:[#allocation2 + $0x58] sm:$0xf]  ;;  %3448 = vst.msk [vmem:[#allocation3 + $0x20] sm:$0xff] %vm945_vm3, %v5898_v63 }
 0x153   : > { %2826 = vrot.lane.b32.xlu1 %v5390_v52, %s6013_s22  ;;  %v3602_v52 = vrot.slane %v3600_v27, 5  ;;  %v4117_v51 = vsel %vm6116_vm5, %v5459_v29, %v4116_v43  ;;  %v4118_v17 = vrot.slane %v4116_v43, 4  ;;  %v5443_v0 = vcombine.low %v3569_v14, %v3579_v15  ;;  %3447 = vst.msk [vmem:[#allocation3 + $0x18] sm:$0xff] %vm945_vm3, %v5897_v55  ;;  %v3477_v46 = vld [vmem:[#allocation2 + $0x5c] sm:$0x1]  ;;  %v5899_v11 = vld [vmem:[#allocation2 + $0x54] sm:$0xff]  }
 0x154   : > { %v3588_v56 = vrot.slane %v3587_v10, 4  ;;  %v5460_v41 = vrot.slane %v4013_v24, 9  ;;  %v4123_v39 = vrot.slane %v4014_v58, 5  ;;  %v3598_v60 = vrot.slane %v3597_v22, 4  ;;  %v5868_v49 = vld [vmem:[%s7889_s1 + $0x4] sm:$0xfc]  }
 0x155   : > { %v4120_v20 = vsel %vm6116_vm5, %v4118_v17, %v4119_v44  ;;  %v4126_v40 = vrot.slane %v4015_v48, 5  ;;  %v3605_v37 = vshrl.u32 %v3472_v8, 16  ;;  %3944 = vrot.lane.b32.xlu0 %v5443_v0, %s6014_s23  ;;  %v3608_v61 = vshll.u32 %v3472_v8, 16  ;;  %v7189_v33 = vld [vmem:[#allocation3 + $0x28] sm:$0xff]  ;;  %v4016_v1 = vld [vmem:[#allocation2 + $0x48] sm:$0xe] }
 0x156   : > { %v5475_v18 = vcombine.low %v4117_v51, %v4120_v20  ;;  %v7181_v2 = vsel %vm6116_vm5, %v5460_v41, %v4123_v39  ;;  %v4125_v13 = vrot.slane %v4123_v39, 4  ;;  %v3603_v4 = vsel %vm6131_vm11, %v3598_v60, %v3602_v52  ;;  %3449 = vst.msk [vmem:[#allocation3 + $0x28] sm:$0xff] %vm945_vm3, %v5899_v11  ;;  %v4017_v47 = vld [vmem:[#allocation2 + $0x4c] sm:$0xf]  ;;  %v4018_v31 = vld [vmem:[#allocation2 + $0x50] sm:$0x1]  ;;  %v1466_v52 = vpop.permute.xlu0 %1465  ;;  %5674 = vmatmul.mubr.msk.bf16.gmra.mrb[8].mxu0 %vm2884_vm4, %v7024_v54 }
 0x157   : > { %3942 = vrot.lane.b32.xlu1 %v7115_v6, %s6014_s23  ;;  %v3593_v6 = vsel %vm6131_vm11, %v3588_v56, %v3592_v38  ;;  %v3607_v26 = vrot.slane %v3605_v37, 4  ;;  %v3614_v16 = vshll.u32 %v3473_v34, 16  ;;  %v3618_v58 = vshrl.u32 %v3473_v34, 16  ;;  %v4019_v43 = vld [vmem:[#allocation2 + $0x54] sm:$0xe]  ;;  %1504 = vst.msk [vmem:[#allocation3 + $0x50] sm:$0xff] %vm1493_vm1, %v1466_v52  ;;  %5677 = vmatprep.mubr.msk.bf16.mxu0 %vm2884_vm4, %v7027_v45 }
 0x158   : > { %v5444_v9 = vcombine.low %v3593_v6, %v3603_v4  ;;  %v4127_v24 = vsel %vm6116_vm5, %v4125_v13, %v4126_v40  ;;  %v3624_v21 = vshll.u32 %v3474_v59, 16  ;;  %v3610_v29 = vrot.slane %v3608_v61, 5  ;;  %v4020_v23 = vld [vmem:[#allocation2 + $0x58] sm:$0xf]  ;;  %v7205_v51 = vld [vmem:[#allocation2 + $0x5c] sm:$0x1]  ;;  %v1468_v61 = vpop.permute.xlu1 %1467 }
 0x159   : > { %v5476_v27 = vcombine.low %v7181_v2, %v4127_v24  ;;  %v3616_v48 = vrot.slane %v3614_v16, 5  ;;  %v3629_v25 = vshrl.u32 %v3475_v57, 16  ;;  %4264 = vrot.lane.b32.xlu0 %v5475_v18, %s6013_s22  ;;  %v3620_v12 = vrot.slane %v3618_v58, 4  ;;  %v3478_v56 = vld [vmem:[#allocation2 + $0x60] sm:$0xf]  ;;  %v7208_v41 = vld [vmem:[#allocation3 + $0x30] sm:$0xff] }
 0x15a   : > { %v3626_v32 = vrot.slane %v3624_v21, 5  ;;  %v3638_v38 = vshll.u32 %v3476_v5, 16  ;;  %v3611_v42 = vor.u32 %v3610_v29, %v3607_v26  ;;  %v3642_v14 = vshrl.u32 %v3476_v5, 16  ;;  %v5900_v20 = vld [vmem:[#allocation2 + $0x60] sm:$0xff]   ;;  %v1790_v2 = vpop.permute.xlu0 %1789  ;;  %v3480_v4 = vld [vmem:[#allocation2 + $0x68] sm:$0x1] }
 0x15b   : > { %4262 = vrot.lane.b32.xlu1 %v5474_v19, %s6013_s22  ;;  %v3632_v19 = vshll.u32 %v3475_v57, 16  ;;  %v3631_v8 = vrot.slane %v3629_v25, 4  ;;  %v3648_v10 = vshll.u32 %v3477_v46, 16  ;;  %v3621_v44 = vor.u32 %v3620_v12, %v3616_v48  ;;  %v3479_v18 = vld [vmem:[#allocation2 + $0x64] sm:$0xf]  ;;  %1828 = vst.msk [vmem:[#allocation3 + $0x50] sm:$0xff] %vm1817_vm2, %v1790_v2 }
 0x15c   : > { %v3640_v15 = vrot.slane %v3638_v38, 5  ;;  %v2883_v22 = vrot.slane %v5868_v49, 2  ;;  %v3612_v17 = vrot.slane %v3611_v42, 4  ;;  %v3644_v59 = vrot.slane %v3642_v14, 4  ;;  %v3481_v26 = vld [vmem:[#allocation2 + $0x6c] sm:$0xf] }
 0x15d   : > { %v3634_v34 = vrot.slane %v3632_v19, 5  ;;  %v3650_v55 = vrot.slane %v3648_v10, 5  ;;  %v5461_v0 = vrot.slane %v4016_v1, 9  ;;  %v3622_v39 = vrot.slane %v3621_v44, 4  ;;  %3450 = vst.msk [vmem:[#allocation3 + $0x30] sm:$0xff] %vm945_vm3, %v5900_v20  ;;  %v1792_v10 = vpop.permute.xlu1 %1791  ;;  %v7240_v52 = vld [vmem:[#allocation3 + $0x38] sm:$0xff] }
 0x15e   : > { %5829 = vmatprep.subr.msk.bf16.mxu1 %vm2933_vm6, %v2883_v22  ;;  %v2935_v63 = vsel %vm2933_vm6, %v2883_v22, 0  ;;  %v4130_v60 = vrot.slane %v4017_v47, 5  ;;  %v3617_v40 = vsel %vm6131_vm11, %v3612_v17, %v3616_v48  ;;  %v3645_v37 = vor.u32 %v3644_v59, %v3640_v15  ;;  %1505 = vst.msk [vmem:[#allocation3 + $0x58] sm:$0xff] %vm1493_vm1, %v1468_v61  ;;  %v3482_v29 = vld [vmem:[#allocation2 + $0x70] sm:$0xf]  ;;  %v5886_v48 = vld [vmem:[#allocation2 + $0x84] sm:$0xff]   ;;  %v2493_v19 = vpop.permute.xlu0 %2492  ;;  %5678 = vmatmul.mubr.msk.bf16.gmra.mrb[12].mxu0 %vm2884_vm4, %v7029_v35 }
 0x15f   : > { %3946 = vrot.lane.b32.xlu1 %v5444_v9, %s6014_s23  ;;  %v3635_v57 = vor.u32 %v3634_v34, %v3631_v8  ;;  %5630 = vmatpush3.bf16.msra.mxu1 %v2935_v63  ;;  %v4133_v5 = vrot.slane %v4018_v31, 5  ;;  %v5462_v6 = vrot.slane %v4019_v43, 9  ;;  %v3627_v13 = vsel %vm6131_vm11, %v3622_v39, %v3626_v32  ;;  %v3483_v32 = vld [vmem:[#allocation2 + $0x74] sm:$0x1]  ;;  %v4022_v8 = vld [vmem:[#allocation2 + $0x60] sm:$0xe] }
 0x160   : > { %v4131_v49 = vsel %vm6116_vm5, %v5461_v0, %v4130_v60  ;;  %v4132_v11 = vrot.slane %v4130_v60, 4  ;;  %v5445_v16 = vcombine.low %v3617_v40, %v3627_v13  ;;  %v3646_v9 = vrot.slane %v3645_v37, 4  ;;  %v4023_v14 = vld [vmem:[#allocation2 + $0x64] sm:$0xf]  ;;  %2532 = vst.msk [vmem:[#allocation3 + $0x40] sm:$0xff] %vm1493_vm1, %v2493_v19  ;;  %5681 = vmatprep.mubr.msk.bf16.mxu0 %vm2884_vm4, %v7111_v50 }
 0x161   : > { %v3636_v46 = vrot.slane %v3635_v57, 4  ;;  %v4137_v24 = vrot.slane %v4020_v23, 5  ;;  %v4140_v58 = vrot.slane %v7205_v51, 5  ;;  %v3653_v1 = vshrl.u32 %v3478_v56, 16  ;;  %1829 = vst.msk [vmem:[#allocation3 + $0x58] sm:$0xff] %vm1817_vm2, %v1792_v10  ;;  %v2495_v2 = vpop.permute.xlu1 %2494  ;;  %v5893_v7 = vld [vmem:[#allocation2 + $0xc0] sm:$0xff]  }
 0x162   : > { %v4134_v54 = vsel %vm6116_vm5, %v4132_v11, %v4133_v5  ;;  %5632 = vmatmul.mubr.msk.bf16.vlgmr.msra.gmra.mrb[0].mxu1 %vm2884_vm4, %v7119_v62  ;;  %3948 = vrot.lane.b32.xlu0 %v5445_v16, %s6014_s23  ;;  %v3651_v45 = vsel %vm6131_vm11, %v3646_v9, %v3650_v55  ;;  %v5901_v62 = vld [vmem:[#allocation2 + $0x6c] sm:$0xff]   ;;  %v3662_v42 = vshll.u32 %v3479_v18, 16  ;;  %v3666_v34 = vshrl.u32 %v3479_v18, 16  ;;  %v4024_v59 = vld [vmem:[#allocation2 + $0x68] sm:$0x1]  ;;  %v2813_v60 = vpop.permute.xlu0 %2812  ;;  %2533 = vst.msk [vmem:[#allocation3 + $0x48] sm:$0xff] %vm1493_vm1, %v2495_v2 }
 0x163   : > { %4266 = vrot.lane.b32.xlu1 %v5476_v27, %s6013_s22  ;;  %v3641_v21 = vsel %vm6131_vm11, %v3636_v46, %v3640_v15  ;;  %v3656_v27 = vshll.u32 %v3478_v56, 16  ;;  %v5477_v25 = vcombine.low %v4131_v49, %v4134_v54  ;;  %v4138_v47 = vsel %vm6116_vm5, %v5462_v6, %v4137_v24  ;;  %5635 = vmatprep.mubr.msk.bf16.mxu1 %vm2884_vm4, %v7136_v3  ;;  %v4025_v57 = vld [vmem:[#allocation2 + $0x6c] sm:$0xe]  ;;  %v4026_v63 = vld [vmem:[#allocation2 + $0x70] sm:$0xf] }
 0x164   : > { %v4139_v12 = vrot.slane %v4137_v24, 4  ;;  %v5446_v38 = vcombine.low %v3641_v21, %v3651_v45  ;;  %v3655_v31 = vrot.slane %v3653_v1, 4  ;;  %v3672_v15 = vshll.u32 %v3480_v4, 16  ;;  %3451 = vst.msk [vmem:[#allocation3 + $0x38] sm:$0xff] %vm945_vm3, %v5901_v62  ;;  %v7249_v20 = vld [vmem:[#allocation3 + $0x50] sm:$0xff]  ;;  %v5887_v4 = vld [vmem:[#allocation2 + $0x90] sm:$0xff]  }
 0x165   : > { %v3658_v43 = vrot.slane %v3656_v27, 5  ;;  %v3677_v22 = vshrl.u32 %v3481_v26, 16  ;;  %v3664_v51 = vrot.slane %v3662_v42, 5  ;;  %v3680_v17 = vshll.u32 %v3481_v26, 16  ;;  %v4027_v18 = vld [vmem:[#allocation2 + $0x74] sm:$0x1] }
 0x166   : > { %v4141_v44 = vsel %vm6116_vm5, %v4139_v12, %v4140_v58  ;;  %4268 = vrot.lane.b32.xlu0 %v5477_v25, %s6013_s22  ;;  %v3668_v55 = vrot.slane %v3666_v34, 4  ;;  %v3674_v0 = vrot.slane %v3672_v15, 5  ;;  %v3686_v39 = vshll.u32 %v3482_v29, 16  ;;  %2852 = vst.msk [vmem:[#allocation3 + $0x40] sm:$0xff] %vm1817_vm2, %v2813_v60  ;;  %v3484_v9 = vld [vmem:[#allocation2 + $0x78] sm:$0xf]  ;;  %v2815_v12 = vpop.permute.xlu1 %2814  ;;  %5682 = vmatmul.mubr.msk.bf16.gmra.mrb[16].mxu0 %vm2884_vm4, %v7142_v53 }
 0x167   : > { %3950 = vrot.lane.b32.xlu1 %v5446_v38, %s6014_s23  ;;  %v5478_v3 = vcombine.low %v4138_v47, %v4141_v44  ;;  %v3659_v23 = vor.u32 %v3658_v43, %v3655_v31  ;;  %v3679_v56 = vrot.slane %v3677_v22, 4  ;;  %v3682_v37 = vrot.slane %v3680_v17, 5  ;;  %1990 = vst.msk [vmem:[#allocation3 + $0x50] sm:$0xff] %vm945_vm3, %v5886_v48  ;;  %v3485_v54 = vld [vmem:[#allocation2 + $0x7c] sm:$0xf]  ;;  %5685 = vmatprep.mubr.msk.bf16.mxu0 %vm2884_vm4, %v7249_v20 }
 0x168   : > { %v3690_v5 = vshrl.u32 %v3482_v29, 16  ;;  %v3696_v6 = vshll.u32 %v3483_v32, 16  ;;  %v3669_v13 = vor.u32 %v3668_v55, %v3664_v51  ;;  %v3688_v46 = vrot.slane %v3686_v39, 5  ;;  %v3486_v1 = vld [vmem:[#allocation2 + $0x80] sm:$0x1]  ;;  %v5902_v27 = vld [vmem:[#allocation2 + $0x78] sm:$0xff]  }
 0x169   : > { %v3660_v40 = vrot.slane %v3659_v23, 4  ;;  %v5463_v49 = vrot.slane %v4022_v8, 9  ;;  %v4144_v11 = vrot.slane %v4023_v14, 5  ;;  %v3683_v26 = vor.u32 %v3682_v37, %v3679_v56  ;;  %v3487_v47 = vld [vmem:[#allocation2 + $0x84] sm:$0xf]  ;;  %v7267_v32 = vld [vmem:[#allocation3 + $0x58] sm:$0xff] }
 0x16a   : > { %v3692_v61 = vrot.slane %v3690_v5, 4  ;;  %v3698_v16 = vrot.slane %v3696_v6, 5  ;;  %5636 = vmatmul.mubr.msk.bf16.gmra.mrb[4].mxu1 %vm2884_vm4, %v7162_v28  ;;  %v3670_v24 = vrot.slane %v3669_v13, 4  ;;  %v4147_v21 = vrot.slane %v4024_v59, 5  ;;  %2853 = vst.msk [vmem:[#allocation3 + $0x48] sm:$0xff] %vm1817_vm2, %v2815_v12 }
 0x16b   : > { %4270 = vrot.lane.b32.xlu1 %v5478_v3, %s6013_s22  ;;  %v3665_v35 = vsel %vm6131_vm11, %v3660_v40, %v3664_v51  ;;  %v4145_v58 = vsel %vm6116_vm5, %v5463_v49, %v4144_v11  ;;  %v4146_v50 = vrot.slane %v4144_v11, 4  ;;  %5639 = vmatprep.mubr.msk.bf16.mxu1 %vm2884_vm4, %v7173_v30  ;;  %v3684_v29 = vrot.slane %v3683_v26, 4  ;;  %1991 = vst.msk [vmem:[#allocation3 + $0x58] sm:$0xff] %vm945_vm3, %v5887_v4  ;;  %v3488_v8 = vld [vmem:[#allocation2 + $0x88] sm:$0xf] }
 0x16c   : > { %v3693_v48 = vor.u32 %v3692_v61, %v3688_v46  ;;  %v5464_v45 = vrot.slane %v4025_v57, 9  ;;  %v4151_v25 = vrot.slane %v4026_v63, 5  ;;  %v3675_v28 = vsel %vm6131_vm11, %v3670_v24, %v3674_v0  ;;  %v3489_v15 = vld [vmem:[#allocation2 + $0x8c] sm:$0x1]  ;;  %v4028_v22 = vld [vmem:[#allocation2 + $0x78] sm:$0xe] }
 0x16d   : > { %v4148_v19 = vsel %vm6116_vm5, %v4146_v50, %v4147_v21  ;;  %v4154_v62 = vrot.slane %v4027_v18, 5  ;;  %v3701_v38 = vshrl.u32 %v3484_v9, 16  ;;  %v5447_v30 = vcombine.low %v3665_v35, %v3675_v28  ;;  %v7279_v3 = vld [vmem:[#allocation3 + $0x40] sm:$0xff]  ;;  %v5903_v57 = vld [vmem:[#allocation2 + $0x84] sm:$0xff]   ;;  %v4030_v13 = vld [vmem:[#allocation2 + $0x80] sm:$0x1] }
 0x16e   : > { %v3689_v31 = vsel %vm6131_vm11, %v3684_v29, %v3688_v46  ;;  %v3694_v43 = vrot.slane %v3693_v48, 4  ;;  %v5479_v42 = vcombine.low %v4145_v58, %v4148_v19  ;;  %v4152_v14 = vsel %vm6116_vm5, %v5464_v45, %v4151_v25  ;;  %3452 = vst.msk [vmem:[#allocation3 + $0x40] sm:$0xff] %vm945_vm3, %v5902_v27  ;;  %v4029_v5 = vld [vmem:[#allocation2 + $0x7c] sm:$0xf]  ;;  %v4031_v4 = vld [vmem:[#allocation2 + $0x84] sm:$0xe]  ;;  %5686 = vmatmul.mubr.msk.bf16.gmra.mrb[20].mxu0 %vm2884_vm4, %v7267_v32 }
 0x16f   : > { %v4153_v10 = vrot.slane %v4151_v25, 4  ;;  %v3703_v44 = vrot.slane %v3701_v38, 4  ;;  %v3704_v34 = vshll.u32 %v3484_v9, 16  ;;  %3952 = vrot.lane.b32.xlu0 %v5447_v30, %s6014_s23  ;;  %v3710_v51 = vshll.u32 %v3485_v54, 16  ;;  %v4032_v9 = vld [vmem:[#allocation2 + $0x88] sm:$0xf] }
 0x170   : > { %v3699_v23 = vsel %vm6131_vm11, %v3694_v43, %v3698_v16  ;;  %v3714_v17 = vshrl.u32 %v3485_v54, 16  ;;  %v3720_v59 = vshll.u32 %v3486_v1, 16  ;;  %v3725_v39 = vshrl.u32 %v3487_v47, 16  ;;  %v4033_v21 = vld [vmem:[#allocation2 + $0x8c] sm:$0x1] }
 0x171   : > { %v5448_v55 = vcombine.low %v3689_v31, %v3699_v23  ;;  %v4155_v0 = vsel %vm6116_vm5, %v4153_v10, %v4154_v62  ;;  %v3706_v56 = vrot.slane %v3704_v34, 5  ;;  %v3712_v60 = vrot.slane %v3710_v51, 5  ;;  %v7297_v35 = vld [vmem:[#allocation3 + $0x48] sm:$0xff]  ;;  %v3490_v12 = vld [vmem:[#allocation2 + $0x90] sm:$0xf]  ;;  %v1470_v10 = vpop.permute.xlu0 %1469 }
 0x172   : > { %v5480_v63 = vcombine.low %v4152_v14, %v4155_v0  ;;  %v3716_v40 = vrot.slane %v3714_v17, 4  ;;  %v3722_v37 = vrot.slane %v3720_v59, 5  ;;  %5640 = vmatmul.mubr.msk.bf16.gmra.mrb[8].mxu1 %vm2884_vm4, %v7189_v33  ;;  %v3727_v6 = vrot.slane %v3725_v39, 4  ;;  %3453 = vst.msk [vmem:[#allocation3 + $0x48] sm:$0xff] %vm945_vm3, %v5903_v57  ;;  %v3491_v28 = vld [vmem:[#allocation2 + $0x94] sm:$0xf] }
 0x173   : > { %3954 = vrot.lane.b32.xlu1 %v5448_v55, %s6014_s23  ;;  %v3707_v53 = vor.u32 %v3706_v56, %v3703_v44  ;;  %v3728_v18 = vshll.u32 %v3487_v47, 16  ;;  %v3734_v2 = vshll.u32 %v3488_v8, 16  ;;  %5643 = vmatprep.mubr.msk.bf16.mxu1 %vm2884_vm4, %v7208_v41  ;;  %v3738_v46 = vshrl.u32 %v3488_v8, 16  ;;  %v3492_v31 = vld [vmem:[#allocation2 + $0x98] sm:$0x1]  ;;  %1506 = vst.msk [vmem:[#allocation3 + $0x60] sm:$0xff] %vm1493_vm1, %v1470_v10 }
 0x174   : > { %4272 = vrot.lane.b32.xlu0 %v5479_v42, %s6013_s22  ;;  %v3717_v20 = vor.u32 %v3716_v40, %v3712_v60  ;;  %v3744_v49 = vshll.u32 %v3489_v15, 16  ;;  %v5465_v11 = vrot.slane %v4028_v22, 9  ;;  %v4158_v16 = vrot.slane %v4029_v5, 5  ;;  %v3493_v22 = vld [vmem:[#allocation2 + $0x9c] sm:$0xf] }
 0x175   : > { %v3708_v33 = vrot.slane %v3707_v53, 4  ;;  %v3730_v26 = vrot.slane %v3728_v18, 5  ;;  %v3736_v61 = vrot.slane %v3734_v2, 5  ;;  %v3740_v58 = vrot.slane %v3738_v46, 4  ;;  %v3494_v59 = vld [vmem:[#allocation2 + $0xa0] sm:$0xf]  ;;  %v1794_v53 = vpop.permute.xlu0 %1793  ;;  %v1472_v46 = vpop.permute.xlu1 %1471 }
 0x176   : > { %v3718_v24 = vrot.slane %v3717_v20, 4  ;;  %v3746_v50 = vrot.slane %v3744_v49, 5  ;;  %v4161_v41 = vrot.slane %v4030_v13, 5  ;;  %v4159_v27 = vsel %vm6116_vm5, %v5465_v11, %v4158_v16  ;;  %v3495_v57 = vld [vmem:[#allocation2 + $0xa4] sm:$0x1]  ;;  %1830 = vst.msk [vmem:[#allocation3 + $0x60] sm:$0xff] %vm1817_vm2, %v1794_v53 }
 0x177   : > { %4274 = vrot.lane.b32.xlu1 %v5480_v63, %s6013_s22  ;;  %v3713_v54 = vsel %vm6131_vm11, %v3708_v33, %v3712_v60  ;;  %v3731_v1 = vor.u32 %v3730_v26, %v3727_v6  ;;  %v4160_v29 = vrot.slane %v4158_v16, 4  ;;  %v3741_v45 = vor.u32 %v3740_v58, %v3736_v61  ;;  %v4034_v63 = vld [vmem:[#allocation2 + $0x90] sm:$0xe]  ;;  %v4036_v20 = vld [vmem:[#allocation2 + $0x98] sm:$0x1]  ;;  %1507 = vst.msk [vmem:[#allocation3 + $0x68] sm:$0xff] %vm1493_vm1, %v1472_v46 }
 0x178   : > { %v3723_v48 = vsel %vm6131_vm11, %v3718_v24, %v3722_v37  ;;  %v5466_v25 = vrot.slane %v4031_v4, 9  ;;  %v4165_v47 = vrot.slane %v4032_v9, 5  ;;  %v4168_v30 = vrot.slane %v4033_v21, 5  ;;  %v4037_v26 = vld [vmem:[#allocation2 + $0x9c] sm:$0xe] }
 0x179   : > { %v5449_v19 = vcombine.low %v3713_v54, %v3723_v48  ;;  %v3732_v62 = vrot.slane %v3731_v1, 4  ;;  %v4162_v38 = vsel %vm6116_vm5, %v4160_v29, %v4161_v41  ;;  %v3742_v43 = vrot.slane %v3741_v45, 4  ;;  %v4038_v58 = vld [vmem:[#allocation2 + $0xa0] sm:$0xf]  ;;  %v4039_v1 = vld [vmem:[#allocation2 + $0xa4] sm:$0x1] }
 0x17a   : > { %v5481_v42 = vcombine.low %v4159_v27, %v4162_v38  ;;  %v4166_v8 = vsel %vm6116_vm5, %v5466_v25, %v4165_v47  ;;  %v4167_v14 = vrot.slane %v4165_v47, 4  ;;  %5644 = vmatmul.mubr.msk.bf16.gmra.mrb[12].mxu1 %vm2884_vm4, %v7240_v52  ;;  %v3749_v44 = vshrl.u32 %v3490_v12, 16  ;;  %v2497_v27 = vpop.permute.xlu0 %2496  ;;  %v3496_v47 = vld [vmem:[#allocation2 + $0xa8] sm:$0xf] }
 0x17b   : > { %3956 = vrot.lane.b32.xlu0 %v5449_v19, %s6014_s23  ;;  %v3737_v32 = vsel %vm6131_vm11, %v3732_v62, %v3736_v61  ;;  %v3752_v34 = vshll.u32 %v3490_v12, 16  ;;  %v3758_v15 = vshll.u32 %v3491_v28, 16  ;;  %5647 = vmatprep.mubr.msk.bf16.mxu1 %vm2884_vm4, %v7279_v3  ;;  %v3747_v23 = vsel %vm6131_vm11, %v3742_v43, %v3746_v50  ;;  %v4035_v3 = vld [vmem:[#allocation2 + $0x94] sm:$0xf]  ;;  %v1796_v12 = vpop.permute.xlu1 %1795  ;;  %2534 = vst.msk [vmem:[#allocation3 + $0x50] sm:$0xff] %vm1493_vm1, %v2497_v27 }
 0x17c   : > { %v4169_v52 = vsel %vm6116_vm5, %v4167_v14, %v4168_v30  ;;  %v3762_v51 = vshrl.u32 %v3491_v28, 16  ;;  %v3768_v17 = vshll.u32 %v3492_v31, 16  ;;  %v5450_v55 = vcombine.low %v3737_v32, %v3747_v23  ;;  %v5890_v28 = vld [vmem:[#allocation2 + $0x9c] sm:$0xff]   ;;  %1831 = vst.msk [vmem:[#allocation3 + $0x68] sm:$0xff] %vm1817_vm2, %v1796_v12 }
 0x17d   : > { %v5482_v0 = vcombine.low %v4166_v8, %v4169_v52  ;;  %v3751_v56 = vrot.slane %v3749_v44, 4  ;;  %v3754_v39 = vrot.slane %v3752_v34, 5  ;;  %v3760_v60 = vrot.slane %v3758_v15, 5  ;;  %v3497_v8 = vld [vmem:[#allocation2 + $0xac] sm:$0xf] }
 0x17e   : > { %v3764_v40 = vrot.slane %v3762_v51, 4  ;;  %v3770_v37 = vrot.slane %v3768_v17, 5  ;;  %v3773_v5 = vshrl.u32 %v3493_v22, 16  ;;  %3958 = vrot.lane.b32.xlu1 %v5450_v55, %s6014_s23  ;;  %v3776_v18 = vshll.u32 %v3493_v22, 16  ;;  %v3498_v44 = vld [vmem:[#allocation2 + $0xb0] sm:$0x1]  ;;  %v2817_v15 = vpop.permute.xlu0 %2816 }
 0x17f   : > { %4276 = vrot.lane.b32.xlu0 %v5481_v42, %s6013_s22  ;;  %v3755_v6 = vor.u32 %v3754_v39, %v3751_v56  ;;  %v3782_v2 = vshll.u32 %v3494_v59, 16  ;;  %v3786_v13 = vshrl.u32 %v3494_v59, 16  ;;  %v3792_v4 = vshll.u32 %v3495_v57, 16  ;;  %v1846_v22 = vld [vmem:[#allocation3 + $0x60] sm:$0xff]  ;;  %v3499_v59 = vld [vmem:[#allocation2 + $0xb4] sm:$0xf] }
 0x180   : > { %v3765_v49 = vor.u32 %v3764_v40, %v3760_v60  ;;  %v3775_v11 = vrot.slane %v3773_v5, 4  ;;  %v5467_v33 = vrot.slane %v4034_v63, 9  ;;  %v3778_v16 = vrot.slane %v3776_v18, 5  ;;  %v3500_v55 = vld [vmem:[#allocation2 + $0xb8] sm:$0xf]  ;;  %2854 = vst.msk [vmem:[#allocation3 + $0x50] sm:$0xff] %vm1817_vm2, %v2817_v15  ;;  %5689 = vmatprep.mubr.msk.bf16.mxu0 %vm2884_vm4, %v1846_v22 }
 0x181   : > { %v3756_v61 = vrot.slane %v3755_v6, 4  ;;  %v3784_v9 = vrot.slane %v3782_v2, 5  ;;  %v3788_v24 = vrot.slane %v3786_v13, 4  ;;  %v3794_v41 = vrot.slane %v3792_v4, 5  ;;  %1992 = vst.msk [vmem:[#allocation3 + $0x60] sm:$0xff] %vm945_vm3, %v5890_v28  ;;  %v5891_v56 = vld [vmem:[#allocation2 + $0xa8] sm:$0xff]  }
 0x182   : > { %v3766_v50 = vrot.slane %v3765_v49, 4  ;;  %v4172_v21 = vrot.slane %v4035_v3, 5  ;;  %v4175_v54 = vrot.slane %v4036_v20, 5  ;;  %5648 = vmatmul.mubr.msk.bf16.gmra.mrb[16].mxu1 %vm2884_vm4, %v7297_v35  ;;  %4278 = vrot.lane.b32.xlu1 %v5482_v0, %s6013_s22  ;;  %v3779_v48 = vor.u32 %v3778_v16, %v3775_v11  ;;  %v2499_v0 = vpop.permute.xlu1 %2498  ;;  %v3501_v40 = vld [vmem:[#allocation2 + $0xbc] sm:$0x1] }
 0x183   : > { %v3761_v29 = vsel %vm6131_vm11, %v3756_v61, %v3760_v60  ;;  %v3789_v45 = vor.u32 %v3788_v24, %v3784_v9  ;;  %v5468_v25 = vrot.slane %v4037_v26, 9  ;;  %v4179_v38 = vrot.slane %v4038_v58, 5  ;;  %2535 = vst.msk [vmem:[#allocation3 + $0x58] sm:$0xff] %vm1493_vm1, %v2499_v0  ;;  %v4041_v18 = vld [vmem:[#allocation2 + $0xac] sm:$0xf]  ;;  %v5904_v24 = vld [vmem:[#allocation2 + $0x90] sm:$0xff]  }
 0x184   : > { %v3771_v19 = vsel %vm6131_vm11, %v3766_v50, %v3770_v37  ;;  %v4173_v35 = vsel %vm6116_vm5, %v5467_v33, %v4172_v21  ;;  %v4174_v62 = vrot.slane %v4172_v21, 4  ;;  %v3780_v31 = vrot.slane %v3779_v48, 4  ;;  %v4040_v37 = vld [vmem:[#allocation2 + $0xa8] sm:$0xe]  ;;  %v4042_v2 = vld [vmem:[#allocation2 + $0xb0] sm:$0x1] }
 0x185   : > { %v5451_v30 = vcombine.low %v3761_v29, %v3771_v19  ;;  %v3790_v43 = vrot.slane %v3789_v45, 4  ;;  %v4182_v42 = vrot.slane %v4039_v1, 5  ;;  %v4180_v10 = vsel %vm6116_vm5, %v5468_v25, %v4179_v38  ;;  %v4043_v11 = vld [vmem:[#allocation2 + $0xb4] sm:$0xe]  ;;  %v4045_v45 = vld [vmem:[#allocation2 + $0xbc] sm:$0x1] }
 0x186   : > { %v4176_v14 = vsel %vm6116_vm5, %v4174_v62, %v4175_v54  ;;  %v4181_v32 = vrot.slane %v4179_v38, 4  ;;  %v3797_v34 = vshrl.u32 %v3496_v47, 16  ;;  %v3785_v23 = vsel %vm6131_vm11, %v3780_v31, %v3784_v9  ;;  %v2819_v16 = vpop.permute.xlu1 %2818  ;;  %v1847_v9 = vld [vmem:[#allocation3 + $0x68] sm:$0xff]  ;;  %v4044_v54 = vld [vmem:[#allocation2 + $0xb8] sm:$0xf] }
 0x187   : > { %3960 = vrot.lane.b32.xlu0 %v5451_v30, %s6014_s23  ;;  %v3795_v52 = vsel %vm6131_vm11, %v3790_v43, %v3794_v41  ;;  %v5483_v51 = vcombine.low %v4173_v35, %v4176_v14  ;;  %v3800_v17 = vshll.u32 %v3496_v47, 16  ;;  %v3806_v60 = vshll.u32 %v3497_v8, 16  ;;  %2855 = vst.msk [vmem:[#allocation3 + $0x58] sm:$0xff] %vm1817_vm2, %v2819_v16  ;;  %5690 = vmatmul.mubr.msk.bf16.gmra.mrb[24].mxu0 %vm2884_vm4, %v1847_v9  ;;  %v3502_v19 = vld [vmem:[#allocation2 + $0xc0] sm:$0xf]  ;;  %v2870_v35 = vld [vmem:[#allocation3 + $0x50] sm:$0xff] }
 0x188   : > { %v5452_v39 = vcombine.low %v3785_v23, %v3795_v52  ;;  %v4183_v57 = vsel %vm6116_vm5, %v4181_v32, %v4182_v42  ;;  %v3799_v63 = vrot.slane %v3797_v34, 4  ;;  %v3810_v53 = vshrl.u32 %v3497_v8, 16  ;;  %1993 = vst.msk [vmem:[#allocation3 + $0x68] sm:$0xff] %vm945_vm3, %v5891_v56  ;;  %5651 = vmatprep.mubr.msk.bf16.mxu1 %vm2884_vm4, %v2870_v35  ;;  %3454 = vst.msk [vmem:[#allocation3 + $0x50] sm:$0xff] %vm945_vm3, %v5904_v24  ;;  %v3503_v15 = vld [vmem:[#allocation2 + $0xc4] sm:$0xf] }
 0x189   : > { %v5484_v5 = vcombine.low %v4180_v10, %v4183_v57  ;;  %v3802_v3 = vrot.slane %v3800_v17, 5  ;;  %v3816_v6 = vshll.u32 %v3498_v44, 16  ;;  %v3808_v13 = vrot.slane %v3806_v60, 5  ;;  %v5905_v10 = vld [vmem:[#allocation2 + $0x9c] sm:$0xff]  }
 0x18a   : > { %3962 = vrot.lane.b32.xlu1 %v5452_v39, %s6014_s23  ;;  %v3821_v20 = vshrl.u32 %v3499_v59, 16  ;;  %v3824_v46 = vshll.u32 %v3499_v59, 16  ;;  %v3830_v49 = vshll.u32 %v3500_v55, 16  ;;  %v3812_v33 = vrot.slane %v3810_v53, 4  ;;  %v3504_v59 = vld [vmem:[#allocation2 + $0xc8] sm:$0x1] }
 0x18b   : > { %4280 = vrot.lane.b32.xlu0 %v5483_v51, %s6013_s22  ;;  %v3803_v4 = vor.u32 %v3802_v3, %v3799_v63  ;;  %v3818_v26 = vrot.slane %v3816_v6, 5  ;;  %v3834_v61 = vshrl.u32 %v3500_v55, 16  ;;  %v3840_v21 = vshll.u32 %v3501_v40, 16  ;;  %v3505_v55 = vld [vmem:[#allocation2 + $0xcc] sm:$0xf] }
 0x18c   : > { %v3823_v58 = vrot.slane %v3821_v20, 4  ;;  %v3826_v50 = vrot.slane %v3824_v46, 5  ;;  %v3832_v41 = vrot.slane %v3830_v49, 5  ;;  %v3813_v27 = vor.u32 %v3812_v33, %v3808_v13  ;;  %v3506_v63 = vld [vmem:[#allocation2 + $0xd0] sm:$0xf] }
 0x18d   : > { %v3804_v1 = vrot.slane %v3803_v4, 4  ;;  %v3836_v29 = vrot.slane %v3834_v61, 4  ;;  %v5469_v48 = vrot.slane %v4040_v37, 9  ;;  %v3842_v47 = vrot.slane %v3840_v21, 5  ;;  %v3507_v53 = vld [vmem:[#allocation2 + $0xd4] sm:$0x1] }
 0x18e   : > { %4282 = vrot.lane.b32.xlu1 %v5484_v5, %s6013_s22  ;;  %v3827_v25 = vor.u32 %v3826_v50, %v3823_v58  ;;  %v4186_v12 = vrot.slane %v4041_v18, 5  ;;  %v4189_v28 = vrot.slane %v4042_v2, 5  ;;  %v3814_v38 = vrot.slane %v3813_v27, 4  ;;  %v2871_v60 = vld [vmem:[#allocation3 + $0x58] sm:$0xff]  ;;  %v4046_v20 = vld [vmem:[#allocation2 + $0xc0] sm:$0xe] }
 0x18f   : > { %v3809_v62 = vsel %vm6131_vm11, %v3804_v1, %v3808_v13  ;;  %v3837_v30 = vor.u32 %v3836_v29, %v3832_v41  ;;  %v5470_v31 = vrot.slane %v4043_v11, 9  ;;  %v4193_v14 = vrot.slane %v4044_v54, 5  ;;  %5652 = vmatmul.mubr.msk.bf16.gmra.mrb[20].mxu1 %vm2884_vm4, %v2871_v60  ;;  %3455 = vst.msk [vmem:[#allocation3 + $0x58] sm:$0xff] %vm945_vm3, %v5905_v10  ;;  %v4047_v33 = vld [vmem:[#allocation2 + $0xc4] sm:$0xf] }
 0x190   : > { %v3828_v43 = vrot.slane %v3827_v25, 4  ;;  %v4187_v42 = vsel %vm6116_vm5, %v5469_v48, %v4186_v12  ;;  %v4188_v8 = vrot.slane %v4186_v12, 4  ;;  %v3819_v32 = vsel %vm6131_vm11, %v3814_v38, %v3818_v26  ;;  %v4048_v21 = vld [vmem:[#allocation2 + $0xc8] sm:$0x1]  ;;  %v4049_v48 = vld [vmem:[#allocation2 + $0xcc] sm:$0xe] }
 0x191   : > { %v3838_v44 = vrot.slane %v3837_v30, 4  ;;  %v4196_v34 = vrot.slane %v4045_v45, 5  ;;  %v3845_v22 = vshrl.u32 %v3502_v19, 16  ;;  %v5453_v23 = vcombine.low %v3809_v62, %v3819_v32  ;;  %v1474_v45 = vpop.permute.xlu0 %1473 }
 0x192   : > { %v3833_v52 = vsel %vm6131_vm11, %v3828_v43, %v3832_v41  ;;  %v4190_v51 = vsel %vm6116_vm5, %v4188_v8, %v4189_v28  ;;  %v4194_v17 = vsel %vm6116_vm5, %v5470_v31, %v4193_v14  ;;  %v4195_v39 = vrot.slane %v4193_v14, 4  ;;  %1508 = vst.msk [vmem:[#allocation3 + $0x70] sm:$0xff] %vm1493_vm1, %v1474_v45  ;;  %v4051_v31 = vld [vmem:[#allocation2 + $0xd4] sm:$0x1] }
 0x193   : > { %v3843_v0 = vsel %vm6131_vm11, %v3838_v44, %v3842_v47  ;;  %v5485_v56 = vcombine.low %v4187_v42, %v4190_v51  ;;  %v3847_v57 = vrot.slane %v3845_v22, 4  ;;  %3964 = vrot.lane.b32.xlu0 %v5453_v23, %s6014_s23  ;;  %v3848_v37 = vshll.u32 %v3502_v19, 16  ;;  %v4050_v19 = vld [vmem:[#allocation2 + $0xd0] sm:$0xf] }
 0x194   : > { %v5454_v40 = vcombine.low %v3833_v52, %v3843_v0  ;;  %v3854_v5 = vshll.u32 %v3503_v15, 16  ;;  %v3858_v3 = vshrl.u32 %v3503_v15, 16  ;;  %v4197_v6 = vsel %vm6116_vm5, %v4195_v39, %v4196_v34  ;;  %v4768_v34 = vld [vmem:[%s7890_s2] sm:$0x3]  ;;  %v5910_v51 = vld [vmem:[%s7889_s1 + $0xc] sm:$0x3f]  }
 0x195   : > { %v3864_v18 = vshll.u32 %v3504_v59, 16  ;;  %v3869_v2 = vshrl.u32 %v3505_v55, 16  ;;  %v3872_v13 = vshll.u32 %v3505_v55, 16  ;;  %v5486_v46 = vcombine.low %v4194_v17, %v4197_v6  ;;  %v1798_v15 = vpop.permute.xlu0 %1797  ;;  %v1476_v59 = vpop.permute.xlu1 %1475  ;;  %5832 = vmatprep.subr.msk.bf16.mxu1 %vm4817_vm7, %v4768_v34 }
 0x196   : > { %3966 = vrot.lane.b32.xlu1 %v5454_v40, %s6014_s23  ;;  %v3850_v49 = vrot.slane %v3848_v37, 5  ;;  %v3856_v11 = vrot.slane %v3854_v5, 5  ;;  %v3860_v4 = vrot.slane %v3858_v3, 4  ;;  %v3878_v9 = vshll.u32 %v3506_v63, 16  ;;  %1832 = vst.msk [vmem:[#allocation3 + $0x70] sm:$0xff] %vm1817_vm2, %v1798_v15  ;;  %v5892_v5 = vld [vmem:[#allocation2 + $0xb4] sm:$0xff]  }
 0x197   : > { %v3866_v26 = vrot.slane %v3864_v18, 5  ;;  %v3871_v61 = vrot.slane %v3869_v2, 4  ;;  %v3874_v16 = vrot.slane %v3872_v13, 5  ;;  %4284 = vrot.lane.b32.xlu0 %v5485_v56, %s6013_s22  ;;  %v3882_v50 = vshrl.u32 %v3506_v63, 16  ;;  %1509 = vst.msk [vmem:[#allocation3 + $0x78] sm:$0xff] %vm1493_vm1, %v1476_v59  ;;  %v5906_v13 = vld [vmem:[#allocation2 + $0xa8] sm:$0xff]  }
 0x198   : > { %v3851_v24 = vor.u32 %v3850_v49, %v3847_v57  ;;  %v3861_v58 = vor.u32 %v3860_v4, %v3856_v11  ;;  %v3888_v41 = vshll.u32 %v3507_v53, 16  ;;  %v3880_v1 = vrot.slane %v3878_v9, 5  ;;  %v5907_v49 = vld [vmem:[#allocation2 + $0xb4] sm:$0xff]   ;;  %v5923_v59 = vld [vmem:[%s6057_s21 + $0x60] sm:$0xff] }
 0x199   : > { %v3875_v54 = vor.u32 %v3874_v16, %v3871_v61  ;;  %v5471_v27 = vrot.slane %v4046_v20, 9  ;;  %v4200_v29 = vrot.slane %v4047_v33, 5  ;;  %v3884_v12 = vrot.slane %v3882_v50, 4  ;;  %v2501_v40 = vpop.permute.xlu0 %2500  ;;  %v1800_v37 = vpop.permute.xlu1 %1799  ;;  %v5908_v33 = vld [vmem:[#allocation2 + $0xc0] sm:$0xff]  }
 0x19a   : > { %4286 = vrot.lane.b32.xlu1 %v5486_v46, %s6013_s22  ;;  %v3852_v25 = vrot.slane %v3851_v24, 4  ;;  %v3862_v47 = vrot.slane %v3861_v58, 4  ;;  %v3890_v28 = vrot.slane %v3888_v41, 5  ;;  %v4203_v30 = vrot.slane %v4048_v21, 5  ;;  %2536 = vst.msk [vmem:[#allocation3 + $0x60] sm:$0xff] %vm1493_vm1, %v2501_v40  ;;  %v5909_v41 = vld [vmem:[#allocation2 + $0xcc] sm:$0xff]  }
 0x19b   : > { %v3876_v35 = vrot.slane %v3875_v54, 4  ;;  %v4201_v62 = vsel %vm6116_vm5, %v5471_v27, %v4200_v29  ;;  %v4202_v38 = vrot.slane %v4200_v29, 4  ;;  %v3885_v8 = vor.u32 %v3884_v12, %v3880_v1  ;;  %1833 = vst.msk [vmem:[#allocation3 + $0x78] sm:$0xff] %vm1817_vm2, %v1800_v37  ;;  %v5911_v54 = vld [vmem:[%s6057_s21] sm:$0xff]  ;;  %v5914_v12 = vld [vmem:[%s6057_s21 + $0x18] sm:$0xff]  ;;  %v5925_v40 = vld [vmem:[%s6057_s21 + $0x70] sm:$0xff] }
 0x19c   : > { %v3857_v43 = vsel %vm6131_vm11, %v3852_v25, %v3856_v11  ;;  %v3867_v42 = vsel %vm6131_vm11, %v3862_v47, %v3866_v26  ;;  %v5472_v14 = vrot.slane %v4049_v48, 9  ;;  %v4207_v44 = vrot.slane %v4050_v19, 5  ;;  %v5913_v47 = vld [vmem:[%s6057_s21 + $0x10] sm:$0xff]  ;;  %v5915_v19 = vld [vmem:[%s6057_s21 + $0x20] sm:$0xff]  ;;  %v5926_v37 = vld [vmem:[%s6057_s21 + $0x78] sm:$0xff] }
 0x19d   : > { %v5455_v10 = vcombine.low %v3857_v43, %v3867_v42  ;;  %v4204_v32 = vsel %vm6116_vm5, %v4202_v38, %v4203_v30  ;;  %v3881_v22 = vsel %vm6131_vm11, %v3876_v35, %v3880_v1  ;;  %v3886_v23 = vrot.slane %v3885_v8, 4  ;;  %v1848_v53 = vld [vmem:[#allocation3 + $0x70] sm:$0xff]  ;;  %v5917_v42 = vld [vmem:[%s6057_s21 + $0x30] sm:$0xff]  ;;  %v5918_v8 = vld [vmem:[%s6057_s21 + $0x38] sm:$0xff] }
 0x19e   : > { %v4210_v52 = vrot.slane %v4051_v31, 5  ;;  %v4396_v17 = vsel %vm2933_vm6, %v5910_v51, 0  ;;  %v5487_v55 = vcombine.low %v4201_v62, %v4204_v32  ;;  %v4209_v0 = vrot.slane %v4207_v44, 4  ;;  %5693 = vmatprep.mubr.msk.bf16.mxu0 %vm2884_vm4, %v1848_v53  ;;  %1994 = vst.msk [vmem:[#allocation3 + $0x70] sm:$0xff] %vm945_vm3, %v5892_v5  ;;  %v5912_v1 = vld [vmem:[%s6057_s21 + $0x8] sm:$0xff]  ;;  %v5919_v32 = vld [vmem:[%s6057_s21 + $0x40] sm:$0xff] }
 0x19f   : > { %3968 = vrot.lane.b32.xlu0 %v5455_v10, %s6014_s23  ;;  %5698 = vmatpush3.bf16.msra.mxu0 %v4396_v17  ;;  %v3891_v56 = vsel %vm6131_vm11, %v3886_v23, %v3890_v28  ;;  %v4208_v39 = vsel %vm6116_vm5, %v5472_v14, %v4207_v44  ;;  %v4819_v57 = vsel %vm4817_vm7, %v4768_v34, 0  ;;  %v2821_v3 = vpop.permute.xlu0 %2820  ;;  %v279_v27 = vpack.c.bf16 %v5912_v1, %v5911_v54  ;;  %v5916_v35 = vld [vmem:[%s6057_s21 + $0x28] sm:$0xff]  ;;  %v5922_v51 = vld [vmem:[%s6057_s21 + $0x58] sm:$0xff] }
 0x1a0   : > { %v5456_v63 = vcombine.low %v3881_v22, %v3891_v56  ;;  %v4211_v60 = vsel %vm6116_vm5, %v4209_v0, %v4210_v52  ;;  %5732 = vmatpush3.bf16.msra.mxu1 %v4819_v57  ;;  %v2503_v6 = vpop.permute.xlu1 %2502  ;;  %2856 = vst.msk [vmem:[#allocation3 + $0x60] sm:$0xff] %vm1817_vm2, %v2821_v3  ;;  %v280_v28 = vpack.c.bf16 %v5914_v12, %v5913_v47  ;;  %v5920_v44 = vld [vmem:[%s6057_s21 + $0x48] sm:$0xff]  ;;  %v5921_v52 = vld [vmem:[%s6057_s21 + $0x50] sm:$0xff]  ;;  %v5939_v12 = vld [vmem:[%s6057_s21 + $0xe0] sm:$0xff]  ;;  %vm4592_vm5 = vcmask 64512  }
 0x1a1   : > { %v5488_v36 = vcombine.low %v4208_v39, %v4211_v60  ;;  %2537 = vst.msk [vmem:[#allocation3 + $0x68] sm:$0xff] %vm1493_vm1, %v2503_v6  ;;  %v281_v62 = vpack.c.bf16 %v5916_v35, %v5915_v19  ;;  %v282_v14 = vpack.c.bf16 %v5918_v8, %v5917_v42  ;;  %v283_v34 = vpack.c.bf16 %v5920_v44, %v5919_v32  ;;  %v5928_v3 = vld [vmem:[%s6057_s21 + $0x88] sm:$0xff] }
 0x1a2   : > { %3970 = vrot.lane.b32.xlu1 %v5456_v63, %s6014_s23  ;;  %v1849_v2 = vld [vmem:[#allocation3 + $0x78] sm:$0xff]  ;;  %v284_v17 = vpack.c.bf16 %v5922_v51, %v5921_v52  ;;  %v286_v5 = vpack.c.bf16 %v5926_v37, %v5925_v40  ;;  %vm4763_vm8 = vcmask 1040384   ;;  %vm4766_vm9 = vcmask 58368  }
 0x1a3   : > { %4288 = vrot.lane.b32.xlu0 %v5487_v55, %s6013_s22  ;;  %5694 = vmatmul.mubr.msk.bf16.gmra.mrb[28].mxu0 %vm2884_vm4, %v1849_v2  ;;  %1995 = vst.msk [vmem:[#allocation3 + $0x78] sm:$0xff] %vm945_vm3, %v5893_v7  ;;  %v5924_v55 = vld [vmem:[%s6057_s21 + $0x68] sm:$0xff]  ;;  %v5929_v2 = vld [vmem:[%s6057_s21 + $0x90] sm:$0xff] }
 0x1a4   : > { %v2823_v18 = vpop.permute.xlu1 %2822  ;;  %v285_v0 = vpack.c.bf16 %v5924_v55, %v5923_v59 }
 0x1a5   : > { %2857 = vst.msk [vmem:[#allocation3 + $0x68] sm:$0xff] %vm1817_vm2, %v2823_v18 }
 0x1a6   : > { %4290 = vrot.lane.b32.xlu1 %v5488_v36, %s6013_s22  ;;  %v5927_v36 = vld [vmem:[%s6057_s21 + $0x80] sm:$0xff] }
 0x1a7   : > { %v2872_v46 = vld [vmem:[#allocation3 + $0x60] sm:$0xff]  ;;  %v287_v53 = vpack.c.bf16 %v5928_v3, %v5927_v36 }
 0x1a8   : > { %5655 = vmatprep.mubr.msk.bf16.mxu1 %vm2884_vm4, %v2872_v46  ;;  %3456 = vst.msk [vmem:[#allocation3 + $0x60] sm:$0xff] %vm945_vm3, %v5906_v13  ;;  %v5930_v13 = vld [vmem:[%s6057_s21 + $0x98] sm:$0xff]  ;;  %v5931_v46 = vld [vmem:[%s6057_s21 + $0xa0] sm:$0xff] }
 0x1ab   : > { %v2505_v20 = vpop.permute.xlu0 %2504 }
 0x1ac   : > { %2538 = vst.msk [vmem:[#allocation3 + $0x70] sm:$0xff] %vm1493_vm1, %v2505_v20  ;;  %v2873_v4 = vld [vmem:[#allocation3 + $0x68] sm:$0xff]  ;;  %v288_v20 = vpack.c.bf16 %v5930_v13, %v5929_v2 }
 0x1ad   : > { %5656 = vmatmul.mubr.msk.bf16.gmra.mrb[24].mxu1 %vm2884_vm4, %v2873_v4  ;;  %3457 = vst.msk [vmem:[#allocation3 + $0x68] sm:$0xff] %vm945_vm3, %v5907_v49  ;;  %v5932_v49 = vld [vmem:[%s6057_s21 + $0xa8] sm:$0xff] }
 0x1af   : > { %v2825_v11 = vpop.permute.xlu0 %2824 }
 0x1b0   : > { %2858 = vst.msk [vmem:[#allocation3 + $0x70] sm:$0xff] %vm1817_vm2, %v2825_v11  ;;  %v289_v11 = vpack.c.bf16 %v5932_v49, %v5931_v46 }
 0x1b7   : > { %v3941_v26 = vpop.permute.xlu0 %3940  ;;  %v2874_v61 = vld [vmem:[#allocation3 + $0x70] sm:$0xff] }
 0x1b8   : > { %3988 = vst.msk [vmem:[#allocation3] sm:$0xff] %vm1493_vm1, %v3941_v26  ;;  %5659 = vmatprep.mubr.msk.bf16.mxu1 %vm2884_vm4, %v2874_v61 }
 0x1b9   : > { %3458 = vst.msk [vmem:[#allocation3 + $0x70] sm:$0xff] %vm945_vm3, %v5908_v33 }
 0x1bb   : > { %v4261_v16 = vpop.permute.xlu0 %4260 }
 0x1bc   : > { %4308 = vst.msk [vmem:[#allocation3] sm:$0xff] %vm1817_vm2, %v4261_v16  ;;  %v5933_v16 = vld [vmem:[%s6057_s21 + $0xb0] sm:$0xff] }
 0x1c1   : > { %v2507_v9 = vpop.permute.xlu1 %2506 }
 0x1c2   : > { %2539 = vst.msk [vmem:[#allocation3 + $0x78] sm:$0xff] %vm1493_vm1, %v2507_v9  ;;  %v5934_v9 = vld [vmem:[%s6057_s21 + $0xb8] sm:$0xff] }
 0x1c3   : > { %v4324_v58 = vld [vmem:[#allocation3] sm:$0xff] }
 0x1c4   : > { %5699 = vmatprep.mubr.msk.bf16.mxu0 %vm2884_vm4, %v4324_v58  ;;  %v5935_v58 = vld [vmem:[%s6057_s21 + $0xc0] sm:$0xff] }
 0x1c5   : > { %v2827_v24 = vpop.permute.xlu1 %2826 }
 0x1c6   : > { %2859 = vst.msk [vmem:[#allocation3 + $0x78] sm:$0xff] %vm1817_vm2, %v2827_v24  ;;  %v290_v24 = vpack.c.bf16 %v5934_v9, %v5933_v16 }
 0x1c7   : > { %v3945_v21 = vpop.permute.xlu0 %3944 }
 0x1c8   : > { %3990 = vst.msk [vmem:[#allocation3 + $0x10] sm:$0xff] %vm1493_vm1, %v3945_v21 }
 0x1c9   : > { %v3943_v50 = vpop.permute.xlu1 %3942 }
 0x1ca   : > { %3989 = vst.msk [vmem:[#allocation3 + $0x8] sm:$0xff] %vm1493_vm1, %v3943_v50  ;;  %v5936_v50 = vld [vmem:[%s6057_s21 + $0xc8] sm:$0xff] }
 0x1cb   : > { %v4265_v45 = vpop.permute.xlu0 %4264 }
 0x1cc   : > { %4310 = vst.msk [vmem:[#allocation3 + $0x10] sm:$0xff] %vm1817_vm2, %v4265_v45  ;;  %v5938_v45 = vld [vmem:[%s6057_s21 + $0xd8] sm:$0xff] }
 0x1cd   : > { %v4263_v29 = vpop.permute.xlu1 %4262  ;;  %v2875_v48 = vld [vmem:[#allocation3 + $0x78] sm:$0xff] }
 0x1ce   : > { %4309 = vst.msk [vmem:[#allocation3 + $0x8] sm:$0xff] %vm1817_vm2, %v4263_v29  ;;  %5660 = vmatmul.mubr.msk.bf16.gmra.mrb[28].mxu1 %vm2884_vm4, %v2875_v48  ;;  %v5937_v48 = vld [vmem:[%s6057_s21 + $0xd0] sm:$0xff] }
 0x1cf   : > { %3459 = vst.msk [vmem:[#allocation3 + $0x78] sm:$0xff] %vm945_vm3, %v5909_v41  ;;  %5733 = vmatprep.mubr.msk.bf16.mxu1 %vm945_vm3, %v279_v27  ;;  %v291_v41 = vpack.c.bf16 %v5936_v50, %v5935_v58 }
 0x1d1   : > { %v3947_v25 = vpop.permute.xlu1 %3946 }
 0x1d2   : > { %3991 = vst.msk [vmem:[#allocation3 + $0x18] sm:$0xff] %vm1493_vm1, %v3947_v25  ;;  %v292_v25 = vpack.c.bf16 %v5938_v45, %v5937_v48 }
 0x1d3   : > { %v4326_v31 = vld [vmem:[#allocation3 + $0x10] sm:$0xff] }
 0x1d4   : > { %v3949_v43 = vpop.permute.xlu0 %3948 }
 0x1d5   : > { %v4267_v38 = vpop.permute.xlu1 %4266  ;;  %v4325_v30 = vld [vmem:[#allocation3 + $0x8] sm:$0xff]  ;;  %3992 = vst.msk [vmem:[#allocation3 + $0x20] sm:$0xff] %vm1493_vm1, %v3949_v43 }
 0x1d6   : > { %4311 = vst.msk [vmem:[#allocation3 + $0x18] sm:$0xff] %vm1817_vm2, %v4267_v38  ;;  %5700 = vmatmul.mubr.msk.bf16.vlgmr.msra.gmra.mrb[0].mxu0 %vm2884_vm4, %v4325_v30  ;;  %5734 = vmatmul.mubr.msk.bf16.vlgmr.msra.gmra.mrb[32].mxu1 %vm945_vm3, %v280_v28  ;;  %v5940_v28 = vld [vmem:[%s6057_s21 + $0xe8] sm:$0xff]  ;;  %v5941_v38 = vld [vmem:[%s6057_s21 + $0xf0] sm:$0xff]  ;;  %v5942_v30 = vld [vmem:[%s6057_s21 + $0xf8] sm:$0xff] }
 0x1d7   : > { %5737 = vmatprep.mubr.msk.bf16.mxu1 %vm945_vm3, %v281_v62  ;;  %5703 = vmatprep.mubr.msk.bf16.mxu0 %vm2884_vm4, %v4326_v31  ;;  %v293_v19 = vpack.c.bf16 %v5940_v28, %v5939_v12  ;;  %v294_v31 = vpack.c.bf16 %v5942_v30, %v5941_v38 }
 0x1d8   : > { %v4269_v15 = vpop.permute.xlu0 %4268 }
 0x1d9   : > { %v3951_v10 = vpop.permute.xlu1 %3950  ;;  %4312 = vst.msk [vmem:[#allocation3 + $0x20] sm:$0xff] %vm1817_vm2, %v4269_v15 }
 0x1da   : > { %3993 = vst.msk [vmem:[#allocation3 + $0x28] sm:$0xff] %vm1493_vm1, %v3951_v10 }
 0x1dd   : > { %v4327_v22 = vld [vmem:[#allocation3 + $0x18] sm:$0xff]  ;;  %v4271_v23 = vpop.permute.xlu1 %4270 }
 0x1de   : > { %5704 = vmatmul.mubr.msk.bf16.gmra.mrb[4].mxu0 %vm2884_vm4, %v4327_v22  ;;  %5738 = vmatmul.mubr.msk.bf16.gmra.mrb[36].mxu1 %vm945_vm3, %v282_v14  ;;  %4313 = vst.msk [vmem:[#allocation3 + $0x28] sm:$0xff] %vm1817_vm2, %v4271_v23 }
 0x1df   : > { %5741 = vmatprep.mubr.msk.bf16.mxu1 %vm945_vm3, %v283_v34 }
 0x1e0   : > { %v4328_v56 = vld [vmem:[#allocation3 + $0x20] sm:$0xff] }
 0x1e1   : > { %v3953_v39 = vpop.permute.xlu0 %3952  ;;  %5707 = vmatprep.mubr.msk.bf16.mxu0 %vm2884_vm4, %v4328_v56 }
 0x1e2   : > { %3994 = vst.msk [vmem:[#allocation3 + $0x30] sm:$0xff] %vm1493_vm1, %v3953_v39 }
 0x1e5   : > { %v4329_v57 = vld [vmem:[#allocation3 + $0x28] sm:$0xff]  ;;  %v3955_v63 = vpop.permute.xlu1 %3954 }
 0x1e6   : > { %5742 = vmatmul.mubr.msk.bf16.gmra.mrb[40].mxu1 %vm945_vm3, %v284_v17  ;;  %5708 = vmatmul.mubr.msk.bf16.gmra.mrb[8].mxu0 %vm2884_vm4, %v4329_v57  ;;  %3995 = vst.msk [vmem:[#allocation3 + $0x38] sm:$0xff] %vm1493_vm1, %v3955_v63  ;;  %v4273_v60 = vpop.permute.xlu0 %4272 }
 0x1e7   : > { %5745 = vmatprep.mubr.msk.bf16.mxu1 %vm945_vm3, %v285_v0  ;;  %4314 = vst.msk [vmem:[#allocation3 + $0x30] sm:$0xff] %vm1817_vm2, %v4273_v60 }
 0x1e9   : > { %v4275_v6 = vpop.permute.xlu1 %4274 }
 0x1ea   : > { %4315 = vst.msk [vmem:[#allocation3 + $0x38] sm:$0xff] %vm1817_vm2, %v4275_v6 }
 0x1ed   : > { %v3957_v7 = vpop.permute.xlu0 %3956 }
 0x1ee   : > { %5746 = vmatmul.mubr.msk.bf16.gmra.mrb[44].mxu1 %vm945_vm3, %v286_v5  ;;  %3996 = vst.msk [vmem:[#allocation3 + $0x40] sm:$0xff] %vm1493_vm1, %v3957_v7  ;;  %v4330_v18 = vld [vmem:[#allocation3 + $0x30] sm:$0xff] }
 0x1ef   : > { %5749 = vmatprep.mubr.msk.bf16.mxu1 %vm945_vm3, %v287_v53  ;;  %5711 = vmatprep.mubr.msk.bf16.mxu0 %vm2884_vm4, %v4330_v18 }
 0x1f0   : > { %v3959_v4 = vpop.permute.xlu1 %3958 }
 0x1f1   : > { %v4277_v33 = vpop.permute.xlu0 %4276  ;;  %v4331_v26 = vld [vmem:[#allocation3 + $0x38] sm:$0xff]  ;;  %3997 = vst.msk [vmem:[#allocation3 + $0x48] sm:$0xff] %vm1493_vm1, %v3959_v4 }
 0x1f2   : > { %4316 = vst.msk [vmem:[#allocation3 + $0x40] sm:$0xff] %vm1817_vm2, %v4277_v33  ;;  %5712 = vmatmul.mubr.msk.bf16.gmra.mrb[12].mxu0 %vm2884_vm4, %v4331_v26 }
 0x1f4   : > { %v4279_v61 = vpop.permute.xlu1 %4278 }
 0x1f5   : > { %4317 = vst.msk [vmem:[#allocation3 + $0x48] sm:$0xff] %vm1817_vm2, %v4279_v61 }
 0x1f6   : > { %5750 = vmatmul.mubr.msk.bf16.gmra.mrb[48].mxu1 %vm945_vm3, %v288_v20 }
 0x1f7   : > { %5753 = vmatprep.mubr.msk.bf16.mxu1 %vm945_vm3, %v289_v11 }
 0x1f9   : > { %v3961_v21 = vpop.permute.xlu0 %3960  ;;  %v4332_v54 = vld [vmem:[#allocation3 + $0x40] sm:$0xff] }
 0x1fa   : > { %3998 = vst.msk [vmem:[#allocation3 + $0x50] sm:$0xff] %vm1493_vm1, %v3961_v21  ;;  %5715 = vmatprep.mubr.msk.bf16.mxu0 %vm2884_vm4, %v4332_v54 }
 0x1fc   : > { %v3963_v1 = vpop.permute.xlu1 %3962  ;;  %v4333_v29 = vld [vmem:[#allocation3 + $0x48] sm:$0xff] }
 0x1fd   : > { %3999 = vst.msk [vmem:[#allocation3 + $0x58] sm:$0xff] %vm1493_vm1, %v3963_v1  ;;  %v4281_v27 = vpop.permute.xlu0 %4280  ;;  %5716 = vmatmul.mubr.msk.bf16.gmra.mrb[16].mxu0 %vm2884_vm4, %v4333_v29 }
 0x1fe   : > { %5754 = vmatmul.mubr.msk.bf16.gmra.mrb[52].mxu1 %vm945_vm3, %v290_v24  ;;  %4318 = vst.msk [vmem:[#allocation3 + $0x50] sm:$0xff] %vm1817_vm2, %v4281_v27 }
 0x1ff   : > { %5757 = vmatprep.mubr.msk.bf16.mxu1 %vm945_vm3, %v291_v41 }
 0x200   : > { %v4283_v47 = vpop.permute.xlu1 %4282 }
 0x201   : > { %4319 = vst.msk [vmem:[#allocation3 + $0x58] sm:$0xff] %vm1817_vm2, %v4283_v47 }
 0x205   : > { %v4334_v35 = vld [vmem:[#allocation3 + $0x50] sm:$0xff]  ;;  %v3965_v62 = vpop.permute.xlu0 %3964 }
 0x206   : > { %5758 = vmatmul.mubr.msk.bf16.gmra.mrb[56].mxu1 %vm945_vm3, %v292_v25  ;;  %5719 = vmatprep.mubr.msk.bf16.mxu0 %vm2884_vm4, %v4334_v35  ;;  %4000 = vst.msk [vmem:[#allocation3 + $0x60] sm:$0xff] %vm1493_vm1, %v3965_v62 }
 0x207   : > { %5761 = vmatprep.mubr.msk.bf16.mxu1 %vm945_vm3, %v293_v19 }
 0x208   : > { %v3967_v43 = vpop.permute.xlu1 %3966  ;;  %v4335_v42 = vld [vmem:[#allocation3 + $0x58] sm:$0xff] }
 0x209   : > { %4001 = vst.msk [vmem:[#allocation3 + $0x68] sm:$0xff] %vm1493_vm1, %v3967_v43  ;;  %5720 = vmatmul.mubr.msk.bf16.gmra.mrb[20].mxu0 %vm2884_vm4, %v4335_v42  ;;  %v4285_v8 = vpop.permute.xlu0 %4284 }
 0x20a   : > { %4320 = vst.msk [vmem:[#allocation3 + $0x60] sm:$0xff] %vm1817_vm2, %v4285_v8 }
 0x20c   : > { %v4287_v14 = vpop.permute.xlu1 %4286 }
 0x20d   : > { %4321 = vst.msk [vmem:[#allocation3 + $0x68] sm:$0xff] %vm1817_vm2, %v4287_v14 }
 0x20e   : > { %5762 = vmatmul.mubr.msk.bf16.gmra.mrb[60].mxu1 %vm945_vm3, %v294_v31 }
 0x211   : > { %v3969_v10 = vpop.permute.xlu0 %3968  ;;  %v4336_v32 = vld [vmem:[#allocation3 + $0x60] sm:$0xff] }
 0x212   : > { %4002 = vst.msk [vmem:[#allocation3 + $0x70] sm:$0xff] %vm1493_vm1, %v3969_v10  ;;  %5723 = vmatprep.mubr.msk.bf16.mxu0 %vm2884_vm4, %v4336_v32 }
 0x214   : > { %v4337_v44 = vld [vmem:[#allocation3 + $0x68] sm:$0xff]  ;;  %v3971_v34 = vpop.permute.xlu1 %3970 }
 0x215   : > { %v4289_v15 = vpop.permute.xlu0 %4288  ;;  %5724 = vmatmul.mubr.msk.bf16.gmra.mrb[24].mxu0 %vm2884_vm4, %v4337_v44  ;;  %4003 = vst.msk [vmem:[#allocation3 + $0x78] sm:$0xff] %vm1493_vm1, %v3971_v34 }
 0x216   : > { %4322 = vst.msk [vmem:[#allocation3 + $0x70] sm:$0xff] %vm1817_vm2, %v4289_v15 }
 0x218   : > { %v4291_v22 = vpop.permute.xlu1 %4290 }
 0x219   : > { %4323 = vst.msk [vmem:[#allocation3 + $0x78] sm:$0xff] %vm1817_vm2, %v4291_v22 }
 0x21d   : > { %v4338_v23 = vld [vmem:[#allocation3 + $0x70] sm:$0xff] }
 0x21e   : > { %5727 = vmatprep.mubr.msk.bf16.mxu0 %vm2884_vm4, %v4338_v23 }
 0x220   : > { %v4339_v52 = vld [vmem:[#allocation3 + $0x78] sm:$0xff] }
 0x221   : > { %5728 = vmatmul.mubr.msk.bf16.gmra.mrb[28].mxu0 %vm2884_vm4, %v4339_v52 }
 0x235   : > { %v5633_v51 = vpop.f32.mrb[0].mxu1 }
 0x236   : > { %v2971_v17 = vpop.f32.mrb[1].mxu1 }
 0x237   : > { %v5634_v59 = vpop.f32.mrb[2].mxu1 }
 0x238   : > { %v2974_v55 = vpop.f32.mrb[3].mxu1 }
 0x23d   : > { %v7532_v0 = vpop.f32.mrb[4].mxu1 }
 0x23e   : > { %v7534_v56 = vpop.f32.mrb[5].mxu1 }
 0x23f   : > { %v7536_v39 = vpop.f32.mrb[6].mxu1 }
 0x240   : > { %v7538_v57 = vpop.f32.mrb[7].mxu1 }
 0x245   : > { %v7540_v63 = vpop.f32.mrb[8].mxu1 }
 0x246   : > { %v7542_v60 = vpop.f32.mrb[9].mxu1 }
 0x247   : > { %v7544_v40 = vpop.f32.mrb[10].mxu1 }
 0x248   : > { %v7546_v37 = vpop.f32.mrb[11].mxu1 }
 0x24d   : > { %v7548_v5 = vpop.f32.mrb[12].mxu1 }
 0x24e   : > { %v7550_v36 = vpop.f32.mrb[13].mxu1 }
 0x24f   : > { %v7552_v3 = vpop.f32.mrb[14].mxu1 }
 0x250   : > { %v7554_v53 = vpop.f32.mrb[15].mxu1 }
 0x255   : > { %v7556_v6 = vpop.f32.mrb[16].mxu1 }
 0x256   : > { %v7558_v7 = vpop.f32.mrb[17].mxu1 }
 0x257   : > { %v7560_v18 = vpop.f32.mrb[18].mxu1 }
 0x258   : > { %v7562_v2 = vpop.f32.mrb[19].mxu1 }
 0x262   : > { %v7564_v13 = vpop.f32.mrb[20].mxu1 }
 0x263   : > { %v7566_v20 = vpop.f32.mrb[21].mxu1 }
 0x264   : > { %v7568_v46 = vpop.f32.mrb[22].mxu1 }
 0x265   : > { %v7570_v49 = vpop.f32.mrb[23].mxu1 }
 0x280   : > { %v7572_v11 = vpop.f32.mrb[24].mxu1 }
 0x281   : > { %v7574_v4 = vpop.f32.mrb[25].mxu1 }
 0x282   : > { %v7576_v33 = vpop.f32.mrb[26].mxu1 }
 0x283   : > { %v7578_v26 = vpop.f32.mrb[27].mxu1 }
 0x2a1   : > { %v7580_v61 = vpop.f32.mrb[28].mxu1 }
 0x2a2   : > { %v7582_v16 = vpop.f32.mrb[29].mxu1 }
 0x2a3   : > { %v7584_v9 = vpop.f32.mrb[30].mxu1 }
 0x2a4   : > { %v7586_v24 = vpop.f32.mrb[31].mxu1 }
 0x2a9   : > { %v5701_v58 = vpop.f32.mrb[0].mxu0  ;;  %v5735_v50 = vpop.f32.mrb[32].mxu1 }
 0x2aa   : > { %v5765_v41 = vadd.f32 %v5701_v58, %v5633_v51  ;;  %v5054_v21 = vmul.f32 %v5735_v50, %v5735_v50  ;;  %v4432_v54 = vpop.f32.mrb[1].mxu0  ;;  %v4855_v1 = vpop.f32.mrb[33].mxu1  ;;  %v4986_v35 = vsel %vm4592_vm5, %v5735_v50, 0.0 }
 0x2ab   : > { %v5766_v27 = vadd.f32 %v4432_v54, %v2971_v17  ;;  %v5052_v29 = vmul.f32 %v4855_v1, %v4855_v1  ;;  %v5702_v48 = vpop.f32.mrb[2].mxu0  ;;  %v5736_v45 = vpop.f32.mrb[34].mxu1  ;;  %v4983_v62 = vsel %vm4592_vm5, %v4855_v1, 0.0 }
 0x2ac   : > { %v4664_v25 = vmul.f32 %v5765_v41, %v5765_v41  ;;  %v5767_v47 = vadd.f32 %v5702_v48, %v5634_v59  ;;  %v4435_v12 = vpop.f32.mrb[3].mxu0  ;;  %v4858_v28 = vpop.f32.mrb[35].mxu1  ;;  %v4596_v19 = vsel %vm4592_vm5, %v5765_v41, 0.0  ;;  %v5087_v38 = vsel %vm4592_vm5, %v5054_v21, 0.0 }
 0x2ad   : > { %v4593_v30 = vsel %vm4592_vm5, %v5766_v27, 0.0  ;;  %v4662_v31 = vmul.f32 %v5766_v27, %v5766_v27  ;;  %v5084_v43 = vsel %vm4592_vm5, %v5052_v29, 0.0  ;;  %v5768_v8 = vadd.f32 %v4435_v12, %v2974_v55 }
 0x2ae   : > { %v4665_v42 = vmul.f32 %v5767_v47, %v5767_v47  ;;  %v4984_v14 = vsel %vm4592_vm5, %v4858_v28, 0.0  ;;  %v5053_v10 = vmul.f32 %v4858_v28, %v4858_v28  ;;  %v4697_v32 = vsel %vm4592_vm5, %v4664_v25, 0.0 }
 0x2af   : > { %v4988_v44 = vsel %vm4592_vm5, %v5736_v45, 0.0  ;;  %v5055_v34 = vmul.f32 %v5736_v45, %v5736_v45  ;;  %v4985_v15 = vadd.f32 %v4984_v14, %v4983_v62  ;;  %v4598_v22 = vsel %vm4592_vm5, %v5767_v47, 0.0 }
 0x2b0   : > { %v4594_v23 = vsel %vm4592_vm5, %v5768_v8, 0.0  ;;  %v4663_v52 = vmul.f32 %v5768_v8, %v5768_v8  ;;  %v5085_v51 = vsel %vm4592_vm5, %v5053_v10, 0.0  ;;  %v4694_v1 = vsel %vm4592_vm5, %v4662_v31, 0.0 }
 0x2b1   : > { %v5705_v17 = vpop.f32.mrb[4].mxu0  ;;  %v5739_v59 = vpop.f32.mrb[36].mxu1  ;;  %v4595_v58 = vadd.f32 %v4594_v23, %v4593_v30  ;;  %v4987_v55 = vadd.f32 %v4986_v35, %v4985_v15  ;;  %v5086_v50 = vadd.f32 %v5085_v51, %v5084_v43  ;;  %v4699_v27 = vsel %vm4592_vm5, %v4665_v42, 0.0 }
 0x2b2   : > { %v5769_v41 = vadd.f32 %v5705_v17, %v7532_v0  ;;  %v4448_v21 = vpop.f32.mrb[5].mxu0  ;;  %v4871_v54 = vpop.f32.mrb[37].mxu1  ;;  %v4695_v29 = vsel %vm4592_vm5, %v4663_v52, 0.0  ;;  %v5089_v47 = vsel %vm4592_vm5, %v5055_v34, 0.0  ;;  %v5058_v43 = vmul.f32 %v5739_v59, %v5739_v59 }
 0x2b3   : > { %v5770_v48 = vadd.f32 %v4448_v21, %v7534_v56  ;;  %v5706_v45 = vpop.f32.mrb[6].mxu0  ;;  %v5740_v25 = vpop.f32.mrb[38].mxu1  ;;  %v4597_v12 = vadd.f32 %v4596_v19, %v4595_v58  ;;  %v4696_v28 = vadd.f32 %v4695_v29, %v4694_v1  ;;  %v5088_v35 = vadd.f32 %v5087_v38, %v5086_v50 }
 0x2b4   : > { %v4451_v62 = vpop.f32.mrb[7].mxu0  ;;  %v4874_v30 = vpop.f32.mrb[39].mxu1  ;;  %v4668_v0 = vmul.f32 %v5769_v41, %v5769_v41  ;;  %v4989_v10 = vadd.f32 %v4988_v44, %v4987_v55  ;;  %v4990_v15 = vsel %vm4592_vm5, %v4871_v54, 0.0  ;;  %v4994_v56 = vsel %vm4592_vm5, %v5739_v59, 0.0 }
 0x2b5   : > { %v4600_v8 = vsel %vm4592_vm5, %v5770_v48, 0.0  ;;  %v4666_v31 = vmul.f32 %v5770_v48, %v5770_v48  ;;  %v4698_v14 = vadd.f32 %v4697_v32, %v4696_v28  ;;  %v4599_v42 = vadd.f32 %v4598_v22, %v4597_v12 }
 0x2b6   : > { %v5056_v34 = vmul.f32 %v4871_v54, %v4871_v54  ;;  %v5090_v19 = vadd.f32 %v5089_v47, %v5088_v35  ;;  %v4991_v51 = vadd.f32 %v4990_v15, %v4989_v10  ;;  %v5771_v17 = vadd.f32 %v5706_v45, %v7536_v39 }
 0x2b7   : > { %v4701_v23 = vsel %vm4592_vm5, %v4666_v31, 0.0  ;;  %v4601_v52 = vadd.f32 %v4600_v8, %v4599_v42  ;;  %v4700_v38 = vadd.f32 %v4699_v27, %v4698_v14  ;;  %v4604_v58 = vsel %vm4592_vm5, %v5769_v41, 0.0 }
 0x2b8   : > { %v5091_v50 = vsel %vm4592_vm5, %v5056_v34, 0.0  ;;  %v5059_v32 = vmul.f32 %v5740_v25, %v5740_v25  ;;  %v5772_v44 = vadd.f32 %v4451_v62, %v7538_v57  ;;  %v4705_v55 = vsel %vm4592_vm5, %v4668_v0, 0.0 }
 0x2b9   : > { %v5743_v22 = vpop.f32.mrb[40].mxu1  ;;  %v5095_v59 = vsel %vm4592_vm5, %v5058_v43, 0.0  ;;  %v4702_v21 = vadd.f32 %v4701_v23, %v4700_v38  ;;  %v5092_v54 = vadd.f32 %v5091_v50, %v5090_v19  ;;  %v4669_v29 = vmul.f32 %v5771_v17, %v5771_v17  ;;  %v5709_v41 = vpop.f32.mrb[8].mxu0 }
 0x2ba   : > { %v4887_v1 = vpop.f32.mrb[41].mxu1  ;;  %v4602_v27 = vsel %vm4592_vm5, %v5772_v44, 0.0  ;;  %v4667_v48 = vmul.f32 %v5772_v44, %v5772_v44  ;;  %v4992_v39 = vsel %vm4592_vm5, %v4874_v30, 0.0  ;;  %v4996_v47 = vsel %vm4592_vm5, %v5740_v25, 0.0  ;;  %v4464_v35 = vpop.f32.mrb[9].mxu0 }
 0x2bb   : > { %v5744_v45 = vpop.f32.mrb[42].mxu1  ;;  %v4603_v12 = vadd.f32 %v4602_v27, %v4601_v52  ;;  %v4993_v57 = vadd.f32 %v4992_v39, %v4991_v51  ;;  %v5057_v28 = vmul.f32 %v4874_v30, %v4874_v30  ;;  %v4606_v0 = vsel %vm4592_vm5, %v5771_v17, 0.0  ;;  %v5710_v14 = vpop.f32.mrb[10].mxu0 }
 0x2bc   : > { %v4890_v62 = vpop.f32.mrb[43].mxu1  ;;  %v5097_v43 = vsel %vm4592_vm5, %v5059_v32, 0.0  ;;  %v4703_v8 = vsel %vm4592_vm5, %v4667_v48, 0.0  ;;  %v5773_v31 = vadd.f32 %v5709_v41, %v7540_v63  ;;  %v4467_v25 = vpop.f32.mrb[11].mxu0  ;;  %v4707_v34 = vsel %vm4592_vm5, %v4669_v29, 0.0 }
 0x2bd   : > { %v4605_v42 = vadd.f32 %v4604_v58, %v4603_v12  ;;  %v4704_v10 = vadd.f32 %v4703_v8, %v4702_v21  ;;  %v4995_v15 = vadd.f32 %v4994_v56, %v4993_v57  ;;  %v5093_v23 = vsel %vm4592_vm5, %v5057_v28, 0.0 }
 0x2be   : > { %v5094_v30 = vadd.f32 %v5093_v23, %v5092_v54  ;;  %v5002_v19 = vsel %vm4592_vm5, %v5743_v22, 0.0  ;;  %v5062_v52 = vmul.f32 %v5743_v22, %v5743_v22  ;;  %v5774_v51 = vadd.f32 %v4464_v35, %v7542_v60 }
 0x2bf   : > { %v4706_v38 = vadd.f32 %v4705_v55, %v4704_v10  ;;  %v4607_v17 = vadd.f32 %v4606_v0, %v4605_v42  ;;  %v4997_v50 = vadd.f32 %v4996_v47, %v4995_v15  ;;  %v4672_v63 = vmul.f32 %v5773_v31, %v5773_v31 }
 0x2c0   : > { %v5096_v32 = vadd.f32 %v5095_v59, %v5094_v30  ;;  %v4998_v58 = vsel %vm4592_vm5, %v4887_v1, 0.0  ;;  %v5060_v44 = vmul.f32 %v4887_v1, %v4887_v1  ;;  %v4608_v21 = vsel %vm4592_vm5, %v5774_v51, 0.0 }
 0x2c1   : > { %v5747_v56 = vpop.f32.mrb[44].mxu1  ;;  %v4670_v27 = vmul.f32 %v5774_v51, %v5774_v51  ;;  %v4708_v48 = vadd.f32 %v4707_v34, %v4706_v38  ;;  %v4999_v29 = vadd.f32 %v4998_v58, %v4997_v50  ;;  %v4609_v39 = vadd.f32 %v4608_v21, %v4607_v17 }
 0x2c2   : > { %v4903_v54 = vpop.f32.mrb[45].mxu1  ;;  %v5098_v41 = vadd.f32 %v5097_v43, %v5096_v32  ;;  %v5099_v22 = vsel %vm4592_vm5, %v5060_v44, 0.0  ;;  %v5775_v60 = vadd.f32 %v5710_v14, %v7544_v40  ;;  %v4612_v59 = vsel %vm4592_vm5, %v5773_v31, 0.0 }
 0x2c3   : > { %v7631_v55 = vpop.f32.mrb[46].mxu1  ;;  %v4709_v47 = vsel %vm4592_vm5, %v4670_v27, 0.0  ;;  %v5063_v1 = vmul.f32 %v5744_v45, %v5744_v45  ;;  %v5776_v12 = vadd.f32 %v4467_v25, %v7546_v37  ;;  %v4713_v28 = vsel %vm4592_vm5, %v4672_v63, 0.0 }
 0x2c4   : > { %v7636_v57 = vpop.f32.mrb[47].mxu1  ;;  %v5103_v35 = vsel %vm4592_vm5, %v5062_v52, 0.0  ;;  %v4710_v0 = vadd.f32 %v4709_v47, %v4708_v48  ;;  %v5100_v43 = vadd.f32 %v5099_v22, %v5098_v41  ;;  %v5004_v8 = vsel %vm4592_vm5, %v5744_v45, 0.0 }
 0x2c5   : > { %v4610_v40 = vsel %vm4592_vm5, %v5776_v12, 0.0  ;;  %v4671_v14 = vmul.f32 %v5776_v12, %v5776_v12  ;;  %v5000_v31 = vsel %vm4592_vm5, %v4890_v62, 0.0  ;;  %v4614_v42 = vsel %vm4592_vm5, %v5775_v60, 0.0  ;;  %v5713_v30 = vpop.f32.mrb[12].mxu0 }
 0x2c6   : > { %v4611_v10 = vadd.f32 %v4610_v40, %v4609_v39  ;;  %v5001_v15 = vadd.f32 %v5000_v31, %v4999_v29  ;;  %v5061_v37 = vmul.f32 %v4890_v62, %v4890_v62  ;;  %v4673_v23 = vmul.f32 %v5775_v60, %v5775_v60  ;;  %v4480_v50 = vpop.f32.mrb[13].mxu0 }
 0x2c7   : > { %v5105_v25 = vsel %vm4592_vm5, %v5063_v1, 0.0  ;;  %v4711_v34 = vsel %vm4592_vm5, %v4671_v14, 0.0  ;;  %v5066_v52 = vmul.f32 %v5747_v56, %v5747_v56  ;;  %v5777_v58 = vadd.f32 %v5713_v30, %v7548_v5  ;;  %v5714_v21 = vpop.f32.mrb[14].mxu0 }
 0x2c8   : > { %v4613_v38 = vadd.f32 %v4612_v59, %v4611_v10  ;;  %v4712_v51 = vadd.f32 %v4711_v34, %v4710_v0  ;;  %v5003_v45 = vadd.f32 %v5002_v19, %v5001_v15  ;;  %v5101_v17 = vsel %vm4592_vm5, %v5061_v37, 0.0  ;;  %v4483_v22 = vpop.f32.mrb[15].mxu0 }
 0x2c9   : > { %v7647_v32 = vpop.f32.mrb[48].mxu1  ;;  %v5102_v63 = vadd.f32 %v5101_v17, %v5100_v43  ;;  %v5778_v62 = vadd.f32 %v4480_v50, %v7550_v36  ;;  %v5006_v44 = vsel %vm4592_vm5, %v4903_v54, 0.0  ;;  %v5064_v41 = vmul.f32 %v4903_v54, %v4903_v54 }
 0x2ca   : > { %v4919_v27 = vpop.f32.mrb[49].mxu1  ;;  %v4714_v48 = vadd.f32 %v4713_v28, %v4712_v51  ;;  %v4615_v29 = vadd.f32 %v4614_v42, %v4613_v38  ;;  %v5005_v39 = vadd.f32 %v5004_v8, %v5003_v45  ;;  %v4715_v60 = vsel %vm4592_vm5, %v4673_v23, 0.0 }
 0x2cb   : > { %v7652_v19 = vpop.f32.mrb[50].mxu1  ;;  %v5104_v59 = vadd.f32 %v5103_v35, %v5102_v63  ;;  %v4676_v47 = vmul.f32 %v5777_v58, %v5777_v58  ;;  %v4616_v1 = vsel %vm4592_vm5, %v5778_v62, 0.0  ;;  %v4674_v12 = vmul.f32 %v5778_v62, %v5778_v62 }
 0x2cc   : > { %v7656_v5 = vpop.f32.mrb[51].mxu1  ;;  %v4617_v36 = vadd.f32 %v4616_v1, %v4615_v29  ;;  %v4716_v0 = vadd.f32 %v4715_v60, %v4714_v48  ;;  %v5007_v43 = vadd.f32 %v5006_v44, %v5005_v39  ;;  %v5010_v28 = vsel %vm4592_vm5, %v5747_v56, 0.0 }
 0x2cd   : > { %v5106_v40 = vadd.f32 %v5105_v25, %v5104_v59  ;;  %v5107_v54 = vsel %vm4592_vm5, %v5064_v41, 0.0  ;;  %v5779_v8 = vadd.f32 %v5714_v21, %v7552_v3  ;;  %v5111_v14 = vsel %vm4592_vm5, %v5066_v52, 0.0 }
 0x2ce   : > { %v4717_v35 = vsel %vm4592_vm5, %v4674_v12, 0.0  ;;  %v5067_v31 = vmul.f32 %v7631_v55, %v7631_v55  ;;  %v5780_v42 = vadd.f32 %v4483_v22, %v7554_v53  ;;  %v4620_v10 = vsel %vm4592_vm5, %v5777_v58, 0.0 }
 0x2cf   : > { %v4718_v15 = vadd.f32 %v4717_v35, %v4716_v0  ;;  %v5108_v37 = vadd.f32 %v5107_v54, %v5106_v40  ;;  %v4677_v23 = vmul.f32 %v5779_v8, %v5779_v8  ;;  %v4721_v56 = vsel %vm4592_vm5, %v4676_v47, 0.0 }
 0x2d0   : > { %v4618_v25 = vsel %vm4592_vm5, %v5780_v42, 0.0  ;;  %v4675_v34 = vmul.f32 %v5780_v42, %v5780_v42  ;;  %v5008_v3 = vsel %vm4592_vm5, %v7636_v57, 0.0  ;;  %v5012_v52 = vsel %vm4592_vm5, %v7631_v55, 0.0  ;;  %v5717_v29 = vpop.f32.mrb[16].mxu0 }
 0x2d1   : > { %v7671_v30 = vpop.f32.mrb[52].mxu1  ;;  %v4619_v38 = vadd.f32 %v4618_v25, %v4617_v36  ;;  %v5009_v53 = vadd.f32 %v5008_v3, %v5007_v43  ;;  %v5065_v51 = vmul.f32 %v7636_v57, %v7636_v57  ;;  %v4622_v17 = vsel %vm4592_vm5, %v5779_v8, 0.0  ;;  %v4496_v22 = vpop.f32.mrb[17].mxu0 }
 0x2d2   : > { %v7677_v45 = vpop.f32.mrb[53].mxu1  ;;  %v4723_v50 = vsel %vm4592_vm5, %v4677_v23, 0.0  ;;  %v5113_v63 = vsel %vm4592_vm5, %v5067_v31, 0.0  ;;  %v4719_v58 = vsel %vm4592_vm5, %v4675_v34, 0.0  ;;  %v5781_v41 = vadd.f32 %v5717_v29, %v7556_v6  ;;  %v5718_v0 = vpop.f32.mrb[18].mxu0 }
 0x2d3   : > { %v7683_v62 = vpop.f32.mrb[54].mxu1  ;;  %v4621_v44 = vadd.f32 %v4620_v10, %v4619_v38  ;;  %v4720_v21 = vadd.f32 %v4719_v58, %v4718_v15  ;;  %v5011_v55 = vadd.f32 %v5010_v28, %v5009_v53  ;;  %v5109_v48 = vsel %vm4592_vm5, %v5065_v51, 0.0  ;;  %v4499_v8 = vpop.f32.mrb[19].mxu0 }
 0x2d4   : > { %v7686_v39 = vpop.f32.mrb[55].mxu1  ;;  %v5110_v57 = vadd.f32 %v5109_v48, %v5108_v37  ;;  %v5014_v60 = vsel %vm4592_vm5, %v4919_v27, 0.0  ;;  %v5068_v59 = vmul.f32 %v4919_v27, %v4919_v27  ;;  %v5782_v1 = vadd.f32 %v4496_v22, %v7558_v7 }
 0x2d5   : > { %v4722_v47 = vadd.f32 %v4721_v56, %v4720_v21  ;;  %v4623_v36 = vadd.f32 %v4622_v17, %v4621_v44  ;;  %v5013_v12 = vadd.f32 %v5012_v52, %v5011_v55  ;;  %v4680_v28 = vmul.f32 %v5781_v41, %v5781_v41 }
 0x2d6   : > { %v5112_v43 = vadd.f32 %v5111_v14, %v5110_v57  ;;  %v5070_v40 = vmul.f32 %v7647_v32, %v7647_v32  ;;  %v5115_v54 = vsel %vm4592_vm5, %v5068_v59, 0.0  ;;  %v4624_v6 = vsel %vm4592_vm5, %v5782_v1, 0.0 }
 0x2d7   : > { %v4678_v35 = vmul.f32 %v5782_v1, %v5782_v1  ;;  %v4724_v31 = vadd.f32 %v4723_v50, %v4722_v47  ;;  %v5015_v42 = vadd.f32 %v5014_v60, %v5013_v12  ;;  %v4625_v27 = vadd.f32 %v4624_v6, %v4623_v36 }
 0x2d8   : > { %v5114_v10 = vadd.f32 %v5113_v63, %v5112_v43  ;;  %v5783_v7 = vadd.f32 %v5718_v0, %v7560_v18  ;;  %v5018_v14 = vsel %vm4592_vm5, %v7647_v32, 0.0  ;;  %v5071_v23 = vmul.f32 %v7652_v19, %v7652_v19 }
 0x2d9   : > { %v7696_v15 = vpop.f32.mrb[56].mxu1  ;;  %v4725_v37 = vsel %vm4592_vm5, %v4678_v35, 0.0  ;;  %v5784_v56 = vadd.f32 %v4499_v8, %v7562_v2  ;;  %v4628_v34 = vsel %vm4592_vm5, %v5781_v41, 0.0  ;;  %v5119_v3 = vsel %vm4592_vm5, %v5070_v40, 0.0 }
 0x2da   : > { %v7704_v25 = vpop.f32.mrb[57].mxu1  ;;  %v4726_v52 = vadd.f32 %v4725_v37, %v4724_v31  ;;  %v5116_v18 = vadd.f32 %v5115_v54, %v5114_v10  ;;  %v4729_v53 = vsel %vm4592_vm5, %v4680_v28, 0.0  ;;  %v5016_v17 = vsel %vm4592_vm5, %v7656_v5, 0.0 }
 0x2db   : > { %v7708_v38 = vpop.f32.mrb[58].mxu1  ;;  %v4626_v32 = vsel %vm4592_vm5, %v5784_v56, 0.0  ;;  %v4679_v51 = vmul.f32 %v5784_v56, %v5784_v56  ;;  %v5020_v2 = vsel %vm4592_vm5, %v7652_v19, 0.0  ;;  %v5017_v58 = vadd.f32 %v5016_v17, %v5015_v42 }
 0x2dc   : > { %v7714_v50 = vpop.f32.mrb[59].mxu1  ;;  %v4627_v63 = vadd.f32 %v4626_v32, %v4625_v27  ;;  %v5069_v44 = vmul.f32 %v7656_v5, %v7656_v5  ;;  %v4630_v21 = vsel %vm4592_vm5, %v5783_v7, 0.0  ;;  %v4681_v55 = vmul.f32 %v5783_v7, %v5783_v7  ;;  %v5721_v59 = vpop.f32.mrb[20].mxu0 }
 0x2dd   : > { %v5121_v48 = vsel %vm4592_vm5, %v5071_v23, 0.0  ;;  %v4727_v29 = vsel %vm4592_vm5, %v4679_v51, 0.0  ;;  %v5019_v22 = vadd.f32 %v5018_v14, %v5017_v58  ;;  %v5785_v19 = vadd.f32 %v5721_v59, %v7564_v13  ;;  %v4512_v1 = vpop.f32.mrb[21].mxu0 }
 0x2de   : > { %v4629_v57 = vadd.f32 %v4628_v34, %v4627_v63  ;;  %v4728_v41 = vadd.f32 %v4727_v29, %v4726_v52  ;;  %v5117_v60 = vsel %vm4592_vm5, %v5069_v44, 0.0  ;;  %v5022_v5 = vsel %vm4592_vm5, %v7677_v45, 0.0  ;;  %v5722_v40 = vpop.f32.mrb[22].mxu0 }
 0x2df   : > { %v5118_v47 = vadd.f32 %v5117_v60, %v5116_v18  ;;  %v5072_v36 = vmul.f32 %v7677_v45, %v7677_v45  ;;  %v5786_v0 = vadd.f32 %v4512_v1, %v7566_v20  ;;  %v5021_v28 = vadd.f32 %v5020_v2, %v5019_v22  ;;  %v4515_v31 = vpop.f32.mrb[23].mxu0 }
 0x2e0   : > { %v4730_v12 = vadd.f32 %v4729_v53, %v4728_v41  ;;  %v4631_v43 = vadd.f32 %v4630_v21, %v4629_v57  ;;  %v4731_v8 = vsel %vm4592_vm5, %v4681_v55, 0.0  ;;  %v5074_v13 = vmul.f32 %v7671_v30, %v7671_v30 }
 0x2e1   : > { %v7730_v54 = vpop.f32.mrb[60].mxu1  ;;  %v5120_v6 = vadd.f32 %v5119_v3, %v5118_v47  ;;  %v5123_v35 = vsel %vm4592_vm5, %v5072_v36, 0.0  ;;  %v4632_v45 = vsel %vm4592_vm5, %v5786_v0, 0.0  ;;  %v4682_v27 = vmul.f32 %v5786_v0, %v5786_v0 }
 0x2e2   : > { %v7736_v42 = vpop.f32.mrb[61].mxu1  ;;  %v4732_v20 = vadd.f32 %v4731_v8, %v4730_v12  ;;  %v5023_v10 = vadd.f32 %v5022_v5, %v5021_v28  ;;  %v4684_v14 = vmul.f32 %v5785_v19, %v5785_v19  ;;  %v4633_v37 = vadd.f32 %v4632_v45, %v4631_v43 }
 0x2e3   : > { %v7739_v7 = vpop.f32.mrb[62].mxu1  ;;  %v5122_v23 = vadd.f32 %v5121_v48, %v5120_v6  ;;  %v5787_v56 = vadd.f32 %v5722_v40, %v7568_v46  ;;  %v5026_v3 = vsel %vm4592_vm5, %v7671_v30, 0.0  ;;  %v4733_v52 = vsel %vm4592_vm5, %v4682_v27, 0.0 }
 0x2e4   : > { %v7742_v34 = vpop.f32.mrb[63].mxu1  ;;  %v5788_v18 = vadd.f32 %v4515_v31, %v7570_v49  ;;  %v4636_v53 = vsel %vm4592_vm5, %v5785_v19, 0.0  ;;  %v5127_v32 = vsel %vm4592_vm5, %v5074_v13, 0.0  ;;  %v4734_v51 = vadd.f32 %v4733_v52, %v4732_v20 }
 0x2e5   : > { %v5124_v17 = vadd.f32 %v5123_v35, %v5122_v23  ;;  %v5075_v2 = vmul.f32 %v7683_v62, %v7683_v62  ;;  %v5024_v58 = vsel %vm4592_vm5, %v7686_v39, 0.0  ;;  %v4737_v30 = vsel %vm4592_vm5, %v4684_v14, 0.0 }
 0x2e6   : > { %v4634_v46 = vsel %vm4592_vm5, %v5788_v18, 0.0  ;;  %v4683_v63 = vmul.f32 %v5788_v18, %v5788_v18  ;;  %v5025_v21 = vadd.f32 %v5024_v58, %v5023_v10  ;;  %v5073_v49 = vmul.f32 %v7686_v39, %v7686_v39 }
 0x2e7   : > { %v4635_v44 = vadd.f32 %v4634_v46, %v4633_v37  ;;  %v4638_v55 = vsel %vm4592_vm5, %v5787_v56, 0.0  ;;  %v4685_v48 = vmul.f32 %v5787_v56, %v5787_v56  ;;  %v5028_v29 = vsel %vm4592_vm5, %v7683_v62, 0.0 }
 0x2e8   : > { %v4735_v57 = vsel %vm4592_vm5, %v4683_v63, 0.0  ;;  %v5027_v60 = vadd.f32 %v5026_v3, %v5025_v21  ;;  %v5125_v59 = vsel %vm4592_vm5, %v5073_v49, 0.0  ;;  %v5129_v47 = vsel %vm4592_vm5, %v5075_v2, 0.0  ;;  %v5725_v1 = vpop.f32.mrb[24].mxu0 }
 0x2e9   : > { %v4637_v41 = vadd.f32 %v4636_v53, %v4635_v44  ;;  %v4736_v22 = vadd.f32 %v4735_v57, %v4734_v51  ;;  %v5126_v19 = vadd.f32 %v5125_v59, %v5124_v17  ;;  %v5030_v39 = vsel %vm4592_vm5, %v7704_v25, 0.0  ;;  %v4528_v12 = vpop.f32.mrb[25].mxu0 }
 0x2ea   : > { %v5076_v5 = vmul.f32 %v7704_v25, %v7704_v25  ;;  %v5789_v62 = vadd.f32 %v5725_v1, %v7572_v11  ;;  %v5029_v43 = vadd.f32 %v5028_v29, %v5027_v60  ;;  %v4739_v28 = vsel %vm4592_vm5, %v4685_v48, 0.0  ;;  %v5726_v13 = vpop.f32.mrb[26].mxu0 }
 0x2eb   : > { %v4738_v36 = vadd.f32 %v4737_v30, %v4736_v22  ;;  %v4639_v0 = vadd.f32 %v4638_v55, %v4637_v41  ;;  %v5128_v40 = vadd.f32 %v5127_v32, %v5126_v19  ;;  %v5078_v8 = vmul.f32 %v7696_v15, %v7696_v15  ;;  %v4531_v11 = vpop.f32.mrb[27].mxu0 }
 0x2ec   : > { %v5790_v6 = vadd.f32 %v4528_v12, %v7574_v4  ;;  %v5034_v35 = vsel %vm4592_vm5, %v7696_v15, 0.0  ;;  %v5031_v25 = vadd.f32 %v5030_v39, %v5029_v43  ;;  %v5131_v45 = vsel %vm4592_vm5, %v5076_v5, 0.0 }
 0x2ed   : > { %v4740_v31 = vadd.f32 %v4739_v28, %v4738_v36  ;;  %v5130_v10 = vadd.f32 %v5129_v47, %v5128_v40  ;;  %v5791_v14 = vadd.f32 %v5726_v13, %v7576_v33  ;;  %v4688_v37 = vmul.f32 %v5789_v62, %v5789_v62 }
 0x2ee   : > { %v4640_v27 = vsel %vm4592_vm5, %v5790_v6, 0.0  ;;  %v4686_v20 = vmul.f32 %v5790_v6, %v5790_v6  ;;  %v5079_v4 = vmul.f32 %v7708_v38, %v7708_v38  ;;  %v5792_v56 = vadd.f32 %v4531_v11, %v7578_v26 }
 0x2ef   : > { %v4641_v23 = vadd.f32 %v4640_v27, %v4639_v0  ;;  %v5135_v15 = vsel %vm4592_vm5, %v5078_v8, 0.0  ;;  %v5132_v52 = vadd.f32 %v5131_v45, %v5130_v10  ;;  %v5036_v18 = vsel %vm4592_vm5, %v7708_v38, 0.0 }
 0x2f0   : > { %v4741_v3 = vsel %vm4592_vm5, %v4686_v20, 0.0  ;;  %v4642_v32 = vsel %vm4592_vm5, %v5792_v56, 0.0  ;;  %v4687_v51 = vmul.f32 %v5792_v56, %v5792_v56  ;;  %v5032_v33 = vsel %vm4592_vm5, %v7714_v50, 0.0 }
 0x2f1   : > { %v4742_v53 = vadd.f32 %v4741_v3, %v4740_v31  ;;  %v4689_v17 = vmul.f32 %v5791_v14, %v5791_v14  ;;  %v4643_v2 = vadd.f32 %v4642_v32, %v4641_v23  ;;  %v5033_v46 = vadd.f32 %v5032_v33, %v5031_v25 }
 0x2f2   : > { %v5077_v26 = vmul.f32 %v7714_v50, %v7714_v50  ;;  %v4644_v63 = vsel %vm4592_vm5, %v5789_v62, 0.0  ;;  %v4745_v58 = vsel %vm4592_vm5, %v4688_v37, 0.0  ;;  %v5137_v30 = vsel %vm4592_vm5, %v5079_v4, 0.0 }
 0x2f3   : > { %v4743_v38 = vsel %vm4592_vm5, %v4687_v51, 0.0  ;;  %v4645_v44 = vadd.f32 %v4644_v63, %v4643_v2  ;;  %v5035_v49 = vadd.f32 %v5034_v35, %v5033_v46  ;;  %v4646_v48 = vsel %vm4592_vm5, %v5791_v14, 0.0 }
 0x2f4   : > { %v4744_v21 = vadd.f32 %v4743_v38, %v4742_v53  ;;  %v5133_v55 = vsel %vm4592_vm5, %v5077_v26, 0.0  ;;  %v5038_v57 = vsel %vm4592_vm5, %v7736_v42, 0.0  ;;  %v5080_v50 = vmul.f32 %v7736_v42, %v7736_v42  ;;  %v5729_v19 = vpop.f32.mrb[28].mxu0 }
 0x2f5   : > { %v5134_v29 = vadd.f32 %v5133_v55, %v5132_v52  ;;  %v4747_v41 = vsel %vm4592_vm5, %v4689_v17, 0.0  ;;  %v4647_v60 = vadd.f32 %v4646_v48, %v4645_v44  ;;  %v5037_v59 = vadd.f32 %v5036_v18, %v5035_v49  ;;  %v4544_v62 = vpop.f32.mrb[29].mxu0 }
 0x2f6   : > { %v4746_v22 = vadd.f32 %v4745_v58, %v4744_v21  ;;  %v5082_v1 = vmul.f32 %v7730_v54, %v7730_v54  ;;  %v5040_v39 = vsel %vm4592_vm5, %v7742_v34, 0.0  ;;  %v5081_v5 = vmul.f32 %v7742_v34, %v7742_v34  ;;  %v5730_v40 = vpop.f32.mrb[30].mxu0 }
 0x2f7   : > { %v5136_v47 = vadd.f32 %v5135_v15, %v5134_v29  ;;  %v5793_v36 = vadd.f32 %v5729_v19, %v7580_v61  ;;  %v5039_v12 = vadd.f32 %v5038_v57, %v5037_v59  ;;  %v5139_v0 = vsel %vm4592_vm5, %v5080_v50, 0.0  ;;  %v4547_v13 = vpop.f32.mrb[31].mxu0 }
 0x2f8   : > { %v4748_v42 = vadd.f32 %v4747_v41, %v4746_v22  ;;  %v5794_v43 = vadd.f32 %v4544_v62, %v7582_v16  ;;  %v5042_v8 = vsel %vm4592_vm5, %v7730_v54, 0.0  ;;  %v5795_v6 = vadd.f32 %v5730_v40, %v7584_v9 }
 0x2f9   : > { %v5138_v28 = vadd.f32 %v5137_v30, %v5136_v47  ;;  %v5041_v35 = vadd.f32 %v5040_v39, %v5039_v12  ;;  %v5141_v34 = vsel %vm4592_vm5, %v5081_v5, 0.0  ;;  %v5796_v45 = vadd.f32 %v4547_v13, %v7586_v24  ;;  %v4591_v12 = vld [vmem:[#allocation4] sm:$0x3] }
 0x2fa   : > { %v4648_v61 = vsel %vm4592_vm5, %v5794_v43, 0.0  ;;  %v4690_v31 = vmul.f32 %v5794_v43, %v5794_v43  ;;  %v4692_v11 = vmul.f32 %v5793_v36, %v5793_v36  ;;  %v5143_v16 = vsel %vm4592_vm5, %v5082_v1, 0.0 }
 0x2fb   : > { %v5140_v25 = vadd.f32 %v5139_v0, %v5138_v28  ;;  %v4649_v27 = vadd.f32 %v4648_v61, %v4647_v60  ;;  %v5083_v20 = vmul.f32 %v7739_v7, %v7739_v7  ;;  %v4650_v9 = vsel %vm4592_vm5, %v5796_v45, 0.0 }
 0x2fc   : > { %v4749_v54 = vsel %vm4592_vm5, %v4690_v31, 0.0  ;;  %v4691_v10 = vmul.f32 %v5796_v45, %v5796_v45  ;;  %v5043_v14 = vadd.f32 %v5042_v8, %v5041_v35  ;;  %v5044_v23 = vsel %vm4592_vm5, %v7739_v7, 0.0 }
 0x2fd   : > { %v4750_v37 = vadd.f32 %v4749_v54, %v4748_v42  ;;  %v4651_v4 = vadd.f32 %v4650_v9, %v4649_v27  ;;  %v5142_v56 = vadd.f32 %v5141_v34, %v5140_v25  ;;  %v4652_v24 = vsel %vm4592_vm5, %v5793_v36, 0.0  ;;  %v4982_v36 = vld [vmem:[#allocation6] sm:$0x3] }
 0x2fe   : > { %v4693_v15 = vmul.f32 %v5795_v6, %v5795_v6  ;;  %v4751_v3 = vsel %vm4592_vm5, %v4691_v10, 0.0  ;;  %v5045_v52 = vadd.f32 %v5044_v23, %v5043_v14  ;;  %v4753_v51 = vsel %vm4592_vm5, %v4692_v11, 0.0 }
 0x2ff   : > { %v4653_v18 = vadd.f32 %v4652_v24, %v4651_v4  ;;  %v4752_v53 = vadd.f32 %v4751_v3, %v4750_v37  ;;  %v5144_v32 = vadd.f32 %v5143_v16, %v5142_v56  ;;  %v4654_v33 = vsel %vm4592_vm5, %v5795_v6, 0.0 }
 0x300   : > { %v5145_v17 = vsel %vm4592_vm5, %v5083_v20, 0.0  ;;  %v5046_v2 = vrot.slane %v5045_v52, 4  ;;  %v4755_v63 = vsel %vm4592_vm5, %v4693_v15, 0.0 }
 0x301   : > { %v4655_v46 = vadd.f32 %v4654_v33, %v4653_v18  ;;  %v4754_v7 = vadd.f32 %v4753_v51, %v4752_v53  ;;  %v5146_v26 = vadd.f32 %v5145_v17, %v5144_v32 }
 0x302   : > { %v5047_v58 = vadd.f32 %v5046_v2, %v5045_v52 }
 0x303   : > { %v4656_v30 = vrot.slane %v4655_v46, 4  ;;  %v4756_v38 = vadd.f32 %v4755_v63, %v4754_v7  ;;  %v5147_v44 = vrot.slane %v5146_v26, 4 }
 0x304   : > { %v5048_v21 = vrot.slane %v5047_v58, 2 }
 0x305   : > { %v4657_v49 = vadd.f32 %v4656_v30, %v4655_v46  ;;  %v4757_v55 = vrot.slane %v4756_v38, 4  ;;  %v5148_v48 = vadd.f32 %v5147_v44, %v5146_v26 }
 0x306   : > { %v5049_v29 = vadd.f32 %v5048_v21, %v5047_v58 }
 0x307   : > { %v4658_v57 = vrot.slane %v4657_v49, 2  ;;  %v4758_v50 = vadd.f32 %v4757_v55, %v4756_v38  ;;  %v5149_v41 = vrot.slane %v5148_v48, 2 }
 0x308   : > { %v5050_v59 = vrot.slane %v5049_v29, 1 }
 0x309   : > { %v4659_v22 = vadd.f32 %v4658_v57, %v4657_v49  ;;  %v4759_v60 = vrot.slane %v4758_v50, 2  ;;  %v5150_v47 = vadd.f32 %v5149_v41, %v5148_v48 }
 0x30a   : > { %v5051_v62 = vadd.f32 %v5050_v59, %v5049_v29 }
 0x30b   : > { %v4660_v19 = vrot.slane %v4659_v22, 1  ;;  %v4760_v1 = vadd.f32 %v4759_v60, %v4758_v50  ;;  %v5151_v39 = vrot.slane %v5150_v47, 1 }
 0x30d   : > { %v4761_v5 = vrot.slane %v4760_v1, 1  ;;  %v5152_v42 = vadd.f32 %v5151_v39, %v5150_v47  ;;  %v4661_v0 = vadd.f32 %v4660_v19, %v4659_v22 }
 0x30f   : > { %v4762_v43 = vadd.f32 %v4761_v5, %v4760_v1  ;;  %v5153_v28 = vsel %vm4763_vm8, %v5051_v62, %v5152_v42 }
 0x310   : > { %v5154_v40 = vadd.f32 %v5153_v28, %v4982_v36 }
 0x311   : > { %v4764_v8 = vsel %vm4763_vm8, %v4661_v0, %v4762_v43 }
 0x312   : > { %v4765_v6 = vadd.f32 %v4764_v8, %v4591_v12  ;;  %5155 = vst.msk [vmem:[#allocation6] sm:$0x3] %vm4766_vm9, %v5154_v40 }
 0x313   : > { %5956 = shalt.err (!%p5953_p12)
}
 0x314   : > { %s5957_s17 = scalar_lea.hbm %s7892_s4, 32 }
 0x315   : > { %p5958_p13 = scmp.ne.s32.totalorder %s7892_s4, %s5957_s17  ;;  %p5963_p2 = scmp.lt.u32.totalorder %s5957_s17, %s7892_s4 }
 0x317   : > { %p5959_p0 = pnand %p5958_p13, %p5841_p5 }
 0x319   : > { %p5960_p1 = pneg %p5959_p0 }
 0x31b   : > { %p5965_p3 = pnand %p5963_p2, %p5960_p1 }
 0x31d   : > { %5968 = shalt.err (!%p5965_p3)
}
 0x31e   : > { %5836 = dma.vmem_to_hbm [thread:$0]  (%p5841_p5), %s5175_s9, 32, %s7892_s4, [#allocation7]   ;;  %4767 = vst.msk [vmem:[#allocation4] sm:$0x3] %vm4766_vm9, %v4765_v6 }
 0x31f   : > { %s5969_s24 = scalar_lea.vmem %s7832_s11, 32  ;;  %p5976_p8 = scmp.lt.s32.totalorder %s7832_s11, %s7832_s11 }
 0x320   : > { %p5970_p4 = scmp.ne.s32.totalorder %s7832_s11, %s5969_s24  ;;  %p5977_p9 = scmp.lt.s32.totalorder %s5969_s24, %s5969_s24 }
 0x322   : > { %p5971_p6 = pnand %p5970_p4, %p5841_p5  ;;  %p5978_p10 = por %p5977_p9, %p5976_p8 }
 0x324   : > { %p5972_p7 = pneg %p5971_p6 }
 0x326   : > { %p5979_p11 = pnand %p5978_p10, %p5972_p7 }
 0x328   : > { %5982 = shalt.err (!%p5979_p11)
}
 0x329   : > { %s5983_s27 = scalar_lea.hbm %s7891_s3, 32 }
 0x32a   : > { %p5984_p12 = scmp.ne.s32.totalorder %s7891_s3, %s5983_s27  ;;  %p5989_p1 = scmp.lt.u32.totalorder %s5983_s27, %s7891_s3 }
 0x32c   : > { %p5985_p13 = pnand %p5984_p12, %p5841_p5 }
 0x32e   : > { %p5986_p0 = pneg %p5985_p13 }
 0x330   : > { %p5991_p2 = pnand %p5989_p1, %p5986_p0 }
 0x332   : > { %5994 = shalt.err (!%p5991_p2)
}
 0x333   : > { %5834 = dma.vmem_to_hbm [thread:$0]  (%p5841_p5), %s7832_s11, 32, %s7891_s3, [#allocation5]  }
 0x334   : > { %6000 = dma.done.wait (%p5841_p5), [#allocation5], 32  }
 0x335   : > { %6002 = vsyncadd (%p5841_p5), [#allocation5], 4294967264 }
 0x336   : > { %6004 = dma.done.wait (%p5841_p5), [#allocation7], 32  }
 0x337   : > { %6006 = vsyncadd (%p5841_p5), [#allocation7], 4294967264 }
 0x338 PF: > { %s17_s15 = sadd.s32 1, %s6009_s15  }
 0x339   : > { %p14_p3 = scmp.ge.s32.totalorder %s17_s15, 4  }
 0x33b   :  { %16 = sbr.rel (!%p14_p3) target bundleno = 2 (0x2), region = 73 }
 0x342   :  { %5191 = vsyncpa [#allocation5], 1 }
 0x343   :  { %5193 = vsyncpa [#allocation5 + $0x1], 1 }
 0x344   :  { %5194 = vsyncpa [#allocation7], 1 }

</bundles_post_ra>
